<compile_context>
chip_gen: v7x
topology: tpu7x:2x2x1
jax: 0.10.0
libtpu: 0.0.40
codegen_flags: <defaults>
</compile_context>

<pallas_src>
import jax
import jax.numpy as jnp
from jax.experimental import pallas as pl
from jax.experimental.pallas import tpu as pltpu

# ---- sizes implied by the module (decoder output reshaped to (8,1,64,64)) ---
B = 8
N = 64 * 64            # 4096 flattened input/output features
N1, N2, N3 = 256, 128, 64
M1, M2 = 64, 32
GEOM_OUT = 4

TK = 1024              # K-tile for the first-layer reduction grid (4 steps)

# ---- packed layout for the small weights / biases (single DMA) --------------
SP_COLS = 256


def _round8(n):
    return (n + 7) // 8 * 8


_SMALL_SHAPES = (
    ("b1",  (1, N1)),
    ("gb1", (1, M1)),
    ("w2",  (N1, N2)),
    ("b2",  (1, N2)),
    ("w3",  (N2, N3)),
    ("b3",  (1, N3)),
    ("g2",  (M1, M2)),
    ("gb2", (1, M2)),
    ("g3",  (M2, GEOM_OUT)),
    ("gb3", (1, GEOM_OUT)),
    ("d1a", (N3, N2)),
    ("d1b", (GEOM_OUT, N2)),
    ("db1", (1, N2)),
)
_SP_SHAPE = dict(_SMALL_SHAPES)
_SP_OFFSET = {}
_off = 0
for _name, (_r, _c) in _SMALL_SHAPES:
    _SP_OFFSET[_name] = _off
    _off += _round8(_r)        # keep every segment sublane(8)-aligned
SP_ROWS = _round8(_off)


def pack_small_params(small):
    """Pack the 13 tiny params into one (SP_ROWS, SP_COLS) f32 slab."""
    sp = jnp.zeros((SP_ROWS, SP_COLS), jnp.float32)
    for name, (r, c) in _SMALL_SHAPES:
        off = _SP_OFFSET[name]
        sp = sp.at[off:off + r, :c].set(small[name].astype(jnp.float32))
    return sp


# ---------------------------------- kernel -----------------------------------
def unified_kernel(x_ref, w1_ref, g1_ref, sp_ref, db2_ref, d2_hbm,   # inputs
                   o_ref,                                            # output
                   acc1_ref, acc2_ref, d2_vmem, d2_sem):             # scratch
    k = pl.program_id(0)
    nk = pl.num_programs(0)

    d2_copy = pltpu.make_async_copy(d2_hbm, d2_vmem, d2_sem.at[0])

    @pl.when(k == 0)
    def _init():
        d2_copy.start()                     # hide the d2 fetch behind compute
        acc1_ref[...] = jnp.zeros_like(acc1_ref)
        acc2_ref[...] = jnp.zeros_like(acc2_ref)

    # First layers of both encoders: accumulate over K tiles on the MXU
    # (bf16 inputs, f32 accumulation).
    x = x_ref[...]                                         # (B, TK) bf16
    acc1_ref[...] += jnp.dot(x, w1_ref[...], preferred_element_type=jnp.float32)
    acc2_ref[...] += jnp.dot(x, g1_ref[...], preferred_element_type=jnp.float32)

    @pl.when(k == nk - 1)
    def _finish():
        def sp(name):
            r, c = _SP_SHAPE[name]
            off = _SP_OFFSET[name]
            return sp_ref[pl.ds(off, r), pl.ds(0, c)]

        # ---- shape_encoder tail (f32 elementwise + tiny f32 dots) ----
        h = jnp.maximum(acc1_ref[...] + sp("b1"), 0.0)
        h = jnp.maximum(
            jnp.dot(h, sp("w2"), preferred_element_type=jnp.float32) + sp("b2"),
            0.0)
        logits1 = (jnp.dot(h, sp("w3"), preferred_element_type=jnp.float32)
                   + sp("b3"))

        # ---- geom_encoder tail ----
        g = jnp.maximum(acc2_ref[...] + sp("gb1"), 0.0)
        g = jnp.maximum(
            jnp.dot(g, sp("g2"), preferred_element_type=jnp.float32) + sp("gb2"),
            0.0)
        logits2 = (jnp.dot(g, sp("g3"), preferred_element_type=jnp.float32)
                   + sp("gb3"))

        # ---- decoder: cat(logits1, logits2) fused as a split matmul ----
        d = (jnp.dot(logits1, sp("d1a"), preferred_element_type=jnp.float32)
             + jnp.dot(logits2, sp("d1b"), preferred_element_type=jnp.float32)
             + sp("db1"))
        d = jnp.maximum(d, 0.0)

        d2_copy.wait()                      # d2 only needed for the last dot
        out = (jnp.dot(d.astype(jnp.bfloat16), d2_vmem[...],
                       preferred_element_type=jnp.float32)
               + db2_ref[...])
        o_ref[...] = out.astype(o_ref.dtype)


# --------------------------------- wrapper ------------------------------------
def unified_net(x_nchw, params):
    """params = (w1_bf16, g1_bf16, d2_bf16, small_slab_f32, db2_f32)."""
    w1, g1, d2, sp, db2 = params

    # nn.Flatten(): (B,1,64,64) -> (B, N); moved through HBM in bf16.
    x = x_nchw.reshape(x_nchw.shape[0], -1).astype(jnp.bfloat16)

    nk = N // TK
    grid_spec = pltpu.PrefetchScalarGridSpec(
        num_scalar_prefetch=0,
        grid=(nk,),
        in_specs=[
            pl.BlockSpec((B, TK), lambda k: (0, k)),             # x  (bf16)
            pl.BlockSpec((TK, N1), lambda k: (k, 0)),            # w1 (bf16)
            pl.BlockSpec((TK, M1), lambda k: (k, 0)),            # g1 (bf16)
            pl.BlockSpec((SP_ROWS, SP_COLS), lambda k: (0, 0)),  # small slab
            pl.BlockSpec((1, N), lambda k: (0, 0)),              # db2 (f32)
            pl.BlockSpec(memory_space=pl.ANY),                   # d2 in HBM
        ],
        out_specs=pl.BlockSpec((B, N), lambda k: (0, 0)),
        scratch_shapes=[
            pltpu.VMEM((B, N1), jnp.float32),                    # shape-enc acc
            pltpu.VMEM((B, M1), jnp.float32),                    # geom-enc acc
            pltpu.VMEM((N2, N), jnp.bfloat16),                   # d2 landing buf
            pltpu.SemaphoreType.DMA((1,)),
        ],
    )

    out_flat = pl.pallas_call(
        unified_kernel,
        out_shape=jax.ShapeDtypeStruct((B, N), jnp.float32),
        grid_spec=grid_spec,
        compiler_params=pltpu.CompilerParams(
            dimension_semantics=("arbitrary",),   # K reduction; do NOT split
            vmem_limit_bytes=32 << 20,            # footprint is only ~4 MiB
        ),
    )(x, w1, g1, sp, db2, d2)

    # matches `.reshape(8, 1, 64, 64)` in the torch module
    return out_flat.reshape(B, 1, 64, 64)


# ------------------------------ parameters ------------------------------------
def init_raw_params(key):
    """f32 parameters with the shapes from UnifiedNet.__init__."""
    def linear(k, fan_in, fan_out):
        kw, kb = jax.random.split(k)
        scale = 1.0 / jnp.sqrt(jnp.float32(fan_in))
        w = jax.random.uniform(kw, (fan_in, fan_out), jnp.float32, -scale, scale)
        b = jax.random.uniform(kb, (1, fan_out), jnp.float32, -scale, scale)
        return w, b

    ks = jax.random.split(key, 8)
    raw = {}
    raw["w1"], raw["b1"] = linear(ks[0], N, N1)                # shape_encoder
    raw["w2"], raw["b2"] = linear(ks[1], N1, N2)
    raw["w3"], raw["b3"] = linear(ks[2], N2, N3)
    raw["g1"], raw["gb1"] = linear(ks[3], N, M1)               # geom_encoder
    raw["g2"], raw["gb2"] = linear(ks[4], M1, M2)
    raw["g3"], raw["gb3"] = linear(ks[5], M2, GEOM_OUT)
    raw["d1"], raw["db1"] = linear(ks[6], N3 + GEOM_OUT, N2)   # decoder
    raw["d2"], raw["db2"] = linear(ks[7], N2, N)
    return raw


def prepare_params(raw):
    """Kernel-ready params: bf16 big weights + one packed f32 slab."""
    small = dict(
        b1=raw["b1"], gb1=raw["gb1"],
        w2=raw["w2"], b2=raw["b2"], w3=raw["w3"], b3=raw["b3"],
        g2=raw["g2"], gb2=raw["gb2"], g3=raw["g3"], gb3=raw["gb3"],
        d1a=raw["d1"][:N3, :], d1b=raw["d1"][N3:, :], db1=raw["db1"],
    )
    return (raw["w1"].astype(jnp.bfloat16),
            raw["g1"].astype(jnp.bfloat16),
            raw["d2"].astype(jnp.bfloat16),
            pack_small_params(small),
            raw["db2"].astype(jnp.float32))


def reference_forward(x_nchw, raw):
    """Pure-JAX reference with the same bf16 casts as the kernel."""
    f32 = jnp.float32
    x = x_nchw.reshape(x_nchw.shape[0], -1).astype(jnp.bfloat16).astype(f32)
    w1 = raw["w1"].astype(jnp.bfloat16).astype(f32)
    g1 = raw["g1"].astype(jnp.bfloat16).astype(f32)
    d2 = raw["d2"].astype(jnp.bfloat16).astype(f32)

    h = jnp.maximum(x @ w1 + raw["b1"], 0.0)
    h = jnp.maximum(h @ raw["w2"] + raw["b2"], 0.0)
    logits1 = h @ raw["w3"] + raw["b3"]

    g = jnp.maximum(x @ g1 + raw["gb1"], 0.0)
    g = jnp.maximum(g @ raw["g2"] + raw["gb2"], 0.0)
    logits2 = g @ raw["g3"] + raw["gb3"]

    d = jnp.maximum(logits1 @ raw["d1"][:N3] + logits2 @ raw["d1"][N3:]
                    + raw["db1"], 0.0)
    out = d.astype(jnp.bfloat16).astype(f32) @ d2 + raw["db2"]
    return out.reshape(B, 1, 64, 64)


if __name__ == "__main__":
    key = jax.random.PRNGKey(0)
    k_x, k_p = jax.random.split(key)

    # the module hard-codes .reshape(8,1,64,64), so the input must be (8,1,64,64)
    x = jax.random.normal(k_x, (B, 1, 64, 64), dtype=jnp.float32)
    raw = init_raw_params(k_p)
    params = prepare_params(raw)

    out = unified_net(x, params)
    out = jax.block_until_ready(out)

    assert out.shape == (B, 1, 64, 64)
    assert bool(jnp.all(jnp.isfinite(out)))

    # tolerance check against a pure-JAX reference (bf16 weights => loose tol)
    ref = reference_forward(x, raw)
    max_err = float(jnp.max(jnp.abs(out - ref)))
    assert max_err < 5e-2, f"mismatch vs reference: max abs err {max_err}"

    print("KERNEL_OK")
</pallas_src>

<mosaic_0001>
module attributes {stable_mosaic.version = 11 : i64} {
  func.func @unified_kernel(%arg0: i32, %arg1: memref<8x1024xbf16, #tpu.memory_space<vmem>>, %arg2: memref<1024x256xbf16, #tpu.memory_space<vmem>>, %arg3: memref<1024x64xbf16, #tpu.memory_space<vmem>>, %arg4: memref<608x256xf32, #tpu.memory_space<vmem>>, %arg5: memref<1x4096xf32, #tpu.memory_space<vmem>>, %arg6: memref<128x4096xbf16, #tpu.memory_space<any>>, %arg7: memref<8x4096xf32, #tpu.memory_space<vmem>>, %arg8: memref<8x256xf32, #tpu.memory_space<vmem>>, %arg9: memref<8x64xf32, #tpu.memory_space<vmem>>, %arg10: memref<128x4096xbf16, #tpu.memory_space<vmem>>, %arg11: memref<1x!tpu.dma_semaphore, #tpu.memory_space<semaphore_mem>>) attributes {dimension_semantics = [#tpu.dimension_semantics<arbitrary>], iteration_bounds = array<i64: 4>, scalar_prefetch = 0 : i64, scratch_operands = 4 : i64, tpu.core_type = #tpu.core_type<tc>, window_params = [{transform_indices = @transform_0, window_bounds = array<i64: 8, 1024>}, {transform_indices = @transform_1, window_bounds = array<i64: 1024, 256>}, {transform_indices = @transform_2, window_bounds = array<i64: 1024, 64>}, {pipeline_mode = #tpu.pipeline_mode<synchronous>, transform_indices = @transform_3, window_bounds = array<i64: 608, 256>}, {pipeline_mode = #tpu.pipeline_mode<synchronous>, transform_indices = @transform_4, window_bounds = array<i64: 1, 4096>}, {}, {pipeline_mode = #tpu.pipeline_mode<synchronous>, transform_indices = @transform_6, window_bounds = array<i64: 8, 4096>}]} {
    %c0_i32 = arith.constant 0 : i32
    %0 = arith.cmpi eq, %arg0, %c0_i32 : i32
    %1 = arith.extui %0 : i1 to i32
    %c0_i32_0 = arith.constant 0 : i32
    %c0_i32_1 = arith.constant 0 : i32
    %2 = arith.cmpi ne, %1, %c0_i32_1 : i32
    scf.if %2 {
      %17 = tpu.memref_slice %arg11[%c0_i32_0] : memref<1x!tpu.dma_semaphore, #tpu.memory_space<semaphore_mem>> -> memref<1x!tpu.dma_semaphore, #tpu.memory_space<semaphore_mem>>
      %18 = tpu.memref_squeeze %17 : memref<1x!tpu.dma_semaphore, #tpu.memory_space<semaphore_mem>> -> memref<!tpu.dma_semaphore, #tpu.memory_space<semaphore_mem>>
      tpu.enqueue_dma source(%arg6 : memref<128x4096xbf16, #tpu.memory_space<any>>) target(%arg10 : memref<128x4096xbf16, #tpu.memory_space<vmem>>) target_semaphore(%18 : memref<!tpu.dma_semaphore, #tpu.memory_space<semaphore_mem>>)
      %cst_18 = arith.constant 0.000000e+00 : f32
      %19 = vector.broadcast %cst_18 : f32 to vector<8x256xf32>
      %c0_19 = arith.constant 0 : index
      %c0_20 = arith.constant 0 : index
      %20 = vector.load %arg8[%c0_19, %c0_20] : memref<8x256xf32, #tpu.memory_space<vmem>>, vector<8x256xf32>
      tpu.vector_store %arg8[%c0_19, %c0_20], %19 {strides = array<i32>} : memref<8x256xf32, #tpu.memory_space<vmem>>, vector<8x256xf32>,
      %cst_21 = arith.constant 0.000000e+00 : f32
      %21 = vector.broadcast %cst_21 : f32 to vector<8x64xf32>
      %c0_22 = arith.constant 0 : index
      %c0_23 = arith.constant 0 : index
      %22 = vector.load %arg9[%c0_22, %c0_23] : memref<8x64xf32, #tpu.memory_space<vmem>>, vector<8x64xf32>
      tpu.vector_store %arg9[%c0_22, %c0_23], %21 {strides = array<i32>} : memref<8x64xf32, #tpu.memory_space<vmem>>, vector<8x64xf32>,
    } else {
    }
    %c0 = arith.constant 0 : index
    %c0_2 = arith.constant 0 : index
    %3 = vector.load %arg1[%c0, %c0_2] : memref<8x1024xbf16, #tpu.memory_space<vmem>>, vector<8x1024xbf16>
    %c0_3 = arith.constant 0 : index
    %c0_4 = arith.constant 0 : index
    %4 = vector.load %arg8[%c0_3, %c0_4] : memref<8x256xf32, #tpu.memory_space<vmem>>, vector<8x256xf32>
    %c0_5 = arith.constant 0 : index
    %c0_6 = arith.constant 0 : index
    %5 = vector.load %arg2[%c0_5, %c0_6] : memref<1024x256xbf16, #tpu.memory_space<vmem>>, vector<1024x256xbf16>
    %cst = arith.constant dense<0.000000e+00> : vector<8x256xf32>
    %6 = tpu.matmul %3, %5, %cst {dimension_numbers = #tpu.dot_dimension_numbers<[1], [0], [0], [1], [0, 0, 1, 1], [], []>} : vector<8x1024xbf16>, vector<1024x256xbf16>, vector<8x256xf32> -> vector<8x256xf32>
    %7 = arith.addf %4, %6 : vector<8x256xf32>
    %c0_7 = arith.constant 0 : index
    %c0_8 = arith.constant 0 : index
    %8 = vector.load %arg8[%c0_7, %c0_8] : memref<8x256xf32, #tpu.memory_space<vmem>>, vector<8x256xf32>
    tpu.vector_store %arg8[%c0_7, %c0_8], %7 {strides = array<i32>} : memref<8x256xf32, #tpu.memory_space<vmem>>, vector<8x256xf32>,
    %c0_9 = arith.constant 0 : index
    %c0_10 = arith.constant 0 : index
    %9 = vector.load %arg9[%c0_9, %c0_10] : memref<8x64xf32, #tpu.memory_space<vmem>>, vector<8x64xf32>
    %c0_11 = arith.constant 0 : index
    %c0_12 = arith.constant 0 : index
    %10 = vector.load %arg3[%c0_11, %c0_12] : memref<1024x64xbf16, #tpu.memory_space<vmem>>, vector<1024x64xbf16>
    %cst_13 = arith.constant dense<0.000000e+00> : vector<8x64xf32>
    %11 = tpu.matmul %3, %10, %cst_13 {dimension_numbers = #tpu.dot_dimension_numbers<[1], [0], [0], [1], [0, 0, 1, 1], [], []>} : vector<8x1024xbf16>, vector<1024x64xbf16>, vector<8x64xf32> -> vector<8x64xf32>
    %12 = arith.addf %9, %11 : vector<8x64xf32>
    %c0_14 = arith.constant 0 : index
    %c0_15 = arith.constant 0 : index
    %13 = vector.load %arg9[%c0_14, %c0_15] : memref<8x64xf32, #tpu.memory_space<vmem>>, vector<8x64xf32>
    tpu.vector_store %arg9[%c0_14, %c0_15], %12 {strides = array<i32>} : memref<8x64xf32, #tpu.memory_space<vmem>>, vector<8x64xf32>,
    %c3_i32 = arith.constant 3 : i32
    %14 = arith.cmpi eq, %arg0, %c3_i32 : i32
    %15 = arith.extui %14 : i1 to i32
    %c0_i32_16 = arith.constant 0 : i32
    %c0_i32_17 = arith.constant 0 : i32
    %16 = arith.cmpi ne, %15, %c0_i32_17 : i32
    scf.if %16 {
      %c0_18 = arith.constant 0 : index
      %c0_19 = arith.constant 0 : index
      %17 = vector.load %arg8[%c0_18, %c0_19] : memref<8x256xf32, #tpu.memory_space<vmem>>, vector<8x256xf32>
      %c0_20 = arith.constant 0 : index
      %c0_21 = arith.constant 0 : index
      %18 = vector.load %arg4[%c0_20, %c0_21] : memref<608x256xf32, #tpu.memory_space<vmem>>, vector<1x256xf32>
      %19 = vector.broadcast %18 : vector<1x256xf32> to vector<8x256xf32>
      %20 = arith.addf %17, %19 : vector<8x256xf32>
      %cst_22 = arith.constant 0.000000e+00 : f32
      %21 = vector.broadcast %cst_22 : f32 to vector<8x256xf32>
      %22 = arith.maximumf %20, %21 : vector<8x256xf32>
      %c16 = arith.constant 16 : index
      %c0_23 = arith.constant 0 : index
      %23 = vector.load %arg4[%c16, %c0_23] : memref<608x256xf32, #tpu.memory_space<vmem>>, vector<256x128xf32>
      %cst_24 = arith.constant dense<0.000000e+00> : vector<8x128xf32>
      %24 = tpu.matmul %22, %23, %cst_24 {dimension_numbers = #tpu.dot_dimension_numbers<[1], [0], [0], [1], [0, 0, 1, 1], [], []>} : vector<8x256xf32>, vector<256x128xf32>, vector<8x128xf32> -> vector<8x128xf32>
      %c272 = arith.constant 272 : index
      %c0_25 = arith.constant 0 : index
      %25 = vector.load %arg4[%c272, %c0_25] : memref<608x256xf32, #tpu.memory_space<vmem>>, vector<1x128xf32>
      %26 = vector.broadcast %25 : vector<1x128xf32> to vector<8x128xf32>
      %27 = arith.addf %24, %26 : vector<8x128xf32>
      %cst_26 = arith.constant 0.000000e+00 : f32
      %28 = vector.broadcast %cst_26 : f32 to vector<8x128xf32>
      %29 = arith.maximumf %27, %28 : vector<8x128xf32>
      %c280 = arith.constant 280 : index
      %c0_27 = arith.constant 0 : index
      %30 = vector.load %arg4[%c280, %c0_27] : memref<608x256xf32, #tpu.memory_space<vmem>>, vector<128x64xf32>
      %cst_28 = arith.constant dense<0.000000e+00> : vector<8x64xf32>
      %31 = tpu.matmul %29, %30, %cst_28 {dimension_numbers = #tpu.dot_dimension_numbers<[1], [0], [0], [1], [0, 0, 1, 1], [], []>} : vector<8x128xf32>, vector<128x64xf32>, vector<8x64xf32> -> vector<8x64xf32>
      %c408 = arith.constant 408 : index
      %c0_29 = arith.constant 0 : index
      %32 = vector.load %arg4[%c408, %c0_29] : memref<608x256xf32, #tpu.memory_space<vmem>>, vector<1x64xf32>
      %33 = vector.broadcast %32 : vector<1x64xf32> to vector<8x64xf32>
      %34 = arith.addf %31, %33 : vector<8x64xf32>
      %c0_30 = arith.constant 0 : index
      %c0_31 = arith.constant 0 : index
      %35 = vector.load %arg9[%c0_30, %c0_31] : memref<8x64xf32, #tpu.memory_space<vmem>>, vector<8x64xf32>
      %c8 = arith.constant 8 : index
      %c0_32 = arith.constant 0 : index
      %36 = vector.load %arg4[%c8, %c0_32] : memref<608x256xf32, #tpu.memory_space<vmem>>, vector<1x64xf32>
      %37 = vector.broadcast %36 : vector<1x64xf32> to vector<8x64xf32>
      %38 = arith.addf %35, %37 : vector<8x64xf32>
      %cst_33 = arith.constant 0.000000e+00 : f32
      %39 = vector.broadcast %cst_33 : f32 to vector<8x64xf32>
      %40 = arith.maximumf %38, %39 : vector<8x64xf32>
      %c416 = arith.constant 416 : index
      %c0_34 = arith.constant 0 : index
      %41 = vector.load %arg4[%c416, %c0_34] : memref<608x256xf32, #tpu.memory_space<vmem>>, vector<64x32xf32>
      %cst_35 = arith.constant dense<0.000000e+00> : vector<8x32xf32>
      %42 = tpu.matmul %40, %41, %cst_35 {dimension_numbers = #tpu.dot_dimension_numbers<[1], [0], [0], [1], [0, 0, 1, 1], [], []>} : vector<8x64xf32>, vector<64x32xf32>, vector<8x32xf32> -> vector<8x32xf32>
      %c480 = arith.constant 480 : index
      %c0_36 = arith.constant 0 : index
      %43 = vector.load %arg4[%c480, %c0_36] : memref<608x256xf32, #tpu.memory_space<vmem>>, vector<1x32xf32>
      %44 = vector.broadcast %43 : vector<1x32xf32> to vector<8x32xf32>
      %45 = arith.addf %42, %44 : vector<8x32xf32>
      %cst_37 = arith.constant 0.000000e+00 : f32
      %46 = vector.broadcast %cst_37 : f32 to vector<8x32xf32>
      %47 = arith.maximumf %45, %46 : vector<8x32xf32>
      %c488 = arith.constant 488 : index
      %c0_38 = arith.constant 0 : index
      %48 = vector.load %arg4[%c488, %c0_38] : memref<608x256xf32, #tpu.memory_space<vmem>>, vector<32x4xf32>
      %cst_39 = arith.constant dense<0.000000e+00> : vector<8x4xf32>
      %49 = tpu.matmul %47, %48, %cst_39 {dimension_numbers = #tpu.dot_dimension_numbers<[1], [0], [0], [1], [0, 0, 1, 1], [], []>} : vector<8x32xf32>, vector<32x4xf32>, vector<8x4xf32> -> vector<8x4xf32>
      %c520 = arith.constant 520 : index
      %c0_40 = arith.constant 0 : index
      %50 = vector.load %arg4[%c520, %c0_40] : memref<608x256xf32, #tpu.memory_space<vmem>>, vector<1x4xf32>
      %51 = vector.broadcast %50 : vector<1x4xf32> to vector<8x4xf32>
      %52 = arith.addf %49, %51 : vector<8x4xf32>
      %c528 = arith.constant 528 : index
      %c0_41 = arith.constant 0 : index
      %53 = vector.load %arg4[%c528, %c0_41] : memref<608x256xf32, #tpu.memory_space<vmem>>, vector<64x128xf32>
      %cst_42 = arith.constant dense<0.000000e+00> : vector<8x128xf32>
      %54 = tpu.matmul %34, %53, %cst_42 {dimension_numbers = #tpu.dot_dimension_numbers<[1], [0], [0], [1], [0, 0, 1, 1], [], []>} : vector<8x64xf32>, vector<64x128xf32>, vector<8x128xf32> -> vector<8x128xf32>
      %c592 = arith.constant 592 : index
      %c0_43 = arith.constant 0 : index
      %55 = vector.load %arg4[%c592, %c0_43] : memref<608x256xf32, #tpu.memory_space<vmem>>, vector<4x128xf32>
      %cst_44 = arith.constant dense<0.000000e+00> : vector<8x128xf32>
      %56 = tpu.matmul %52, %55, %cst_44 {dimension_numbers = #tpu.dot_dimension_numbers<[1], [0], [0], [1], [0, 0, 1, 1], [], []>} : vector<8x4xf32>, vector<4x128xf32>, vector<8x128xf32> -> vector<8x128xf32>
      %57 = arith.addf %54, %56 : vector<8x128xf32>
      %c600 = arith.constant 600 : index
      %c0_45 = arith.constant 0 : index
      %58 = vector.load %arg4[%c600, %c0_45] : memref<608x256xf32, #tpu.memory_space<vmem>>, vector<1x128xf32>
      %59 = vector.broadcast %58 : vector<1x128xf32> to vector<8x128xf32>
      %60 = arith.addf %57, %59 : vector<8x128xf32>
      %cst_46 = arith.constant 0.000000e+00 : f32
      %61 = vector.broadcast %cst_46 : f32 to vector<8x128xf32>
      %62 = arith.maximumf %60, %61 : vector<8x128xf32>
      %63 = tpu.memref_slice %arg11[%c0_i32_16] : memref<1x!tpu.dma_semaphore, #tpu.memory_space<semaphore_mem>> -> memref<1x!tpu.dma_semaphore, #tpu.memory_space<semaphore_mem>>
      %64 = tpu.memref_squeeze %63 : memref<1x!tpu.dma_semaphore, #tpu.memory_space<semaphore_mem>> -> memref<!tpu.dma_semaphore, #tpu.memory_space<semaphore_mem>>
      tpu.wait_dma2 semaphore(%64 : memref<!tpu.dma_semaphore, #tpu.memory_space<semaphore_mem>>) src(%arg6 : memref<128x4096xbf16, #tpu.memory_space<any>>) dst(%arg10 : memref<128x4096xbf16, #tpu.memory_space<vmem>>)
      %65 = arith.truncf %62 : vector<8x128xf32> to vector<8x128xbf16>
      %c0_47 = arith.constant 0 : index
      %c0_48 = arith.constant 0 : index
      %66 = vector.load %arg10[%c0_47, %c0_48] : memref<128x4096xbf16, #tpu.memory_space<vmem>>, vector<128x4096xbf16>
      %cst_49 = arith.constant dense<0.000000e+00> : vector<8x4096xf32>
      %67 = tpu.matmul %65, %66, %cst_49 {dimension_numbers = #tpu.dot_dimension_numbers<[1], [0], [0], [1], [0, 0, 1, 1], [], []>} : vector<8x128xbf16>, vector<128x4096xbf16>, vector<8x4096xf32> -> vector<8x4096xf32>
      %c0_50 = arith.constant 0 : index
      %c0_51 = arith.constant 0 : index
      %68 = vector.load %arg5[%c0_50, %c0_51] : memref<1x4096xf32, #tpu.memory_space<vmem>>, vector<1x4096xf32>
      %69 = vector.broadcast %68 : vector<1x4096xf32> to vector<8x4096xf32>
      %70 = arith.addf %67, %69 : vector<8x4096xf32>
      %c0_52 = arith.constant 0 : index
      %c0_53 = arith.constant 0 : index
      %71 = vector.load %arg7[%c0_52, %c0_53] : memref<8x4096xf32, #tpu.memory_space<vmem>>, vector<8x4096xf32>
      tpu.vector_store %arg7[%c0_52, %c0_53], %70 {strides = array<i32>} : memref<8x4096xf32, #tpu.memory_space<vmem>>, vector<8x4096xf32>,
    } else {
    }
    return
  }
  func.func @transform_0(%arg0: i32) -> (i32, i32) {
    %c0_i32 = arith.constant 0 : i32
    %c0_i32_0 = arith.constant 0 : i32
    return %c0_i32, %arg0 : i32, i32
  }
  func.func @transform_1(%arg0: i32) -> (i32, i32) {
    %c0_i32 = arith.constant 0 : i32
    %c0_i32_0 = arith.constant 0 : i32
    return %arg0, %c0_i32 : i32, i32
  }
  func.func @transform_2(%arg0: i32) -> (i32, i32) {
    %c0_i32 = arith.constant 0 : i32
    %c0_i32_0 = arith.constant 0 : i32
    return %arg0, %c0_i32 : i32, i32
  }
  func.func @transform_3(%arg0: i32) -> (i32, i32) {
    %c0_i32 = arith.constant 0 : i32
    %c0_i32_0 = arith.constant 0 : i32
    %c0_i32_1 = arith.constant 0 : i32
    return %c0_i32, %c0_i32_0 : i32, i32
  }
  func.func @transform_4(%arg0: i32) -> (i32, i32) {
    %c0_i32 = arith.constant 0 : i32
    %c0_i32_0 = arith.constant 0 : i32
    %c0_i32_1 = arith.constant 0 : i32
    return %c0_i32, %c0_i32_0 : i32, i32
  }
  func.func @transform_6(%arg0: i32) -> (i32, i32) {
    %c0_i32 = arith.constant 0 : i32
    %c0_i32_0 = arith.constant 0 : i32
    %c0_i32_1 = arith.constant 0 : i32
    return %c0_i32, %c0_i32_0 : i32, i32
  }
}

</mosaic_0001>

<bundles_post_ra>
// kernel: tpu_custom_call.1
= control target key start
LH: loop header
LB: loop body
LE: loop exit
PB: predicated region body
PF: predicated region fallthrough
CT: control target
= control target key end

     0   :  { %11 = vsyncpa [#allocation7], 0  ;;  %s11296_s0 = inlined_call_operand.hbm [shape: bf16[8,4096], index: 0, kind: input, shape index: {}]   ;;  %s11297_s1 = inlined_call_operand.hbm [shape: bf16[4096,256], index: 1, kind: input, shape index: {}]   ;;  %s11298_s2 = inlined_call_operand.vmem [shape: bf16[4096,64], index: 2, kind: input, shape index: {}]   ;;  %s11299_s3 = inlined_call_operand.hbm [shape: f32[608,256], index: 3, kind: input, shape index: {}]   ;;  %s11300_s4 = inlined_call_operand.hbm [shape: f32[1,4096], index: 4, kind: input, shape index: {}]   ;;  %s11301_s5 = inlined_call_operand.vmem [shape: bf16[128,4096], index: 5, kind: input, shape index: {}]   ;;  %s11302_s6 = inlined_call_operand.hbm [shape: f32[8,4096], index: 6, kind: output, shape index: {}]  }
   0x1   :  { %13 = vsyncpa [#allocation7 + $0x1], 0 }
   0x2   :  { %14 = vsyncpa [#allocation10], 0 }
   0x3   :  { %16 = vsyncpa [#allocation10 + $0x1], 0 }
   0x4   :  { %17 = vsyncpa [#allocation13], 0 }
   0x5   :  { %18 = vsyncpa [#allocation8], 0  ;;  %s9144_s21 = smov 0   ;;  %s9146_s22 = smov 0  }
   0x6   :  { %s9148_s23 = smov 0   ;;  %s9150_s24 = smov 0  }
   0x7 LB: > { %s9163_s25 = sadd.s32 4294967295, %s9093_s24   ;;  %p44_p0 = scmp.ne.s32.totalorder %s9085_s22, %s9081_s21  ;;  %s9093_s24 = sphi %s9150_s24, %s11320_s24   ;;  %s9089_s23 = sphi %s9148_s23, %s11319_s23   ;;  %s9085_s22 = sphi %s9146_s22, %s11318_s22   ;;  %s9081_s21 = sphi %s9144_s21, %s11317_s21  }
   0x8   : > { %p11303_p1 = scmp.eq.s32.totalorder %s9163_s25, 0  ;;  %p7977_p2 = scmp.ge.s32.totalorder %s9093_s24, 1 }
   0x9   : > { %p170_p3 = scmp.lt.s32.totalorder %s9093_s24, 5  ;;  %s9095_s28 = smov [#allocation11]  }
   0xa   : > { %p9172_p5 = por %p11303_p1, %p44_p0  ;;  %s182_s29 = sshll.u32 %s9095_s28, 4  ;;  %s183_s29 = int_to_ptr.vmem [resolvable:$true] %s182_s29 }
   0xb   : > { %p9176_p6 = pnand %p7977_p2, %p170_p3  ;;  %s9096_s7 = smov [#allocation12]  }
   0xc   : > { %s11306_s26 = scalar_select %p9172_p5, 1, 0 }
   0xd   : > { %s11307_s27 = scalar_select %p9176_p6, 1, 0 }
   0xe   : > { %p8570_p7 = pneg %p9176_p6  ;;  %s196_s8 = sshll.u32 %s9096_s7, 4  ;;  %s9188_s8 = int_to_ptr.vmem [resolvable:$true] %s196_s8 }
   0xf   : > { %s8899_s11 = scalar_lea.hbm %s11299_s3, 19456 }
  0x10   : > { %p9184_p8 = pnand %p8570_p7, %p11303_p1  ;;  %p8900_p9 = scmp.ne.s32.totalorder %s11299_s3, %s8899_s11 }
  0x11   : > { %p8906_p13 = scmp.lt.u32.totalorder %s8899_s11, %s11299_s3 }
  0x12   : > { %p8901_p10 = pneg %p9184_p8 }
  0x14   : > { %p8902_p11 = pnand %p8901_p10, %p8900_p9 }
  0x16   : > { %p8903_p12 = pneg %p8902_p11 }
  0x18   : > { %p8908_p0 = pnand %p8906_p13, %p8903_p12 }
  0x1a   : > { %8911 = shalt.err (!%p8908_p0)
}
  0x1b   : > { %s8912_s16 = scalar_lea.vmem %s183_s29, 19456  ;;  %p8920_p4 = scmp.lt.s32.totalorder %s183_s29, %s183_s29 }
  0x1c   : > { %p8913_p2 = scmp.ne.s32.totalorder %s183_s29, %s8912_s16  ;;  %p8921_p1 = scmp.lt.s32.totalorder %s8912_s16, %s8912_s16 }
  0x1e   : > { %p8915_p3 = pnand %p8913_p2, %p8901_p10  ;;  %p8922_p5 = por %p8921_p1, %p8920_p4 }
  0x20   : > { %p8916_p7 = pneg %p8915_p3 }
  0x22   : > { %p8923_p6 = pnand %p8922_p5, %p8916_p7 }
  0x24   : > { %8926 = shalt.err (!%p8923_p6)
}
  0x25   : > { %s9097_s17 = smov 256   ;;  %s9098_s18 = smov 16  }
  0x26   : > { %8573 = dma.hbm_to_vmem [thread:$0]  (!%p9184_p8), %s11299_s3, 19456, %s183_s29, [#allocation10], %s9097_s17, %s9097_s17, %s9098_s18  }
  0x27   : > { %s8927_s7 = scalar_lea.hbm %s11300_s4, 512 }
  0x28   : > { %p8928_p9 = scmp.ne.s32.totalorder %s11300_s4, %s8927_s7  ;;  %p8934_p5 = scmp.lt.u32.totalorder %s8927_s7, %s11300_s4 }
  0x2a   : > { %p8930_p1 = pnand %p8928_p9, %p8901_p10 }
  0x2c   : > { %p8931_p4 = pneg %p8930_p1 }
  0x2e   : > { %p8936_p6 = pnand %p8934_p5, %p8931_p4 }
  0x30   : > { %8939 = shalt.err (!%p8936_p6)
}
  0x31   : > { %s8940_s29 = scalar_lea.vmem %s9188_s8, 512  ;;  %p8948_p0 = scmp.lt.s32.totalorder %s9188_s8, %s9188_s8 }
  0x32   : > { %p8941_p11 = scmp.ne.s32.totalorder %s9188_s8, %s8940_s29  ;;  %p8949_p2 = scmp.lt.s32.totalorder %s8940_s29, %s8940_s29 }
  0x34   : > { %p8943_p12 = pnand %p8941_p11, %p8901_p10  ;;  %p8950_p3 = por %p8949_p2, %p8948_p0 }
  0x36   : > { %p8944_p13 = pneg %p8943_p12 }
  0x38   : > { %p8951_p7 = pnand %p8950_p3, %p8944_p13 }
  0x3a   : > { %8954 = shalt.err (!%p8951_p7)
}
  0x3b   : > { %8576 = dma.hbm_to_vmem [thread:$0]  (!%p9184_p8), %s11300_s4, 512, %s9188_s8, [#allocation13]  }
  0x3c   : > { %s9238_s15 = sadd.s32 1, %s9093_s24   ;;  %s31_s16 = sadd.s32 1, %s9089_s23 }
  0x3d   : > { %s28_s30 = ssub.s32 %s9093_s24, %s9238_s15  ;;  %p38_p10 = scmp.ne.s32.totalorder %s9089_s23, %s9085_s22 }
  0x3e   : > { %p29_p9 = scmp.eq.s32.totalorder %s28_s30, 0  ;;  %p39_p1 = scmp.eq.s32.totalorder %s9093_s24, 0 }
  0x3f   : > { %p8586_p4 = scmp.lt.s32.totalorder %s9093_s24, 4  ;;  %s9248_s17 = sand.u32 1, %s9089_s23  }
  0x40   : > { %s9251_s18 = scalar_select %p29_p9, %s9089_s23, %s31_s16  }
  0x41   : > { %p40_p5 = por %p39_p1, %p38_p10  ;;  %s7981_s19 = sshll.u32 %s9248_s17, 5 }
  0x42   : > { %s8211_s20 = sshll.u32 %s9093_s24, 9  ;;  %s211_s7 = scalar_lea.vmem [#allocation6], %s7981_s19 }
  0x43   : > { %s9258_s28 = scalar_lea.hbm %s11296_s0, %s8211_s20  ;;  %s219_s9 = sshll.u32 %s211_s7, 4  ;;  %s9264_s9 = int_to_ptr.vmem [resolvable:$true] %s219_s9 }
  0x44   : > { %p9260_p8 = pnand %p8586_p4, %p40_p5  ;;  %s7984_s11 = sshll.u32 %s9248_s17, 10 }
  0x45   : > { %s208_s12 = scalar_lea.sflag [#allocation7], %s9248_s17  ;;  %s8955_s29 = scalar_lea.hbm %s9258_s28, 512 }
  0x46   : > { %p8956_p6 = scmp.ne.s32.totalorder %s9258_s28, %s8955_s29  ;;  %p8957_p11 = pneg %p9260_p8 }
  0x47   : > { %s8960_s16 = scalar_lea.hbm %s11296_s0, 2048  ;;  %p8961_p0 = scmp.lt.u32.totalorder %s9258_s28, %s11296_s0 }
  0x48   : > { %p8958_p12 = pnand %p8957_p11, %p8956_p6  ;;  %p8962_p2 = scmp.lt.u32.totalorder %s8960_s16, %s8955_s29 }
  0x49   : > { %p8964_p7 = scmp.lt.u32.totalorder %s8955_s29, %s9258_s28 }
  0x4a   : > { %p8959_p13 = pneg %p8958_p12  ;;  %p8963_p3 = por %p8962_p2, %p8961_p0 }
  0x4c   : > { %p8965_p10 = por %p8964_p7, %p8963_p3 }
  0x4e   : > { %p8966_p9 = pnand %p8965_p10, %p8959_p13 }
  0x50   : > { %8969 = shalt.err (!%p8966_p9)
}
  0x51   : > { %s8970_s20 = scalar_lea.vmem %s9264_s9, 512  ;;  %s9099_s8 = smov [#allocation6]  }
  0x52   : > { %p8971_p1 = scmp.ne.s32.totalorder %s9264_s9, %s8970_s20  ;;  %s8975_s21 = sshll.u32 %s9099_s8, 4  ;;  %s8976_s21 = int_to_ptr.vmem [resolvable:$false] %s8975_s21 }
  0x53   : > { %s8977_s7 = scalar_lea.vmem %s8976_s21, 1024  ;;  %p8978_p6 = scmp.lt.s32.totalorder %s9264_s9, %s8976_s21 }
  0x54   : > { %p8973_p4 = pnand %p8971_p1, %p8957_p11  ;;  %p8979_p12 = scmp.lt.s32.totalorder %s8977_s7, %s8970_s20 }
  0x56   : > { %p8974_p5 = pneg %p8973_p4  ;;  %p8980_p0 = por %p8979_p12, %p8978_p6 }
  0x58   : > { %p8981_p2 = pnand %p8980_p0, %p8974_p5 }
  0x5a   : > { %8984 = shalt.err (!%p8981_p2)
}
  0x5b   : > { %8580 = dma.hbm_to_vmem [thread:$0]  (!%p9260_p8), %s9258_s28, 512, %s9264_s9, %s208_s12  }
  0x5c   : > { %s230_s29 = scalar_lea.vmem [#allocation9], %s7984_s11  ;;  %s226_s14 = sand.u32 1, %s9093_s24  }
  0x5d   : > { %s238_s13 = sshll.u32 %s230_s29, 4  ;;  %s8213_s16 = sshll.u32 %s9093_s24, 14  ;;  %s9296_s13 = int_to_ptr.vmem [resolvable:$true] %s238_s13 }
  0x5e   : > { %s9302_s20 = scalar_lea.hbm %s11297_s1, %s8213_s16  ;;  %s9304_s8 = scalar_lea.sflag [#allocation10], %s226_s14 }
  0x5f   : > { %s8985_s21 = scalar_lea.hbm %s9302_s20, 16384  ;;  %s8990_s24 = scalar_lea.hbm %s11297_s1, 65536 }
  0x60   : > { %p8986_p13 = scmp.ne.s32.totalorder %s9302_s20, %s8985_s21  ;;  %p8991_p10 = scmp.lt.u32.totalorder %s9302_s20, %s11297_s1 }
  0x61   : > { %p8992_p9 = scmp.lt.u32.totalorder %s8990_s24, %s8985_s21  ;;  %p8994_p4 = scmp.lt.u32.totalorder %s8985_s21, %s9302_s20 }
  0x62   : > { %p8988_p3 = pnand %p8986_p13, %p8957_p11 }
  0x63   : > { %p8993_p1 = por %p8992_p9, %p8991_p10 }
  0x64   : > { %p8989_p7 = pneg %p8988_p3 }
  0x65   : > { %p8995_p5 = por %p8994_p4, %p8993_p1 }
  0x67   : > { %p8996_p6 = pnand %p8995_p5, %p8989_p7 }
  0x69   : > { %8999 = shalt.err (!%p8996_p6)
}
  0x6a   : > { %s9000_s12 = scalar_lea.vmem %s9296_s13, 16384  ;;  %s9100_s7 = smov [#allocation9]  }
  0x6b   : > { %p9001_p12 = scmp.ne.s32.totalorder %s9296_s13, %s9000_s12  ;;  %s9005_s29 = sshll.u32 %s9100_s7, 4  ;;  %s9006_s29 = int_to_ptr.vmem [resolvable:$false] %s9005_s29 }
  0x6c   : > { %s9007_s14 = scalar_lea.vmem %s9006_s29, 32768  ;;  %p9008_p13 = scmp.lt.s32.totalorder %s9296_s13, %s9006_s29 }
  0x6d   : > { %p9003_p0 = pnand %p9001_p12, %p8957_p11  ;;  %p9009_p3 = scmp.lt.s32.totalorder %s9007_s14, %s9000_s12 }
  0x6f   : > { %p9004_p2 = pneg %p9003_p0  ;;  %p9010_p10 = por %p9009_p3, %p9008_p13 }
  0x71   : > { %p9011_p9 = pnand %p9010_p10, %p9004_p2 }
  0x73   : > { %9014 = shalt.err (!%p9011_p9)
}
  0x74   : > { %s9101_s16 = smov 128   ;;  %s9102_s30 = smov 8  }
  0x75   : > { %8583 = dma.hbm_to_vmem [thread:$0]  (!%p9260_p8), %s9302_s20, 16384, %s9296_s13, %s9304_s8, %s9101_s16, %s9101_s16, %s9102_s30  }
  0x76   : > { %p11310_p11 = scmp.ne.s32.totalorder %s11307_s27, 0 }
  0x77   : > { %s261_s19 = sand.u32 (!%p11310_p11), 1, %s9085_s22   ;;  %p11311_p7 = scmp.ne.s32.totalorder (!%p11310_p11), %s11306_s26, 0 }
  0x78   : > { %259 = sbr.rel (%p11310_p11) target bundleno = 2081 (0x821), region = 40  ;;  %s7989_s21 = sshll.u32 (!%p11310_p11), %s261_s19, 5 }
  0x79   : > { %s262_s17 = scalar_lea.sflag (!%p11310_p11), [#allocation7], %s261_s19  ;;  %s9333_s28 = scalar_lea.vmem (!%p11310_p11), [#allocation6], %s7989_s21 }
  0x7f   : > { %9058 = dma.done.wait (%p11311_p7), %s262_s17, 512  }
  0x80   : > { %9060 = vsyncadd (%p11311_p7), %s262_s17, 4294966784  ;;  %s270_s24 = sand.u32 1, %s9163_s25   ;;  %s7990_s10 = sshll.u32 %s261_s19, 10 }
  0x81   : > { %s271_s13 = scalar_lea.sflag [#allocation10], %s270_s24  ;;  %s9340_s20 = scalar_lea.vmem [#allocation9], %s7990_s10 }
  0x82   : > { %9062 = dma.done.wait (%p11311_p7), %s271_s13, 16384  }
  0x83   : > { %9064 = vsyncadd (%p11311_p7), %s271_s13, 4294950912  ;;  %p11312_p8 = scmp.eq.s32.totalorder %s9163_s25, 0 }
  0x85   : > { %9066 = dma.done.wait (%p11312_p8), [#allocation10], 19456   ;;  %p11313_p1 = pmov %p11312_p8 }
  0x87   : > { %9068 = vsyncadd (%p11313_p1), [#allocation10], 4294947840  ;;  %p11314_p4 = pmov %p11313_p1 }
  0x88   : > { %p11315_p5 = pmov %p11313_p1 }
  0x89   : > { %9070 = dma.done.wait (%p11314_p4), [#allocation13], 512  }
  0x8a   : > { %9072 = vsyncadd (%p11315_p5), [#allocation13], 4294966784  ;;  %s7993_s27 = sshll.u32 %s9163_s25, 7  ;;  %p11316_p12 = scmp.ne.s32.totalorder %s9163_s25, 0 }
  0x8b   : > { %p317_p6 = scmp.lt.s32.totalorder %s7993_s27, 511  ;;  %v344_v0 = vld [vmem:[%s11301_s5] sm:$0xf] (!%p11316_p12)  ;;  %v348_v2 = vld [vmem:[%s11301_s5 + $0x4] sm:$0xf] (!%p11316_p12) }
  0x8c   : > { %326 = sbr.rel (%p11316_p12) target bundleno = 480 (0x1e0), region = 60  ;;  %v346_v1 = vld [vmem:[%s11301_s5 + $0x80] sm:$0xf] (!%p11316_p12)  ;;  %345 = vst [vmem:[#allocation4] sm:$0xf] (!%p11316_p12), %v344_v0 }
  0x8d   : > { %s11322_s27 = smov (!%p317_p6, %s7993_s27), 511  ;;  %347 = vst [vmem:[#allocation4 + $0x4] sm:$0xf] (!%p11316_p12), %v346_v1  ;;  %349 = vst [vmem:[#allocation4 + $0x8] sm:$0xf] (!%p11316_p12), %v348_v2  ;;  %v470_v63 = vld [vmem:[%s11301_s5 + $0xfc] sm:$0xff] (!%p11316_p12)  }
  0x8e   : > { %s7994_s8 = sshll.u32 %s11322_s27, 2  ;;  %v350_v3 = vld [vmem:[%s11301_s5 + $0x84] sm:$0xf] (!%p11316_p12)  ;;  %v352_v4 = vld [vmem:[%s11301_s5 + $0x8] sm:$0xf] (!%p11316_p12)  ;;  %471 = vst [vmem:[#allocation4 + $0xfc] sm:$0xff] (!%p11316_p12), %v470_v63  }
  0x8f   : > { %s9358_s11 = scalar_lea.vmem %s11298_s2, %s7994_s8  ;;  %v354_v5 = vld [vmem:[%s11301_s5 + $0x88] sm:$0xf] (!%p11316_p12)  ;;  %351 = vst [vmem:[#allocation4 + $0xc] sm:$0xf] (!%p11316_p12), %v350_v3  ;;  %353 = vst [vmem:[#allocation4 + $0x10] sm:$0xf] (!%p11316_p12), %v352_v4 }
  0x90   : > { %355 = vst [vmem:[#allocation4 + $0x14] sm:$0xf] (!%p11316_p12), %v354_v5  ;;  %v356_v6 = vld [vmem:[%s11301_s5 + $0xc] sm:$0xf] (!%p11316_p12)  ;;  %v360_v8 = vld [vmem:[%s11301_s5 + $0x10] sm:$0xf] (!%p11316_p12) }
  0x91   : > { %v358_v7 = vld [vmem:[%s11301_s5 + $0x8c] sm:$0xf] (!%p11316_p12)  ;;  %357 = vst [vmem:[#allocation4 + $0x18] sm:$0xf] (!%p11316_p12), %v356_v6  ;;  %361 = vst [vmem:[#allocation4 + $0x20] sm:$0xf] (!%p11316_p12), %v360_v8 }
  0x92   : > { %359 = vst [vmem:[#allocation4 + $0x1c] sm:$0xf] (!%p11316_p12), %v358_v7  ;;  %v362_v9 = vld [vmem:[%s11301_s5 + $0x90] sm:$0xf] (!%p11316_p12)  ;;  %v364_v10 = vld [vmem:[%s11301_s5 + $0x14] sm:$0xf] (!%p11316_p12) }
  0x93   : > { %v366_v11 = vld [vmem:[%s11301_s5 + $0x94] sm:$0xf]  ;;  %363 = vst [vmem:[#allocation4 + $0x24] sm:$0xf] %v362_v9  ;;  %365 = vst [vmem:[#allocation4 + $0x28] sm:$0xf] %v364_v10 }
  0x94   : > { %367 = vst [vmem:[#allocation4 + $0x2c] sm:$0xf] %v366_v11  ;;  %v368_v12 = vld [vmem:[%s11301_s5 + $0x18] sm:$0xf]  ;;  %v372_v14 = vld [vmem:[%s11301_s5 + $0x1c] sm:$0xf] }
  0x95   : > { %v370_v13 = vld [vmem:[%s11301_s5 + $0x98] sm:$0xf]  ;;  %369 = vst [vmem:[#allocation4 + $0x30] sm:$0xf] %v368_v12  ;;  %373 = vst [vmem:[#allocation4 + $0x38] sm:$0xf] %v372_v14 }
  0x96   : > { %371 = vst [vmem:[#allocation4 + $0x34] sm:$0xf] %v370_v13  ;;  %v374_v15 = vld [vmem:[%s11301_s5 + $0x9c] sm:$0xf]  ;;  %v376_v16 = vld [vmem:[%s11301_s5 + $0x20] sm:$0xf] }
  0x97   : > { %v378_v17 = vld [vmem:[%s11301_s5 + $0xa0] sm:$0xf]  ;;  %375 = vst [vmem:[#allocation4 + $0x3c] sm:$0xf] %v374_v15  ;;  %377 = vst [vmem:[#allocation4 + $0x40] sm:$0xf] %v376_v16 }
  0x98   : > { %379 = vst [vmem:[#allocation4 + $0x44] sm:$0xf] %v378_v17  ;;  %v380_v18 = vld [vmem:[%s11301_s5 + $0x24] sm:$0xf]  ;;  %v384_v20 = vld [vmem:[%s11301_s5 + $0x28] sm:$0xf] }
  0x99   : > { %v382_v19 = vld [vmem:[%s11301_s5 + $0xa4] sm:$0xf]  ;;  %381 = vst [vmem:[#allocation4 + $0x48] sm:$0xf] %v380_v18  ;;  %385 = vst [vmem:[#allocation4 + $0x50] sm:$0xf] %v384_v20 }
  0x9a   : > { %383 = vst [vmem:[#allocation4 + $0x4c] sm:$0xf] %v382_v19  ;;  %v386_v21 = vld [vmem:[%s11301_s5 + $0xa8] sm:$0xf]  ;;  %v388_v22 = vld [vmem:[%s11301_s5 + $0x2c] sm:$0xf] }
  0x9b   : > { %v390_v23 = vld [vmem:[%s11301_s5 + $0xac] sm:$0xf]  ;;  %387 = vst [vmem:[#allocation4 + $0x54] sm:$0xf] %v386_v21  ;;  %389 = vst [vmem:[#allocation4 + $0x58] sm:$0xf] %v388_v22 }
  0x9c   : > { %391 = vst [vmem:[#allocation4 + $0x5c] sm:$0xf] %v390_v23  ;;  %v392_v24 = vld [vmem:[%s11301_s5 + $0x30] sm:$0xf]  ;;  %v396_v26 = vld [vmem:[%s11301_s5 + $0x34] sm:$0xf] }
  0x9d   : > { %v394_v25 = vld [vmem:[%s11301_s5 + $0xb0] sm:$0xf]  ;;  %393 = vst [vmem:[#allocation4 + $0x60] sm:$0xf] %v392_v24  ;;  %397 = vst [vmem:[#allocation4 + $0x68] sm:$0xf] %v396_v26 }
  0x9e   : > { %395 = vst [vmem:[#allocation4 + $0x64] sm:$0xf] %v394_v25  ;;  %v398_v27 = vld [vmem:[%s11301_s5 + $0xb4] sm:$0xf]  ;;  %v400_v28 = vld [vmem:[%s11301_s5 + $0x38] sm:$0xf] }
  0x9f   : > { %v402_v29 = vld [vmem:[%s11301_s5 + $0xb8] sm:$0xf]  ;;  %399 = vst [vmem:[#allocation4 + $0x6c] sm:$0xf] %v398_v27  ;;  %401 = vst [vmem:[#allocation4 + $0x70] sm:$0xf] %v400_v28 }
  0xa0   : > { %403 = vst [vmem:[#allocation4 + $0x74] sm:$0xf] %v402_v29  ;;  %v404_v30 = vld [vmem:[%s11301_s5 + $0x3c] sm:$0xf]  ;;  %v408_v32 = vld [vmem:[%s11301_s5 + $0x40] sm:$0xf] }
  0xa1   : > { %v406_v31 = vld [vmem:[%s11301_s5 + $0xbc] sm:$0xf]  ;;  %405 = vst [vmem:[#allocation4 + $0x78] sm:$0xf] %v404_v30  ;;  %409 = vst [vmem:[#allocation4 + $0x80] sm:$0xf] %v408_v32 }
  0xa2   : > { %407 = vst [vmem:[#allocation4 + $0x7c] sm:$0xf] %v406_v31  ;;  %v410_v33 = vld [vmem:[%s11301_s5 + $0xc0] sm:$0xf]  ;;  %v412_v34 = vld [vmem:[%s11301_s5 + $0x44] sm:$0xf] }
  0xa3   : > { %v414_v35 = vld [vmem:[%s11301_s5 + $0xc4] sm:$0xf]  ;;  %411 = vst [vmem:[#allocation4 + $0x84] sm:$0xf] %v410_v33  ;;  %413 = vst [vmem:[#allocation4 + $0x88] sm:$0xf] %v412_v34 }
  0xa4   : > { %415 = vst [vmem:[#allocation4 + $0x8c] sm:$0xf] %v414_v35  ;;  %v416_v36 = vld [vmem:[%s11301_s5 + $0x48] sm:$0xf]  ;;  %v420_v38 = vld [vmem:[%s11301_s5 + $0x4c] sm:$0xf] }
  0xa5   : > { %v418_v37 = vld [vmem:[%s11301_s5 + $0xc8] sm:$0xf]  ;;  %417 = vst [vmem:[#allocation4 + $0x90] sm:$0xf] %v416_v36  ;;  %421 = vst [vmem:[#allocation4 + $0x98] sm:$0xf] %v420_v38 }
  0xa6   : > { %419 = vst [vmem:[#allocation4 + $0x94] sm:$0xf] %v418_v37  ;;  %v422_v39 = vld [vmem:[%s11301_s5 + $0xcc] sm:$0xf]  ;;  %v424_v40 = vld [vmem:[%s11301_s5 + $0x50] sm:$0xf] }
  0xa7   : > { %v426_v41 = vld [vmem:[%s11301_s5 + $0xd0] sm:$0xf]  ;;  %423 = vst [vmem:[#allocation4 + $0x9c] sm:$0xf] %v422_v39  ;;  %425 = vst [vmem:[#allocation4 + $0xa0] sm:$0xf] %v424_v40 }
  0xa8   : > { %427 = vst [vmem:[#allocation4 + $0xa4] sm:$0xf] %v426_v41  ;;  %v428_v42 = vld [vmem:[%s11301_s5 + $0x54] sm:$0xf]  ;;  %v432_v44 = vld [vmem:[%s11301_s5 + $0x58] sm:$0xf] }
  0xa9   : > { %v430_v43 = vld [vmem:[%s11301_s5 + $0xd4] sm:$0xf]  ;;  %429 = vst [vmem:[#allocation4 + $0xa8] sm:$0xf] %v428_v42  ;;  %433 = vst [vmem:[#allocation4 + $0xb0] sm:$0xf] %v432_v44 }
  0xaa   : > { %431 = vst [vmem:[#allocation4 + $0xac] sm:$0xf] %v430_v43  ;;  %v434_v45 = vld [vmem:[%s11301_s5 + $0xd8] sm:$0xf]  ;;  %v436_v46 = vld [vmem:[%s11301_s5 + $0x5c] sm:$0xf] }
  0xab   : > { %v438_v47 = vld [vmem:[%s11301_s5 + $0xdc] sm:$0xf]  ;;  %435 = vst [vmem:[#allocation4 + $0xb4] sm:$0xf] %v434_v45  ;;  %437 = vst [vmem:[#allocation4 + $0xb8] sm:$0xf] %v436_v46 }
  0xac   : > { %439 = vst [vmem:[#allocation4 + $0xbc] sm:$0xf] %v438_v47  ;;  %v440_v48 = vld [vmem:[%s11301_s5 + $0x60] sm:$0xf]  ;;  %v444_v50 = vld [vmem:[%s11301_s5 + $0x64] sm:$0xf] }
  0xad   : > { %v442_v49 = vld [vmem:[%s11301_s5 + $0xe0] sm:$0xf]  ;;  %441 = vst [vmem:[#allocation4 + $0xc0] sm:$0xf] %v440_v48  ;;  %445 = vst [vmem:[#allocation4 + $0xc8] sm:$0xf] %v444_v50 }
  0xae   : > { %443 = vst [vmem:[#allocation4 + $0xc4] sm:$0xf] %v442_v49  ;;  %v446_v51 = vld [vmem:[%s11301_s5 + $0xe4] sm:$0xf]  ;;  %v448_v52 = vld [vmem:[%s11301_s5 + $0x68] sm:$0xf] }
  0xaf   : > { %v450_v53 = vld [vmem:[%s11301_s5 + $0xe8] sm:$0xf]  ;;  %447 = vst [vmem:[#allocation4 + $0xcc] sm:$0xf] %v446_v51  ;;  %449 = vst [vmem:[#allocation4 + $0xd0] sm:$0xf] %v448_v52 }
  0xb0   : > { %451 = vst [vmem:[#allocation4 + $0xd4] sm:$0xf] %v450_v53  ;;  %v452_v54 = vld [vmem:[%s11301_s5 + $0x6c] sm:$0xf]  ;;  %v456_v56 = vld [vmem:[%s11301_s5 + $0x70] sm:$0xf] }
  0xb1   : > { %v454_v55 = vld [vmem:[%s11301_s5 + $0xec] sm:$0xf]  ;;  %453 = vst [vmem:[#allocation4 + $0xd8] sm:$0xf] %v452_v54  ;;  %457 = vst [vmem:[#allocation4 + $0xe0] sm:$0xf] %v456_v56 }
  0xb2   : > { %455 = vst [vmem:[#allocation4 + $0xdc] sm:$0xf] %v454_v55  ;;  %v458_v57 = vld [vmem:[%s11301_s5 + $0xf0] sm:$0xf]  ;;  %v460_v58 = vld [vmem:[%s11301_s5 + $0x74] sm:$0xf] }
  0xb3   : > { %v462_v59 = vld [vmem:[%s11301_s5 + $0xf4] sm:$0xf]  ;;  %459 = vst [vmem:[#allocation4 + $0xe4] sm:$0xf] %v458_v57  ;;  %461 = vst [vmem:[#allocation4 + $0xe8] sm:$0xf] %v460_v58 }
  0xb4   : > { %463 = vst [vmem:[#allocation4 + $0xec] sm:$0xf] %v462_v59  ;;  %v464_v60 = vld [vmem:[%s11301_s5 + $0x78] sm:$0xf]  ;;  %v468_v62 = vld [vmem:[%s11301_s5 + $0x7c] sm:$0xf] }
  0xb5   : > { %v466_v61 = vld [vmem:[%s11301_s5 + $0xf8] sm:$0xf]  ;;  %465 = vst [vmem:[#allocation4 + $0xf0] sm:$0xf] %v464_v60  ;;  %469 = vst [vmem:[#allocation4 + $0xf8] sm:$0xf] %v468_v62 }
  0xb6   : > { %467 = vst [vmem:[#allocation4 + $0xf4] sm:$0xf] %v466_v61  ;;  %v474_v0 = vld [vmem:[%s11301_s5 + $0x180] sm:$0xf]  ;;  %v476_v1 = vld [vmem:[%s11301_s5 + $0x104] sm:$0xf] }
  0xb7   : > { %475 = vst [vmem:[#allocation4 + $0x104] sm:$0xf] %v474_v0  ;;  %477 = vst [vmem:[#allocation4 + $0x108] sm:$0xf] %v476_v1  ;;  %v478_v2 = vld [vmem:[%s11301_s5 + $0x184] sm:$0xf] }
  0xb8   : > { %v480_v3 = vld [vmem:[%s11301_s5 + $0x108] sm:$0xf]  ;;  %479 = vst [vmem:[#allocation4 + $0x10c] sm:$0xf] %v478_v2  ;;  %v484_v5 = vld [vmem:[%s11301_s5 + $0x10c] sm:$0xf] }
  0xb9   : > { %v482_v4 = vld [vmem:[%s11301_s5 + $0x188] sm:$0xf]  ;;  %481 = vst [vmem:[#allocation4 + $0x110] sm:$0xf] %v480_v3  ;;  %v486_v6 = vld [vmem:[%s11301_s5 + $0x18c] sm:$0xf] }
  0xba   : > { %483 = vst [vmem:[#allocation4 + $0x114] sm:$0xf] %v482_v4  ;;  %v488_v7 = vld [vmem:[%s11301_s5 + $0x110] sm:$0xf]  ;;  %485 = vst [vmem:[#allocation4 + $0x118] sm:$0xf] %v484_v5 }
  0xbb   : > { %487 = vst [vmem:[#allocation4 + $0x11c] sm:$0xf] %v486_v6  ;;  %489 = vst [vmem:[#allocation4 + $0x120] sm:$0xf] %v488_v7  ;;  %v490_v8 = vld [vmem:[%s11301_s5 + $0x190] sm:$0xf] }
  0xbc   : > { %v492_v9 = vld [vmem:[%s11301_s5 + $0x114] sm:$0xf]  ;;  %491 = vst [vmem:[#allocation4 + $0x124] sm:$0xf] %v490_v8  ;;  %v496_v11 = vld [vmem:[%s11301_s5 + $0x118] sm:$0xf] }
  0xbd   : > { %v494_v10 = vld [vmem:[%s11301_s5 + $0x194] sm:$0xf]  ;;  %493 = vst [vmem:[#allocation4 + $0x128] sm:$0xf] %v492_v9  ;;  %v498_v12 = vld [vmem:[%s11301_s5 + $0x198] sm:$0xf] }
  0xbe   : > { %495 = vst [vmem:[#allocation4 + $0x12c] sm:$0xf] %v494_v10  ;;  %v500_v13 = vld [vmem:[%s11301_s5 + $0x11c] sm:$0xf]  ;;  %497 = vst [vmem:[#allocation4 + $0x130] sm:$0xf] %v496_v11 }
  0xbf   : > { %499 = vst [vmem:[#allocation4 + $0x134] sm:$0xf] %v498_v12  ;;  %501 = vst [vmem:[#allocation4 + $0x138] sm:$0xf] %v500_v13  ;;  %v502_v14 = vld [vmem:[%s11301_s5 + $0x19c] sm:$0xf] }
  0xc0   : > { %v504_v15 = vld [vmem:[%s11301_s5 + $0x120] sm:$0xf]  ;;  %503 = vst [vmem:[#allocation4 + $0x13c] sm:$0xf] %v502_v14  ;;  %v508_v17 = vld [vmem:[%s11301_s5 + $0x124] sm:$0xf] }
  0xc1   : > { %v506_v16 = vld [vmem:[%s11301_s5 + $0x1a0] sm:$0xf]  ;;  %505 = vst [vmem:[#allocation4 + $0x140] sm:$0xf] %v504_v15  ;;  %v510_v18 = vld [vmem:[%s11301_s5 + $0x1a4] sm:$0xf] }
  0xc2   : > { %507 = vst [vmem:[#allocation4 + $0x144] sm:$0xf] %v506_v16  ;;  %v512_v19 = vld [vmem:[%s11301_s5 + $0x128] sm:$0xf]  ;;  %509 = vst [vmem:[#allocation4 + $0x148] sm:$0xf] %v508_v17 }
  0xc3   : > { %511 = vst [vmem:[#allocation4 + $0x14c] sm:$0xf] %v510_v18  ;;  %513 = vst [vmem:[#allocation4 + $0x150] sm:$0xf] %v512_v19  ;;  %v514_v20 = vld [vmem:[%s11301_s5 + $0x1a8] sm:$0xf] }
  0xc4   : > { %v516_v21 = vld [vmem:[%s11301_s5 + $0x12c] sm:$0xf]  ;;  %515 = vst [vmem:[#allocation4 + $0x154] sm:$0xf] %v514_v20  ;;  %v520_v23 = vld [vmem:[%s11301_s5 + $0x130] sm:$0xf] }
  0xc5   : > { %v518_v22 = vld [vmem:[%s11301_s5 + $0x1ac] sm:$0xf]  ;;  %517 = vst [vmem:[#allocation4 + $0x158] sm:$0xf] %v516_v21  ;;  %v522_v24 = vld [vmem:[%s11301_s5 + $0x1b0] sm:$0xf] }
  0xc6   : > { %519 = vst [vmem:[#allocation4 + $0x15c] sm:$0xf] %v518_v22  ;;  %v524_v25 = vld [vmem:[%s11301_s5 + $0x134] sm:$0xf]  ;;  %521 = vst [vmem:[#allocation4 + $0x160] sm:$0xf] %v520_v23 }
  0xc7   : > { %523 = vst [vmem:[#allocation4 + $0x164] sm:$0xf] %v522_v24  ;;  %525 = vst [vmem:[#allocation4 + $0x168] sm:$0xf] %v524_v25  ;;  %v526_v26 = vld [vmem:[%s11301_s5 + $0x1b4] sm:$0xf] }
  0xc8   : > { %v528_v27 = vld [vmem:[%s11301_s5 + $0x138] sm:$0xf]  ;;  %527 = vst [vmem:[#allocation4 + $0x16c] sm:$0xf] %v526_v26  ;;  %v532_v29 = vld [vmem:[%s11301_s5 + $0x13c] sm:$0xf] }
  0xc9   : > { %v530_v28 = vld [vmem:[%s11301_s5 + $0x1b8] sm:$0xf]  ;;  %529 = vst [vmem:[#allocation4 + $0x170] sm:$0xf] %v528_v27  ;;  %v534_v30 = vld [vmem:[%s11301_s5 + $0x1bc] sm:$0xf] }
  0xca   : > { %531 = vst [vmem:[#allocation4 + $0x174] sm:$0xf] %v530_v28  ;;  %v536_v31 = vld [vmem:[%s11301_s5 + $0x140] sm:$0xf]  ;;  %533 = vst [vmem:[#allocation4 + $0x178] sm:$0xf] %v532_v29 }
  0xcb   : > { %535 = vst [vmem:[#allocation4 + $0x17c] sm:$0xf] %v534_v30  ;;  %537 = vst [vmem:[#allocation4 + $0x180] sm:$0xf] %v536_v31  ;;  %v538_v32 = vld [vmem:[%s11301_s5 + $0x1c0] sm:$0xf] }
  0xcc   : > { %v540_v33 = vld [vmem:[%s11301_s5 + $0x144] sm:$0xf]  ;;  %539 = vst [vmem:[#allocation4 + $0x184] sm:$0xf] %v538_v32  ;;  %v544_v35 = vld [vmem:[%s11301_s5 + $0x148] sm:$0xf] }
  0xcd   : > { %v542_v34 = vld [vmem:[%s11301_s5 + $0x1c4] sm:$0xf]  ;;  %541 = vst [vmem:[#allocation4 + $0x188] sm:$0xf] %v540_v33  ;;  %v546_v36 = vld [vmem:[%s11301_s5 + $0x1c8] sm:$0xf] }
  0xce   : > { %543 = vst [vmem:[#allocation4 + $0x18c] sm:$0xf] %v542_v34  ;;  %v548_v37 = vld [vmem:[%s11301_s5 + $0x14c] sm:$0xf]  ;;  %545 = vst [vmem:[#allocation4 + $0x190] sm:$0xf] %v544_v35 }
  0xcf   : > { %547 = vst [vmem:[#allocation4 + $0x194] sm:$0xf] %v546_v36  ;;  %549 = vst [vmem:[#allocation4 + $0x198] sm:$0xf] %v548_v37  ;;  %v550_v38 = vld [vmem:[%s11301_s5 + $0x1cc] sm:$0xf] }
  0xd0   : > { %v552_v39 = vld [vmem:[%s11301_s5 + $0x150] sm:$0xf]  ;;  %551 = vst [vmem:[#allocation4 + $0x19c] sm:$0xf] %v550_v38  ;;  %v556_v41 = vld [vmem:[%s11301_s5 + $0x154] sm:$0xf] }
  0xd1   : > { %v554_v40 = vld [vmem:[%s11301_s5 + $0x1d0] sm:$0xf]  ;;  %553 = vst [vmem:[#allocation4 + $0x1a0] sm:$0xf] %v552_v39  ;;  %v558_v42 = vld [vmem:[%s11301_s5 + $0x1d4] sm:$0xf] }
  0xd2   : > { %555 = vst [vmem:[#allocation4 + $0x1a4] sm:$0xf] %v554_v40  ;;  %v560_v43 = vld [vmem:[%s11301_s5 + $0x158] sm:$0xf]  ;;  %557 = vst [vmem:[#allocation4 + $0x1a8] sm:$0xf] %v556_v41 }
  0xd3   : > { %559 = vst [vmem:[#allocation4 + $0x1ac] sm:$0xf] %v558_v42  ;;  %561 = vst [vmem:[#allocation4 + $0x1b0] sm:$0xf] %v560_v43  ;;  %v562_v44 = vld [vmem:[%s11301_s5 + $0x1d8] sm:$0xf] }
  0xd4   : > { %v564_v45 = vld [vmem:[%s11301_s5 + $0x15c] sm:$0xf]  ;;  %563 = vst [vmem:[#allocation4 + $0x1b4] sm:$0xf] %v562_v44  ;;  %v568_v47 = vld [vmem:[%s11301_s5 + $0x160] sm:$0xf] }
  0xd5   : > { %v566_v46 = vld [vmem:[%s11301_s5 + $0x1dc] sm:$0xf]  ;;  %565 = vst [vmem:[#allocation4 + $0x1b8] sm:$0xf] %v564_v45  ;;  %v570_v48 = vld [vmem:[%s11301_s5 + $0x1e0] sm:$0xf] }
  0xd6   : > { %567 = vst [vmem:[#allocation4 + $0x1bc] sm:$0xf] %v566_v46  ;;  %v572_v49 = vld [vmem:[%s11301_s5 + $0x164] sm:$0xf]  ;;  %569 = vst [vmem:[#allocation4 + $0x1c0] sm:$0xf] %v568_v47 }
  0xd7   : > { %571 = vst [vmem:[#allocation4 + $0x1c4] sm:$0xf] %v570_v48  ;;  %573 = vst [vmem:[#allocation4 + $0x1c8] sm:$0xf] %v572_v49  ;;  %v574_v50 = vld [vmem:[%s11301_s5 + $0x1e4] sm:$0xf] }
  0xd8   : > { %v576_v51 = vld [vmem:[%s11301_s5 + $0x168] sm:$0xf]  ;;  %575 = vst [vmem:[#allocation4 + $0x1cc] sm:$0xf] %v574_v50  ;;  %v580_v53 = vld [vmem:[%s11301_s5 + $0x16c] sm:$0xf] }
  0xd9   : > { %v578_v52 = vld [vmem:[%s11301_s5 + $0x1e8] sm:$0xf]  ;;  %577 = vst [vmem:[#allocation4 + $0x1d0] sm:$0xf] %v576_v51  ;;  %v582_v54 = vld [vmem:[%s11301_s5 + $0x1ec] sm:$0xf] }
  0xda   : > { %579 = vst [vmem:[#allocation4 + $0x1d4] sm:$0xf] %v578_v52  ;;  %v584_v55 = vld [vmem:[%s11301_s5 + $0x170] sm:$0xf]  ;;  %581 = vst [vmem:[#allocation4 + $0x1d8] sm:$0xf] %v580_v53 }
  0xdb   : > { %583 = vst [vmem:[#allocation4 + $0x1dc] sm:$0xf] %v582_v54  ;;  %585 = vst [vmem:[#allocation4 + $0x1e0] sm:$0xf] %v584_v55  ;;  %v586_v56 = vld [vmem:[%s11301_s5 + $0x1f0] sm:$0xf] }
  0xdc   : > { %v588_v57 = vld [vmem:[%s11301_s5 + $0x174] sm:$0xf]  ;;  %587 = vst [vmem:[#allocation4 + $0x1e4] sm:$0xf] %v586_v56  ;;  %v592_v59 = vld [vmem:[%s11301_s5 + $0x178] sm:$0xf] }
  0xdd   : > { %v590_v58 = vld [vmem:[%s11301_s5 + $0x1f4] sm:$0xf]  ;;  %589 = vst [vmem:[#allocation4 + $0x1e8] sm:$0xf] %v588_v57  ;;  %v594_v60 = vld [vmem:[%s11301_s5 + $0x1f8] sm:$0xf] }
  0xde   : > { %591 = vst [vmem:[#allocation4 + $0x1ec] sm:$0xf] %v590_v58  ;;  %v596_v61 = vld [vmem:[%s11301_s5 + $0x17c] sm:$0xf]  ;;  %593 = vst [vmem:[#allocation4 + $0x1f0] sm:$0xf] %v592_v59 }
  0xdf   : > { %595 = vst [vmem:[#allocation4 + $0x1f4] sm:$0xf] %v594_v60  ;;  %597 = vst [vmem:[#allocation4 + $0x1f8] sm:$0xf] %v596_v61  ;;  %v598_v62 = vld [vmem:[%s11301_s5 + $0x1fc] sm:$0xff]  }
  0xe0   : > { %v602_v63 = vld [vmem:[%s11301_s5 + $0x280] sm:$0xf]  ;;  %v604_v0 = vld [vmem:[%s11301_s5 + $0x204] sm:$0xf]  ;;  %599 = vst [vmem:[#allocation4 + $0x1fc] sm:$0xff] %v598_v62  }
  0xe1   : > { %603 = vst [vmem:[#allocation4 + $0x204] sm:$0xf] %v602_v63  ;;  %605 = vst [vmem:[#allocation4 + $0x208] sm:$0xf] %v604_v0  ;;  %v606_v1 = vld [vmem:[%s11301_s5 + $0x284] sm:$0xf] }
  0xe2   : > { %v608_v2 = vld [vmem:[%s11301_s5 + $0x208] sm:$0xf]  ;;  %607 = vst [vmem:[#allocation4 + $0x20c] sm:$0xf] %v606_v1  ;;  %v612_v4 = vld [vmem:[%s11301_s5 + $0x20c] sm:$0xf] }
  0xe3   : > { %v610_v3 = vld [vmem:[%s11301_s5 + $0x288] sm:$0xf]  ;;  %609 = vst [vmem:[#allocation4 + $0x210] sm:$0xf] %v608_v2  ;;  %v614_v5 = vld [vmem:[%s11301_s5 + $0x28c] sm:$0xf] }
  0xe4   : > { %611 = vst [vmem:[#allocation4 + $0x214] sm:$0xf] %v610_v3  ;;  %v616_v6 = vld [vmem:[%s11301_s5 + $0x210] sm:$0xf]  ;;  %613 = vst [vmem:[#allocation4 + $0x218] sm:$0xf] %v612_v4 }
  0xe5   : > { %615 = vst [vmem:[#allocation4 + $0x21c] sm:$0xf] %v614_v5  ;;  %617 = vst [vmem:[#allocation4 + $0x220] sm:$0xf] %v616_v6  ;;  %v618_v7 = vld [vmem:[%s11301_s5 + $0x290] sm:$0xf] }
  0xe6   : > { %v620_v8 = vld [vmem:[%s11301_s5 + $0x214] sm:$0xf]  ;;  %619 = vst [vmem:[#allocation4 + $0x224] sm:$0xf] %v618_v7  ;;  %v624_v10 = vld [vmem:[%s11301_s5 + $0x218] sm:$0xf] }
  0xe7   : > { %v622_v9 = vld [vmem:[%s11301_s5 + $0x294] sm:$0xf]  ;;  %621 = vst [vmem:[#allocation4 + $0x228] sm:$0xf] %v620_v8  ;;  %v626_v11 = vld [vmem:[%s11301_s5 + $0x298] sm:$0xf] }
  0xe8   : > { %623 = vst [vmem:[#allocation4 + $0x22c] sm:$0xf] %v622_v9  ;;  %v628_v12 = vld [vmem:[%s11301_s5 + $0x21c] sm:$0xf]  ;;  %625 = vst [vmem:[#allocation4 + $0x230] sm:$0xf] %v624_v10 }
  0xe9   : > { %627 = vst [vmem:[#allocation4 + $0x234] sm:$0xf] %v626_v11  ;;  %629 = vst [vmem:[#allocation4 + $0x238] sm:$0xf] %v628_v12  ;;  %v630_v13 = vld [vmem:[%s11301_s5 + $0x29c] sm:$0xf] }
  0xea   : > { %v632_v14 = vld [vmem:[%s11301_s5 + $0x220] sm:$0xf]  ;;  %631 = vst [vmem:[#allocation4 + $0x23c] sm:$0xf] %v630_v13  ;;  %v636_v16 = vld [vmem:[%s11301_s5 + $0x224] sm:$0xf] }
  0xeb   : > { %v634_v15 = vld [vmem:[%s11301_s5 + $0x2a0] sm:$0xf]  ;;  %633 = vst [vmem:[#allocation4 + $0x240] sm:$0xf] %v632_v14  ;;  %v638_v17 = vld [vmem:[%s11301_s5 + $0x2a4] sm:$0xf] }
  0xec   : > { %635 = vst [vmem:[#allocation4 + $0x244] sm:$0xf] %v634_v15  ;;  %v640_v18 = vld [vmem:[%s11301_s5 + $0x228] sm:$0xf]  ;;  %637 = vst [vmem:[#allocation4 + $0x248] sm:$0xf] %v636_v16 }
  0xed   : > { %639 = vst [vmem:[#allocation4 + $0x24c] sm:$0xf] %v638_v17  ;;  %641 = vst [vmem:[#allocation4 + $0x250] sm:$0xf] %v640_v18  ;;  %v642_v19 = vld [vmem:[%s11301_s5 + $0x2a8] sm:$0xf] }
  0xee   : > { %v644_v20 = vld [vmem:[%s11301_s5 + $0x22c] sm:$0xf]  ;;  %643 = vst [vmem:[#allocation4 + $0x254] sm:$0xf] %v642_v19  ;;  %v648_v22 = vld [vmem:[%s11301_s5 + $0x230] sm:$0xf] }
  0xef   : > { %v646_v21 = vld [vmem:[%s11301_s5 + $0x2ac] sm:$0xf]  ;;  %645 = vst [vmem:[#allocation4 + $0x258] sm:$0xf] %v644_v20  ;;  %v650_v23 = vld [vmem:[%s11301_s5 + $0x2b0] sm:$0xf] }
  0xf0   : > { %647 = vst [vmem:[#allocation4 + $0x25c] sm:$0xf] %v646_v21  ;;  %v652_v24 = vld [vmem:[%s11301_s5 + $0x234] sm:$0xf]  ;;  %649 = vst [vmem:[#allocation4 + $0x260] sm:$0xf] %v648_v22 }
  0xf1   : > { %651 = vst [vmem:[#allocation4 + $0x264] sm:$0xf] %v650_v23  ;;  %653 = vst [vmem:[#allocation4 + $0x268] sm:$0xf] %v652_v24  ;;  %v654_v25 = vld [vmem:[%s11301_s5 + $0x2b4] sm:$0xf] }
  0xf2   : > { %v656_v26 = vld [vmem:[%s11301_s5 + $0x238] sm:$0xf]  ;;  %655 = vst [vmem:[#allocation4 + $0x26c] sm:$0xf] %v654_v25  ;;  %v660_v28 = vld [vmem:[%s11301_s5 + $0x23c] sm:$0xf] }
  0xf3   : > { %v658_v27 = vld [vmem:[%s11301_s5 + $0x2b8] sm:$0xf]  ;;  %657 = vst [vmem:[#allocation4 + $0x270] sm:$0xf] %v656_v26  ;;  %v662_v29 = vld [vmem:[%s11301_s5 + $0x2bc] sm:$0xf] }
  0xf4   : > { %659 = vst [vmem:[#allocation4 + $0x274] sm:$0xf] %v658_v27  ;;  %v664_v30 = vld [vmem:[%s11301_s5 + $0x240] sm:$0xf]  ;;  %661 = vst [vmem:[#allocation4 + $0x278] sm:$0xf] %v660_v28 }
  0xf5   : > { %663 = vst [vmem:[#allocation4 + $0x27c] sm:$0xf] %v662_v29  ;;  %665 = vst [vmem:[#allocation4 + $0x280] sm:$0xf] %v664_v30  ;;  %v666_v31 = vld [vmem:[%s11301_s5 + $0x2c0] sm:$0xf] }
  0xf6   : > { %v668_v32 = vld [vmem:[%s11301_s5 + $0x244] sm:$0xf]  ;;  %667 = vst [vmem:[#allocation4 + $0x284] sm:$0xf] %v666_v31  ;;  %v672_v34 = vld [vmem:[%s11301_s5 + $0x248] sm:$0xf] }
  0xf7   : > { %v670_v33 = vld [vmem:[%s11301_s5 + $0x2c4] sm:$0xf]  ;;  %669 = vst [vmem:[#allocation4 + $0x288] sm:$0xf] %v668_v32  ;;  %v674_v35 = vld [vmem:[%s11301_s5 + $0x2c8] sm:$0xf] }
  0xf8   : > { %671 = vst [vmem:[#allocation4 + $0x28c] sm:$0xf] %v670_v33  ;;  %v676_v36 = vld [vmem:[%s11301_s5 + $0x24c] sm:$0xf]  ;;  %673 = vst [vmem:[#allocation4 + $0x290] sm:$0xf] %v672_v34 }
  0xf9   : > { %675 = vst [vmem:[#allocation4 + $0x294] sm:$0xf] %v674_v35  ;;  %677 = vst [vmem:[#allocation4 + $0x298] sm:$0xf] %v676_v36  ;;  %v678_v37 = vld [vmem:[%s11301_s5 + $0x2cc] sm:$0xf] }
  0xfa   : > { %v680_v38 = vld [vmem:[%s11301_s5 + $0x250] sm:$0xf]  ;;  %679 = vst [vmem:[#allocation4 + $0x29c] sm:$0xf] %v678_v37  ;;  %v684_v40 = vld [vmem:[%s11301_s5 + $0x254] sm:$0xf] }
  0xfb   : > { %v682_v39 = vld [vmem:[%s11301_s5 + $0x2d0] sm:$0xf]  ;;  %681 = vst [vmem:[#allocation4 + $0x2a0] sm:$0xf] %v680_v38  ;;  %v686_v41 = vld [vmem:[%s11301_s5 + $0x2d4] sm:$0xf] }
  0xfc   : > { %683 = vst [vmem:[#allocation4 + $0x2a4] sm:$0xf] %v682_v39  ;;  %v688_v42 = vld [vmem:[%s11301_s5 + $0x258] sm:$0xf]  ;;  %685 = vst [vmem:[#allocation4 + $0x2a8] sm:$0xf] %v684_v40 }
  0xfd   : > { %687 = vst [vmem:[#allocation4 + $0x2ac] sm:$0xf] %v686_v41  ;;  %689 = vst [vmem:[#allocation4 + $0x2b0] sm:$0xf] %v688_v42  ;;  %v690_v43 = vld [vmem:[%s11301_s5 + $0x2d8] sm:$0xf] }
  0xfe   : > { %v692_v44 = vld [vmem:[%s11301_s5 + $0x25c] sm:$0xf]  ;;  %691 = vst [vmem:[#allocation4 + $0x2b4] sm:$0xf] %v690_v43  ;;  %v696_v46 = vld [vmem:[%s11301_s5 + $0x260] sm:$0xf] }
  0xff   : > { %v694_v45 = vld [vmem:[%s11301_s5 + $0x2dc] sm:$0xf]  ;;  %693 = vst [vmem:[#allocation4 + $0x2b8] sm:$0xf] %v692_v44  ;;  %v698_v47 = vld [vmem:[%s11301_s5 + $0x2e0] sm:$0xf] }
 0x100   : > { %695 = vst [vmem:[#allocation4 + $0x2bc] sm:$0xf] %v694_v45  ;;  %v700_v48 = vld [vmem:[%s11301_s5 + $0x264] sm:$0xf]  ;;  %697 = vst [vmem:[#allocation4 + $0x2c0] sm:$0xf] %v696_v46 }
 0x101   : > { %699 = vst [vmem:[#allocation4 + $0x2c4] sm:$0xf] %v698_v47  ;;  %701 = vst [vmem:[#allocation4 + $0x2c8] sm:$0xf] %v700_v48  ;;  %v702_v49 = vld [vmem:[%s11301_s5 + $0x2e4] sm:$0xf] }
 0x102   : > { %v704_v50 = vld [vmem:[%s11301_s5 + $0x268] sm:$0xf]  ;;  %703 = vst [vmem:[#allocation4 + $0x2cc] sm:$0xf] %v702_v49  ;;  %v708_v52 = vld [vmem:[%s11301_s5 + $0x26c] sm:$0xf] }
 0x103   : > { %v706_v51 = vld [vmem:[%s11301_s5 + $0x2e8] sm:$0xf]  ;;  %705 = vst [vmem:[#allocation4 + $0x2d0] sm:$0xf] %v704_v50  ;;  %v710_v53 = vld [vmem:[%s11301_s5 + $0x2ec] sm:$0xf] }
 0x104   : > { %707 = vst [vmem:[#allocation4 + $0x2d4] sm:$0xf] %v706_v51  ;;  %v712_v54 = vld [vmem:[%s11301_s5 + $0x270] sm:$0xf]  ;;  %709 = vst [vmem:[#allocation4 + $0x2d8] sm:$0xf] %v708_v52 }
 0x105   : > { %711 = vst [vmem:[#allocation4 + $0x2dc] sm:$0xf] %v710_v53  ;;  %713 = vst [vmem:[#allocation4 + $0x2e0] sm:$0xf] %v712_v54  ;;  %v714_v55 = vld [vmem:[%s11301_s5 + $0x2f0] sm:$0xf] }
 0x106   : > { %v716_v56 = vld [vmem:[%s11301_s5 + $0x274] sm:$0xf]  ;;  %715 = vst [vmem:[#allocation4 + $0x2e4] sm:$0xf] %v714_v55  ;;  %v720_v58 = vld [vmem:[%s11301_s5 + $0x278] sm:$0xf] }
 0x107   : > { %v718_v57 = vld [vmem:[%s11301_s5 + $0x2f4] sm:$0xf]  ;;  %717 = vst [vmem:[#allocation4 + $0x2e8] sm:$0xf] %v716_v56  ;;  %v722_v59 = vld [vmem:[%s11301_s5 + $0x2f8] sm:$0xf] }
 0x108   : > { %719 = vst [vmem:[#allocation4 + $0x2ec] sm:$0xf] %v718_v57  ;;  %v724_v60 = vld [vmem:[%s11301_s5 + $0x27c] sm:$0xf]  ;;  %721 = vst [vmem:[#allocation4 + $0x2f0] sm:$0xf] %v720_v58 }
 0x109   : > { %723 = vst [vmem:[#allocation4 + $0x2f4] sm:$0xf] %v722_v59  ;;  %725 = vst [vmem:[#allocation4 + $0x2f8] sm:$0xf] %v724_v60  ;;  %v726_v61 = vld [vmem:[%s11301_s5 + $0x2fc] sm:$0xff]  }
 0x10a   : > { %v730_v62 = vld [vmem:[%s11301_s5 + $0x380] sm:$0xf]  ;;  %v732_v63 = vld [vmem:[%s11301_s5 + $0x304] sm:$0xf]  ;;  %727 = vst [vmem:[#allocation4 + $0x2fc] sm:$0xff] %v726_v61  }
 0x10b   : > { %731 = vst [vmem:[#allocation4 + $0x304] sm:$0xf] %v730_v62  ;;  %733 = vst [vmem:[#allocation4 + $0x308] sm:$0xf] %v732_v63  ;;  %v734_v0 = vld [vmem:[%s11301_s5 + $0x384] sm:$0xf] }
 0x10c   : > { %v736_v1 = vld [vmem:[%s11301_s5 + $0x308] sm:$0xf]  ;;  %735 = vst [vmem:[#allocation4 + $0x30c] sm:$0xf] %v734_v0  ;;  %v740_v3 = vld [vmem:[%s11301_s5 + $0x30c] sm:$0xf] }
 0x10d   : > { %v738_v2 = vld [vmem:[%s11301_s5 + $0x388] sm:$0xf]  ;;  %737 = vst [vmem:[#allocation4 + $0x310] sm:$0xf] %v736_v1  ;;  %v742_v4 = vld [vmem:[%s11301_s5 + $0x38c] sm:$0xf] }
 0x10e   : > { %739 = vst [vmem:[#allocation4 + $0x314] sm:$0xf] %v738_v2  ;;  %v744_v5 = vld [vmem:[%s11301_s5 + $0x310] sm:$0xf]  ;;  %741 = vst [vmem:[#allocation4 + $0x318] sm:$0xf] %v740_v3 }
 0x10f   : > { %743 = vst [vmem:[#allocation4 + $0x31c] sm:$0xf] %v742_v4  ;;  %745 = vst [vmem:[#allocation4 + $0x320] sm:$0xf] %v744_v5  ;;  %v746_v6 = vld [vmem:[%s11301_s5 + $0x390] sm:$0xf] }
 0x110   : > { %v748_v7 = vld [vmem:[%s11301_s5 + $0x314] sm:$0xf]  ;;  %747 = vst [vmem:[#allocation4 + $0x324] sm:$0xf] %v746_v6  ;;  %v752_v9 = vld [vmem:[%s11301_s5 + $0x318] sm:$0xf] }
 0x111   : > { %v750_v8 = vld [vmem:[%s11301_s5 + $0x394] sm:$0xf]  ;;  %749 = vst [vmem:[#allocation4 + $0x328] sm:$0xf] %v748_v7  ;;  %v754_v10 = vld [vmem:[%s11301_s5 + $0x398] sm:$0xf] }
 0x112   : > { %751 = vst [vmem:[#allocation4 + $0x32c] sm:$0xf] %v750_v8  ;;  %v756_v11 = vld [vmem:[%s11301_s5 + $0x31c] sm:$0xf]  ;;  %753 = vst [vmem:[#allocation4 + $0x330] sm:$0xf] %v752_v9 }
 0x113   : > { %755 = vst [vmem:[#allocation4 + $0x334] sm:$0xf] %v754_v10  ;;  %757 = vst [vmem:[#allocation4 + $0x338] sm:$0xf] %v756_v11  ;;  %v758_v12 = vld [vmem:[%s11301_s5 + $0x39c] sm:$0xf] }
 0x114   : > { %v760_v13 = vld [vmem:[%s11301_s5 + $0x320] sm:$0xf]  ;;  %759 = vst [vmem:[#allocation4 + $0x33c] sm:$0xf] %v758_v12  ;;  %v764_v15 = vld [vmem:[%s11301_s5 + $0x324] sm:$0xf] }
 0x115   : > { %v762_v14 = vld [vmem:[%s11301_s5 + $0x3a0] sm:$0xf]  ;;  %761 = vst [vmem:[#allocation4 + $0x340] sm:$0xf] %v760_v13  ;;  %v766_v16 = vld [vmem:[%s11301_s5 + $0x3a4] sm:$0xf] }
 0x116   : > { %763 = vst [vmem:[#allocation4 + $0x344] sm:$0xf] %v762_v14  ;;  %v768_v17 = vld [vmem:[%s11301_s5 + $0x328] sm:$0xf]  ;;  %765 = vst [vmem:[#allocation4 + $0x348] sm:$0xf] %v764_v15 }
 0x117   : > { %767 = vst [vmem:[#allocation4 + $0x34c] sm:$0xf] %v766_v16  ;;  %769 = vst [vmem:[#allocation4 + $0x350] sm:$0xf] %v768_v17  ;;  %v770_v18 = vld [vmem:[%s11301_s5 + $0x3a8] sm:$0xf] }
 0x118   : > { %v772_v19 = vld [vmem:[%s11301_s5 + $0x32c] sm:$0xf]  ;;  %771 = vst [vmem:[#allocation4 + $0x354] sm:$0xf] %v770_v18  ;;  %v776_v21 = vld [vmem:[%s11301_s5 + $0x330] sm:$0xf] }
 0x119   : > { %v774_v20 = vld [vmem:[%s11301_s5 + $0x3ac] sm:$0xf]  ;;  %773 = vst [vmem:[#allocation4 + $0x358] sm:$0xf] %v772_v19  ;;  %v778_v22 = vld [vmem:[%s11301_s5 + $0x3b0] sm:$0xf] }
 0x11a   : > { %775 = vst [vmem:[#allocation4 + $0x35c] sm:$0xf] %v774_v20  ;;  %v780_v23 = vld [vmem:[%s11301_s5 + $0x334] sm:$0xf]  ;;  %777 = vst [vmem:[#allocation4 + $0x360] sm:$0xf] %v776_v21 }
 0x11b   : > { %779 = vst [vmem:[#allocation4 + $0x364] sm:$0xf] %v778_v22  ;;  %781 = vst [vmem:[#allocation4 + $0x368] sm:$0xf] %v780_v23  ;;  %v782_v24 = vld [vmem:[%s11301_s5 + $0x3b4] sm:$0xf] }
 0x11c   : > { %v784_v25 = vld [vmem:[%s11301_s5 + $0x338] sm:$0xf]  ;;  %783 = vst [vmem:[#allocation4 + $0x36c] sm:$0xf] %v782_v24  ;;  %v788_v27 = vld [vmem:[%s11301_s5 + $0x33c] sm:$0xf] }
 0x11d   : > { %v786_v26 = vld [vmem:[%s11301_s5 + $0x3b8] sm:$0xf]  ;;  %785 = vst [vmem:[#allocation4 + $0x370] sm:$0xf] %v784_v25  ;;  %v790_v28 = vld [vmem:[%s11301_s5 + $0x3bc] sm:$0xf] }
 0x11e   : > { %787 = vst [vmem:[#allocation4 + $0x374] sm:$0xf] %v786_v26  ;;  %v792_v29 = vld [vmem:[%s11301_s5 + $0x340] sm:$0xf]  ;;  %789 = vst [vmem:[#allocation4 + $0x378] sm:$0xf] %v788_v27 }
 0x11f   : > { %791 = vst [vmem:[#allocation4 + $0x37c] sm:$0xf] %v790_v28  ;;  %793 = vst [vmem:[#allocation4 + $0x380] sm:$0xf] %v792_v29  ;;  %v794_v30 = vld [vmem:[%s11301_s5 + $0x3c0] sm:$0xf] }
 0x120   : > { %v796_v31 = vld [vmem:[%s11301_s5 + $0x344] sm:$0xf]  ;;  %795 = vst [vmem:[#allocation4 + $0x384] sm:$0xf] %v794_v30  ;;  %v800_v33 = vld [vmem:[%s11301_s5 + $0x348] sm:$0xf] }
 0x121   : > { %v798_v32 = vld [vmem:[%s11301_s5 + $0x3c4] sm:$0xf]  ;;  %797 = vst [vmem:[#allocation4 + $0x388] sm:$0xf] %v796_v31  ;;  %v802_v34 = vld [vmem:[%s11301_s5 + $0x3c8] sm:$0xf] }
 0x122   : > { %799 = vst [vmem:[#allocation4 + $0x38c] sm:$0xf] %v798_v32  ;;  %v804_v35 = vld [vmem:[%s11301_s5 + $0x34c] sm:$0xf]  ;;  %801 = vst [vmem:[#allocation4 + $0x390] sm:$0xf] %v800_v33 }
 0x123   : > { %803 = vst [vmem:[#allocation4 + $0x394] sm:$0xf] %v802_v34  ;;  %805 = vst [vmem:[#allocation4 + $0x398] sm:$0xf] %v804_v35  ;;  %v806_v36 = vld [vmem:[%s11301_s5 + $0x3cc] sm:$0xf] }
 0x124   : > { %v808_v37 = vld [vmem:[%s11301_s5 + $0x350] sm:$0xf]  ;;  %807 = vst [vmem:[#allocation4 + $0x39c] sm:$0xf] %v806_v36  ;;  %v812_v39 = vld [vmem:[%s11301_s5 + $0x354] sm:$0xf] }
 0x125   : > { %v810_v38 = vld [vmem:[%s11301_s5 + $0x3d0] sm:$0xf]  ;;  %809 = vst [vmem:[#allocation4 + $0x3a0] sm:$0xf] %v808_v37  ;;  %v814_v40 = vld [vmem:[%s11301_s5 + $0x3d4] sm:$0xf] }
 0x126   : > { %811 = vst [vmem:[#allocation4 + $0x3a4] sm:$0xf] %v810_v38  ;;  %v816_v41 = vld [vmem:[%s11301_s5 + $0x358] sm:$0xf]  ;;  %813 = vst [vmem:[#allocation4 + $0x3a8] sm:$0xf] %v812_v39 }
 0x127   : > { %815 = vst [vmem:[#allocation4 + $0x3ac] sm:$0xf] %v814_v40  ;;  %817 = vst [vmem:[#allocation4 + $0x3b0] sm:$0xf] %v816_v41  ;;  %v818_v42 = vld [vmem:[%s11301_s5 + $0x3d8] sm:$0xf] }
 0x128   : > { %v820_v43 = vld [vmem:[%s11301_s5 + $0x35c] sm:$0xf]  ;;  %819 = vst [vmem:[#allocation4 + $0x3b4] sm:$0xf] %v818_v42  ;;  %v824_v45 = vld [vmem:[%s11301_s5 + $0x360] sm:$0xf] }
 0x129   : > { %v822_v44 = vld [vmem:[%s11301_s5 + $0x3dc] sm:$0xf]  ;;  %821 = vst [vmem:[#allocation4 + $0x3b8] sm:$0xf] %v820_v43  ;;  %v826_v46 = vld [vmem:[%s11301_s5 + $0x3e0] sm:$0xf] }
 0x12a   : > { %823 = vst [vmem:[#allocation4 + $0x3bc] sm:$0xf] %v822_v44  ;;  %v828_v47 = vld [vmem:[%s11301_s5 + $0x364] sm:$0xf]  ;;  %825 = vst [vmem:[#allocation4 + $0x3c0] sm:$0xf] %v824_v45 }
 0x12b   : > { %827 = vst [vmem:[#allocation4 + $0x3c4] sm:$0xf] %v826_v46  ;;  %829 = vst [vmem:[#allocation4 + $0x3c8] sm:$0xf] %v828_v47  ;;  %v830_v48 = vld [vmem:[%s11301_s5 + $0x3e4] sm:$0xf] }
 0x12c   : > { %v832_v49 = vld [vmem:[%s11301_s5 + $0x368] sm:$0xf]  ;;  %831 = vst [vmem:[#allocation4 + $0x3cc] sm:$0xf] %v830_v48  ;;  %v836_v51 = vld [vmem:[%s11301_s5 + $0x36c] sm:$0xf] }
 0x12d   : > { %v834_v50 = vld [vmem:[%s11301_s5 + $0x3e8] sm:$0xf]  ;;  %833 = vst [vmem:[#allocation4 + $0x3d0] sm:$0xf] %v832_v49  ;;  %v838_v52 = vld [vmem:[%s11301_s5 + $0x3ec] sm:$0xf] }
 0x12e   : > { %835 = vst [vmem:[#allocation4 + $0x3d4] sm:$0xf] %v834_v50  ;;  %v840_v53 = vld [vmem:[%s11301_s5 + $0x370] sm:$0xf]  ;;  %837 = vst [vmem:[#allocation4 + $0x3d8] sm:$0xf] %v836_v51 }
 0x12f   : > { %839 = vst [vmem:[#allocation4 + $0x3dc] sm:$0xf] %v838_v52  ;;  %841 = vst [vmem:[#allocation4 + $0x3e0] sm:$0xf] %v840_v53  ;;  %v842_v54 = vld [vmem:[%s11301_s5 + $0x3f0] sm:$0xf] }
 0x130   : > { %v844_v55 = vld [vmem:[%s11301_s5 + $0x374] sm:$0xf]  ;;  %843 = vst [vmem:[#allocation4 + $0x3e4] sm:$0xf] %v842_v54  ;;  %v848_v57 = vld [vmem:[%s11301_s5 + $0x378] sm:$0xf] }
 0x131   : > { %v846_v56 = vld [vmem:[%s11301_s5 + $0x3f4] sm:$0xf]  ;;  %845 = vst [vmem:[#allocation4 + $0x3e8] sm:$0xf] %v844_v55  ;;  %v850_v58 = vld [vmem:[%s11301_s5 + $0x3f8] sm:$0xf] }
 0x132   : > { %847 = vst [vmem:[#allocation4 + $0x3ec] sm:$0xf] %v846_v56  ;;  %v852_v59 = vld [vmem:[%s11301_s5 + $0x37c] sm:$0xf]  ;;  %849 = vst [vmem:[#allocation4 + $0x3f0] sm:$0xf] %v848_v57 }
 0x133   : > { %851 = vst [vmem:[#allocation4 + $0x3f4] sm:$0xf] %v850_v58  ;;  %853 = vst [vmem:[#allocation4 + $0x3f8] sm:$0xf] %v852_v59  ;;  %v854_v60 = vld [vmem:[%s11301_s5 + $0x3fc] sm:$0xff]  }
 0x134   : > { %v858_v61 = vld [vmem:[%s11301_s5 + $0x480] sm:$0xf]  ;;  %v860_v62 = vld [vmem:[%s11301_s5 + $0x404] sm:$0xf]  ;;  %855 = vst [vmem:[#allocation4 + $0x3fc] sm:$0xff] %v854_v60  }
 0x135   : > { %859 = vst [vmem:[#allocation4 + $0x404] sm:$0xf] %v858_v61  ;;  %861 = vst [vmem:[#allocation4 + $0x408] sm:$0xf] %v860_v62  ;;  %v862_v63 = vld [vmem:[%s11301_s5 + $0x484] sm:$0xf] }
 0x136   : > { %v864_v0 = vld [vmem:[%s11301_s5 + $0x408] sm:$0xf]  ;;  %863 = vst [vmem:[#allocation4 + $0x40c] sm:$0xf] %v862_v63  ;;  %v868_v2 = vld [vmem:[%s11301_s5 + $0x40c] sm:$0xf] }
 0x137   : > { %v866_v1 = vld [vmem:[%s11301_s5 + $0x488] sm:$0xf]  ;;  %865 = vst [vmem:[#allocation4 + $0x410] sm:$0xf] %v864_v0  ;;  %v870_v3 = vld [vmem:[%s11301_s5 + $0x48c] sm:$0xf] }
 0x138   : > { %867 = vst [vmem:[#allocation4 + $0x414] sm:$0xf] %v866_v1  ;;  %v872_v4 = vld [vmem:[%s11301_s5 + $0x410] sm:$0xf]  ;;  %869 = vst [vmem:[#allocation4 + $0x418] sm:$0xf] %v868_v2 }
 0x139   : > { %871 = vst [vmem:[#allocation4 + $0x41c] sm:$0xf] %v870_v3  ;;  %873 = vst [vmem:[#allocation4 + $0x420] sm:$0xf] %v872_v4  ;;  %v874_v5 = vld [vmem:[%s11301_s5 + $0x490] sm:$0xf] }
 0x13a   : > { %v876_v6 = vld [vmem:[%s11301_s5 + $0x414] sm:$0xf]  ;;  %875 = vst [vmem:[#allocation4 + $0x424] sm:$0xf] %v874_v5  ;;  %v880_v8 = vld [vmem:[%s11301_s5 + $0x418] sm:$0xf] }
 0x13b   : > { %v878_v7 = vld [vmem:[%s11301_s5 + $0x494] sm:$0xf]  ;;  %877 = vst [vmem:[#allocation4 + $0x428] sm:$0xf] %v876_v6  ;;  %v882_v9 = vld [vmem:[%s11301_s5 + $0x498] sm:$0xf] }
 0x13c   : > { %879 = vst [vmem:[#allocation4 + $0x42c] sm:$0xf] %v878_v7  ;;  %v884_v10 = vld [vmem:[%s11301_s5 + $0x41c] sm:$0xf]  ;;  %881 = vst [vmem:[#allocation4 + $0x430] sm:$0xf] %v880_v8 }
 0x13d   : > { %883 = vst [vmem:[#allocation4 + $0x434] sm:$0xf] %v882_v9  ;;  %885 = vst [vmem:[#allocation4 + $0x438] sm:$0xf] %v884_v10  ;;  %v886_v11 = vld [vmem:[%s11301_s5 + $0x49c] sm:$0xf] }
 0x13e   : > { %v888_v12 = vld [vmem:[%s11301_s5 + $0x420] sm:$0xf]  ;;  %887 = vst [vmem:[#allocation4 + $0x43c] sm:$0xf] %v886_v11  ;;  %v892_v14 = vld [vmem:[%s11301_s5 + $0x424] sm:$0xf] }
 0x13f   : > { %v890_v13 = vld [vmem:[%s11301_s5 + $0x4a0] sm:$0xf]  ;;  %889 = vst [vmem:[#allocation4 + $0x440] sm:$0xf] %v888_v12  ;;  %v894_v15 = vld [vmem:[%s11301_s5 + $0x4a4] sm:$0xf] }
 0x140   : > { %891 = vst [vmem:[#allocation4 + $0x444] sm:$0xf] %v890_v13  ;;  %v896_v16 = vld [vmem:[%s11301_s5 + $0x428] sm:$0xf]  ;;  %893 = vst [vmem:[#allocation4 + $0x448] sm:$0xf] %v892_v14 }
 0x141   : > { %895 = vst [vmem:[#allocation4 + $0x44c] sm:$0xf] %v894_v15  ;;  %897 = vst [vmem:[#allocation4 + $0x450] sm:$0xf] %v896_v16  ;;  %v898_v17 = vld [vmem:[%s11301_s5 + $0x4a8] sm:$0xf] }
 0x142   : > { %v900_v18 = vld [vmem:[%s11301_s5 + $0x42c] sm:$0xf]  ;;  %899 = vst [vmem:[#allocation4 + $0x454] sm:$0xf] %v898_v17  ;;  %v904_v20 = vld [vmem:[%s11301_s5 + $0x430] sm:$0xf] }
 0x143   : > { %v902_v19 = vld [vmem:[%s11301_s5 + $0x4ac] sm:$0xf]  ;;  %901 = vst [vmem:[#allocation4 + $0x458] sm:$0xf] %v900_v18  ;;  %v906_v21 = vld [vmem:[%s11301_s5 + $0x4b0] sm:$0xf] }
 0x144   : > { %903 = vst [vmem:[#allocation4 + $0x45c] sm:$0xf] %v902_v19  ;;  %v908_v22 = vld [vmem:[%s11301_s5 + $0x434] sm:$0xf]  ;;  %905 = vst [vmem:[#allocation4 + $0x460] sm:$0xf] %v904_v20 }
 0x145   : > { %907 = vst [vmem:[#allocation4 + $0x464] sm:$0xf] %v906_v21  ;;  %909 = vst [vmem:[#allocation4 + $0x468] sm:$0xf] %v908_v22  ;;  %v910_v23 = vld [vmem:[%s11301_s5 + $0x4b4] sm:$0xf] }
 0x146   : > { %v912_v24 = vld [vmem:[%s11301_s5 + $0x438] sm:$0xf]  ;;  %911 = vst [vmem:[#allocation4 + $0x46c] sm:$0xf] %v910_v23  ;;  %v916_v26 = vld [vmem:[%s11301_s5 + $0x43c] sm:$0xf] }
 0x147   : > { %v914_v25 = vld [vmem:[%s11301_s5 + $0x4b8] sm:$0xf]  ;;  %913 = vst [vmem:[#allocation4 + $0x470] sm:$0xf] %v912_v24  ;;  %v918_v27 = vld [vmem:[%s11301_s5 + $0x4bc] sm:$0xf] }
 0x148   : > { %915 = vst [vmem:[#allocation4 + $0x474] sm:$0xf] %v914_v25  ;;  %v920_v28 = vld [vmem:[%s11301_s5 + $0x440] sm:$0xf]  ;;  %917 = vst [vmem:[#allocation4 + $0x478] sm:$0xf] %v916_v26 }
 0x149   : > { %919 = vst [vmem:[#allocation4 + $0x47c] sm:$0xf] %v918_v27  ;;  %921 = vst [vmem:[#allocation4 + $0x480] sm:$0xf] %v920_v28  ;;  %v922_v29 = vld [vmem:[%s11301_s5 + $0x4c0] sm:$0xf] }
 0x14a   : > { %v924_v30 = vld [vmem:[%s11301_s5 + $0x444] sm:$0xf]  ;;  %923 = vst [vmem:[#allocation4 + $0x484] sm:$0xf] %v922_v29  ;;  %v928_v32 = vld [vmem:[%s11301_s5 + $0x448] sm:$0xf] }
 0x14b   : > { %v926_v31 = vld [vmem:[%s11301_s5 + $0x4c4] sm:$0xf]  ;;  %925 = vst [vmem:[#allocation4 + $0x488] sm:$0xf] %v924_v30  ;;  %v930_v33 = vld [vmem:[%s11301_s5 + $0x4c8] sm:$0xf] }
 0x14c   : > { %927 = vst [vmem:[#allocation4 + $0x48c] sm:$0xf] %v926_v31  ;;  %v932_v34 = vld [vmem:[%s11301_s5 + $0x44c] sm:$0xf]  ;;  %929 = vst [vmem:[#allocation4 + $0x490] sm:$0xf] %v928_v32 }
 0x14d   : > { %931 = vst [vmem:[#allocation4 + $0x494] sm:$0xf] %v930_v33  ;;  %933 = vst [vmem:[#allocation4 + $0x498] sm:$0xf] %v932_v34  ;;  %v934_v35 = vld [vmem:[%s11301_s5 + $0x4cc] sm:$0xf] }
 0x14e   : > { %v936_v36 = vld [vmem:[%s11301_s5 + $0x450] sm:$0xf]  ;;  %935 = vst [vmem:[#allocation4 + $0x49c] sm:$0xf] %v934_v35  ;;  %v940_v38 = vld [vmem:[%s11301_s5 + $0x454] sm:$0xf] }
 0x14f   : > { %v938_v37 = vld [vmem:[%s11301_s5 + $0x4d0] sm:$0xf]  ;;  %937 = vst [vmem:[#allocation4 + $0x4a0] sm:$0xf] %v936_v36  ;;  %v942_v39 = vld [vmem:[%s11301_s5 + $0x4d4] sm:$0xf] }
 0x150   : > { %939 = vst [vmem:[#allocation4 + $0x4a4] sm:$0xf] %v938_v37  ;;  %v944_v40 = vld [vmem:[%s11301_s5 + $0x458] sm:$0xf]  ;;  %941 = vst [vmem:[#allocation4 + $0x4a8] sm:$0xf] %v940_v38 }
 0x151   : > { %943 = vst [vmem:[#allocation4 + $0x4ac] sm:$0xf] %v942_v39  ;;  %945 = vst [vmem:[#allocation4 + $0x4b0] sm:$0xf] %v944_v40  ;;  %v946_v41 = vld [vmem:[%s11301_s5 + $0x4d8] sm:$0xf] }
 0x152   : > { %v948_v42 = vld [vmem:[%s11301_s5 + $0x45c] sm:$0xf]  ;;  %947 = vst [vmem:[#allocation4 + $0x4b4] sm:$0xf] %v946_v41  ;;  %v952_v44 = vld [vmem:[%s11301_s5 + $0x460] sm:$0xf] }
 0x153   : > { %v950_v43 = vld [vmem:[%s11301_s5 + $0x4dc] sm:$0xf]  ;;  %949 = vst [vmem:[#allocation4 + $0x4b8] sm:$0xf] %v948_v42  ;;  %v954_v45 = vld [vmem:[%s11301_s5 + $0x4e0] sm:$0xf] }
 0x154   : > { %951 = vst [vmem:[#allocation4 + $0x4bc] sm:$0xf] %v950_v43  ;;  %v956_v46 = vld [vmem:[%s11301_s5 + $0x464] sm:$0xf]  ;;  %953 = vst [vmem:[#allocation4 + $0x4c0] sm:$0xf] %v952_v44 }
 0x155   : > { %955 = vst [vmem:[#allocation4 + $0x4c4] sm:$0xf] %v954_v45  ;;  %957 = vst [vmem:[#allocation4 + $0x4c8] sm:$0xf] %v956_v46  ;;  %v958_v47 = vld [vmem:[%s11301_s5 + $0x4e4] sm:$0xf] }
 0x156   : > { %v960_v48 = vld [vmem:[%s11301_s5 + $0x468] sm:$0xf]  ;;  %959 = vst [vmem:[#allocation4 + $0x4cc] sm:$0xf] %v958_v47  ;;  %v964_v50 = vld [vmem:[%s11301_s5 + $0x46c] sm:$0xf] }
 0x157   : > { %v962_v49 = vld [vmem:[%s11301_s5 + $0x4e8] sm:$0xf]  ;;  %961 = vst [vmem:[#allocation4 + $0x4d0] sm:$0xf] %v960_v48  ;;  %v966_v51 = vld [vmem:[%s11301_s5 + $0x4ec] sm:$0xf] }
 0x158   : > { %963 = vst [vmem:[#allocation4 + $0x4d4] sm:$0xf] %v962_v49  ;;  %v968_v52 = vld [vmem:[%s11301_s5 + $0x470] sm:$0xf]  ;;  %965 = vst [vmem:[#allocation4 + $0x4d8] sm:$0xf] %v964_v50 }
 0x159   : > { %967 = vst [vmem:[#allocation4 + $0x4dc] sm:$0xf] %v966_v51  ;;  %969 = vst [vmem:[#allocation4 + $0x4e0] sm:$0xf] %v968_v52  ;;  %v970_v53 = vld [vmem:[%s11301_s5 + $0x4f0] sm:$0xf] }
 0x15a   : > { %v972_v54 = vld [vmem:[%s11301_s5 + $0x474] sm:$0xf]  ;;  %971 = vst [vmem:[#allocation4 + $0x4e4] sm:$0xf] %v970_v53  ;;  %v976_v56 = vld [vmem:[%s11301_s5 + $0x478] sm:$0xf] }
 0x15b   : > { %v974_v55 = vld [vmem:[%s11301_s5 + $0x4f4] sm:$0xf]  ;;  %973 = vst [vmem:[#allocation4 + $0x4e8] sm:$0xf] %v972_v54  ;;  %v978_v57 = vld [vmem:[%s11301_s5 + $0x4f8] sm:$0xf] }
 0x15c   : > { %975 = vst [vmem:[#allocation4 + $0x4ec] sm:$0xf] %v974_v55  ;;  %v980_v58 = vld [vmem:[%s11301_s5 + $0x47c] sm:$0xf]  ;;  %977 = vst [vmem:[#allocation4 + $0x4f0] sm:$0xf] %v976_v56 }
 0x15d   : > { %979 = vst [vmem:[#allocation4 + $0x4f4] sm:$0xf] %v978_v57  ;;  %981 = vst [vmem:[#allocation4 + $0x4f8] sm:$0xf] %v980_v58  ;;  %v982_v59 = vld [vmem:[%s11301_s5 + $0x4fc] sm:$0xff]  }
 0x15e   : > { %v986_v60 = vld [vmem:[%s11301_s5 + $0x580] sm:$0xf]  ;;  %v988_v61 = vld [vmem:[%s11301_s5 + $0x504] sm:$0xf]  ;;  %983 = vst [vmem:[#allocation4 + $0x4fc] sm:$0xff] %v982_v59  }
 0x15f   : > { %987 = vst [vmem:[#allocation4 + $0x504] sm:$0xf] %v986_v60  ;;  %989 = vst [vmem:[#allocation4 + $0x508] sm:$0xf] %v988_v61  ;;  %v990_v62 = vld [vmem:[%s11301_s5 + $0x584] sm:$0xf] }
 0x160   : > { %v992_v63 = vld [vmem:[%s11301_s5 + $0x508] sm:$0xf]  ;;  %991 = vst [vmem:[#allocation4 + $0x50c] sm:$0xf] %v990_v62  ;;  %v996_v1 = vld [vmem:[%s11301_s5 + $0x50c] sm:$0xf] }
 0x161   : > { %v994_v0 = vld [vmem:[%s11301_s5 + $0x588] sm:$0xf]  ;;  %993 = vst [vmem:[#allocation4 + $0x510] sm:$0xf] %v992_v63  ;;  %v998_v2 = vld [vmem:[%s11301_s5 + $0x58c] sm:$0xf] }
 0x162   : > { %995 = vst [vmem:[#allocation4 + $0x514] sm:$0xf] %v994_v0  ;;  %v1000_v3 = vld [vmem:[%s11301_s5 + $0x510] sm:$0xf]  ;;  %997 = vst [vmem:[#allocation4 + $0x518] sm:$0xf] %v996_v1 }
 0x163   : > { %999 = vst [vmem:[#allocation4 + $0x51c] sm:$0xf] %v998_v2  ;;  %1001 = vst [vmem:[#allocation4 + $0x520] sm:$0xf] %v1000_v3  ;;  %v1002_v4 = vld [vmem:[%s11301_s5 + $0x590] sm:$0xf] }
 0x164   : > { %v1004_v5 = vld [vmem:[%s11301_s5 + $0x514] sm:$0xf]  ;;  %1003 = vst [vmem:[#allocation4 + $0x524] sm:$0xf] %v1002_v4  ;;  %v1008_v7 = vld [vmem:[%s11301_s5 + $0x518] sm:$0xf] }
 0x165   : > { %v1006_v6 = vld [vmem:[%s11301_s5 + $0x594] sm:$0xf]  ;;  %1005 = vst [vmem:[#allocation4 + $0x528] sm:$0xf] %v1004_v5  ;;  %v1010_v8 = vld [vmem:[%s11301_s5 + $0x598] sm:$0xf] }
 0x166   : > { %1007 = vst [vmem:[#allocation4 + $0x52c] sm:$0xf] %v1006_v6  ;;  %v1012_v9 = vld [vmem:[%s11301_s5 + $0x51c] sm:$0xf]  ;;  %1009 = vst [vmem:[#allocation4 + $0x530] sm:$0xf] %v1008_v7 }
 0x167   : > { %1011 = vst [vmem:[#allocation4 + $0x534] sm:$0xf] %v1010_v8  ;;  %1013 = vst [vmem:[#allocation4 + $0x538] sm:$0xf] %v1012_v9  ;;  %v1014_v10 = vld [vmem:[%s11301_s5 + $0x59c] sm:$0xf] }
 0x168   : > { %v1016_v11 = vld [vmem:[%s11301_s5 + $0x520] sm:$0xf]  ;;  %1015 = vst [vmem:[#allocation4 + $0x53c] sm:$0xf] %v1014_v10  ;;  %v1020_v13 = vld [vmem:[%s11301_s5 + $0x524] sm:$0xf] }
 0x169   : > { %v1018_v12 = vld [vmem:[%s11301_s5 + $0x5a0] sm:$0xf]  ;;  %1017 = vst [vmem:[#allocation4 + $0x540] sm:$0xf] %v1016_v11  ;;  %v1022_v14 = vld [vmem:[%s11301_s5 + $0x5a4] sm:$0xf] }
 0x16a   : > { %1019 = vst [vmem:[#allocation4 + $0x544] sm:$0xf] %v1018_v12  ;;  %v1024_v15 = vld [vmem:[%s11301_s5 + $0x528] sm:$0xf]  ;;  %1021 = vst [vmem:[#allocation4 + $0x548] sm:$0xf] %v1020_v13 }
 0x16b   : > { %1023 = vst [vmem:[#allocation4 + $0x54c] sm:$0xf] %v1022_v14  ;;  %1025 = vst [vmem:[#allocation4 + $0x550] sm:$0xf] %v1024_v15  ;;  %v1026_v16 = vld [vmem:[%s11301_s5 + $0x5a8] sm:$0xf] }
 0x16c   : > { %v1028_v17 = vld [vmem:[%s11301_s5 + $0x52c] sm:$0xf]  ;;  %1027 = vst [vmem:[#allocation4 + $0x554] sm:$0xf] %v1026_v16  ;;  %v1032_v19 = vld [vmem:[%s11301_s5 + $0x530] sm:$0xf] }
 0x16d   : > { %v1030_v18 = vld [vmem:[%s11301_s5 + $0x5ac] sm:$0xf]  ;;  %1029 = vst [vmem:[#allocation4 + $0x558] sm:$0xf] %v1028_v17  ;;  %v1034_v20 = vld [vmem:[%s11301_s5 + $0x5b0] sm:$0xf] }
 0x16e   : > { %1031 = vst [vmem:[#allocation4 + $0x55c] sm:$0xf] %v1030_v18  ;;  %v1036_v21 = vld [vmem:[%s11301_s5 + $0x534] sm:$0xf]  ;;  %1033 = vst [vmem:[#allocation4 + $0x560] sm:$0xf] %v1032_v19 }
 0x16f   : > { %1035 = vst [vmem:[#allocation4 + $0x564] sm:$0xf] %v1034_v20  ;;  %1037 = vst [vmem:[#allocation4 + $0x568] sm:$0xf] %v1036_v21  ;;  %v1038_v22 = vld [vmem:[%s11301_s5 + $0x5b4] sm:$0xf] }
 0x170   : > { %v1040_v23 = vld [vmem:[%s11301_s5 + $0x538] sm:$0xf]  ;;  %1039 = vst [vmem:[#allocation4 + $0x56c] sm:$0xf] %v1038_v22  ;;  %v1044_v25 = vld [vmem:[%s11301_s5 + $0x53c] sm:$0xf] }
 0x171   : > { %v1042_v24 = vld [vmem:[%s11301_s5 + $0x5b8] sm:$0xf]  ;;  %1041 = vst [vmem:[#allocation4 + $0x570] sm:$0xf] %v1040_v23  ;;  %v1046_v26 = vld [vmem:[%s11301_s5 + $0x5bc] sm:$0xf] }
 0x172   : > { %1043 = vst [vmem:[#allocation4 + $0x574] sm:$0xf] %v1042_v24  ;;  %v1048_v27 = vld [vmem:[%s11301_s5 + $0x540] sm:$0xf]  ;;  %1045 = vst [vmem:[#allocation4 + $0x578] sm:$0xf] %v1044_v25 }
 0x173   : > { %1047 = vst [vmem:[#allocation4 + $0x57c] sm:$0xf] %v1046_v26  ;;  %1049 = vst [vmem:[#allocation4 + $0x580] sm:$0xf] %v1048_v27  ;;  %v1050_v28 = vld [vmem:[%s11301_s5 + $0x5c0] sm:$0xf] }
 0x174   : > { %v1052_v29 = vld [vmem:[%s11301_s5 + $0x544] sm:$0xf]  ;;  %1051 = vst [vmem:[#allocation4 + $0x584] sm:$0xf] %v1050_v28  ;;  %v1056_v31 = vld [vmem:[%s11301_s5 + $0x548] sm:$0xf] }
 0x175   : > { %v1054_v30 = vld [vmem:[%s11301_s5 + $0x5c4] sm:$0xf]  ;;  %1053 = vst [vmem:[#allocation4 + $0x588] sm:$0xf] %v1052_v29  ;;  %v1058_v32 = vld [vmem:[%s11301_s5 + $0x5c8] sm:$0xf] }
 0x176   : > { %1055 = vst [vmem:[#allocation4 + $0x58c] sm:$0xf] %v1054_v30  ;;  %v1060_v33 = vld [vmem:[%s11301_s5 + $0x54c] sm:$0xf]  ;;  %1057 = vst [vmem:[#allocation4 + $0x590] sm:$0xf] %v1056_v31 }
 0x177   : > { %1059 = vst [vmem:[#allocation4 + $0x594] sm:$0xf] %v1058_v32  ;;  %1061 = vst [vmem:[#allocation4 + $0x598] sm:$0xf] %v1060_v33  ;;  %v1062_v34 = vld [vmem:[%s11301_s5 + $0x5cc] sm:$0xf] }
 0x178   : > { %v1064_v35 = vld [vmem:[%s11301_s5 + $0x550] sm:$0xf]  ;;  %1063 = vst [vmem:[#allocation4 + $0x59c] sm:$0xf] %v1062_v34  ;;  %v1068_v37 = vld [vmem:[%s11301_s5 + $0x554] sm:$0xf] }
 0x179   : > { %v1066_v36 = vld [vmem:[%s11301_s5 + $0x5d0] sm:$0xf]  ;;  %1065 = vst [vmem:[#allocation4 + $0x5a0] sm:$0xf] %v1064_v35  ;;  %v1070_v38 = vld [vmem:[%s11301_s5 + $0x5d4] sm:$0xf] }
 0x17a   : > { %1067 = vst [vmem:[#allocation4 + $0x5a4] sm:$0xf] %v1066_v36  ;;  %v1072_v39 = vld [vmem:[%s11301_s5 + $0x558] sm:$0xf]  ;;  %1069 = vst [vmem:[#allocation4 + $0x5a8] sm:$0xf] %v1068_v37 }
 0x17b   : > { %1071 = vst [vmem:[#allocation4 + $0x5ac] sm:$0xf] %v1070_v38  ;;  %1073 = vst [vmem:[#allocation4 + $0x5b0] sm:$0xf] %v1072_v39  ;;  %v1074_v40 = vld [vmem:[%s11301_s5 + $0x5d8] sm:$0xf] }
 0x17c   : > { %v1076_v41 = vld [vmem:[%s11301_s5 + $0x55c] sm:$0xf]  ;;  %1075 = vst [vmem:[#allocation4 + $0x5b4] sm:$0xf] %v1074_v40  ;;  %v1080_v43 = vld [vmem:[%s11301_s5 + $0x560] sm:$0xf] }
 0x17d   : > { %v1078_v42 = vld [vmem:[%s11301_s5 + $0x5dc] sm:$0xf]  ;;  %1077 = vst [vmem:[#allocation4 + $0x5b8] sm:$0xf] %v1076_v41  ;;  %v1082_v44 = vld [vmem:[%s11301_s5 + $0x5e0] sm:$0xf] }
 0x17e   : > { %1079 = vst [vmem:[#allocation4 + $0x5bc] sm:$0xf] %v1078_v42  ;;  %v1084_v45 = vld [vmem:[%s11301_s5 + $0x564] sm:$0xf]  ;;  %1081 = vst [vmem:[#allocation4 + $0x5c0] sm:$0xf] %v1080_v43 }
 0x17f   : > { %1083 = vst [vmem:[#allocation4 + $0x5c4] sm:$0xf] %v1082_v44  ;;  %1085 = vst [vmem:[#allocation4 + $0x5c8] sm:$0xf] %v1084_v45  ;;  %v1086_v46 = vld [vmem:[%s11301_s5 + $0x5e4] sm:$0xf] }
 0x180   : > { %v1088_v47 = vld [vmem:[%s11301_s5 + $0x568] sm:$0xf]  ;;  %1087 = vst [vmem:[#allocation4 + $0x5cc] sm:$0xf] %v1086_v46  ;;  %v1092_v49 = vld [vmem:[%s11301_s5 + $0x56c] sm:$0xf] }
 0x181   : > { %v1090_v48 = vld [vmem:[%s11301_s5 + $0x5e8] sm:$0xf]  ;;  %1089 = vst [vmem:[#allocation4 + $0x5d0] sm:$0xf] %v1088_v47  ;;  %v1094_v50 = vld [vmem:[%s11301_s5 + $0x5ec] sm:$0xf] }
 0x182   : > { %1091 = vst [vmem:[#allocation4 + $0x5d4] sm:$0xf] %v1090_v48  ;;  %v1096_v51 = vld [vmem:[%s11301_s5 + $0x570] sm:$0xf]  ;;  %1093 = vst [vmem:[#allocation4 + $0x5d8] sm:$0xf] %v1092_v49 }
 0x183   : > { %1095 = vst [vmem:[#allocation4 + $0x5dc] sm:$0xf] %v1094_v50  ;;  %1097 = vst [vmem:[#allocation4 + $0x5e0] sm:$0xf] %v1096_v51  ;;  %v1098_v52 = vld [vmem:[%s11301_s5 + $0x5f0] sm:$0xf] }
 0x184   : > { %v1100_v53 = vld [vmem:[%s11301_s5 + $0x574] sm:$0xf]  ;;  %1099 = vst [vmem:[#allocation4 + $0x5e4] sm:$0xf] %v1098_v52  ;;  %v1104_v55 = vld [vmem:[%s11301_s5 + $0x578] sm:$0xf] }
 0x185   : > { %v1102_v54 = vld [vmem:[%s11301_s5 + $0x5f4] sm:$0xf]  ;;  %1101 = vst [vmem:[#allocation4 + $0x5e8] sm:$0xf] %v1100_v53  ;;  %v1106_v56 = vld [vmem:[%s11301_s5 + $0x5f8] sm:$0xf] }
 0x186   : > { %1103 = vst [vmem:[#allocation4 + $0x5ec] sm:$0xf] %v1102_v54  ;;  %v1108_v57 = vld [vmem:[%s11301_s5 + $0x57c] sm:$0xf]  ;;  %1105 = vst [vmem:[#allocation4 + $0x5f0] sm:$0xf] %v1104_v55 }
 0x187   : > { %1107 = vst [vmem:[#allocation4 + $0x5f4] sm:$0xf] %v1106_v56  ;;  %1109 = vst [vmem:[#allocation4 + $0x5f8] sm:$0xf] %v1108_v57  ;;  %v1110_v58 = vld [vmem:[%s11301_s5 + $0x5fc] sm:$0xff]  }
 0x188   : > { %v1114_v59 = vld [vmem:[%s11301_s5 + $0x680] sm:$0xf]  ;;  %v1116_v60 = vld [vmem:[%s11301_s5 + $0x604] sm:$0xf]  ;;  %1111 = vst [vmem:[#allocation4 + $0x5fc] sm:$0xff] %v1110_v58  }
 0x189   : > { %1115 = vst [vmem:[#allocation4 + $0x604] sm:$0xf] %v1114_v59  ;;  %1117 = vst [vmem:[#allocation4 + $0x608] sm:$0xf] %v1116_v60  ;;  %v1118_v61 = vld [vmem:[%s11301_s5 + $0x684] sm:$0xf] }
 0x18a   : > { %v1120_v62 = vld [vmem:[%s11301_s5 + $0x608] sm:$0xf]  ;;  %1119 = vst [vmem:[#allocation4 + $0x60c] sm:$0xf] %v1118_v61  ;;  %v1124_v0 = vld [vmem:[%s11301_s5 + $0x60c] sm:$0xf] }
 0x18b   : > { %v1122_v63 = vld [vmem:[%s11301_s5 + $0x688] sm:$0xf]  ;;  %1121 = vst [vmem:[#allocation4 + $0x610] sm:$0xf] %v1120_v62  ;;  %v1126_v1 = vld [vmem:[%s11301_s5 + $0x68c] sm:$0xf] }
 0x18c   : > { %1123 = vst [vmem:[#allocation4 + $0x614] sm:$0xf] %v1122_v63  ;;  %v1128_v2 = vld [vmem:[%s11301_s5 + $0x610] sm:$0xf]  ;;  %1125 = vst [vmem:[#allocation4 + $0x618] sm:$0xf] %v1124_v0 }
 0x18d   : > { %1127 = vst [vmem:[#allocation4 + $0x61c] sm:$0xf] %v1126_v1  ;;  %1129 = vst [vmem:[#allocation4 + $0x620] sm:$0xf] %v1128_v2  ;;  %v1130_v3 = vld [vmem:[%s11301_s5 + $0x690] sm:$0xf] }
 0x18e   : > { %v1132_v4 = vld [vmem:[%s11301_s5 + $0x614] sm:$0xf]  ;;  %1131 = vst [vmem:[#allocation4 + $0x624] sm:$0xf] %v1130_v3  ;;  %v1136_v6 = vld [vmem:[%s11301_s5 + $0x618] sm:$0xf] }
 0x18f   : > { %v1134_v5 = vld [vmem:[%s11301_s5 + $0x694] sm:$0xf]  ;;  %1133 = vst [vmem:[#allocation4 + $0x628] sm:$0xf] %v1132_v4  ;;  %v1138_v7 = vld [vmem:[%s11301_s5 + $0x698] sm:$0xf] }
 0x190   : > { %1135 = vst [vmem:[#allocation4 + $0x62c] sm:$0xf] %v1134_v5  ;;  %v1140_v8 = vld [vmem:[%s11301_s5 + $0x61c] sm:$0xf]  ;;  %1137 = vst [vmem:[#allocation4 + $0x630] sm:$0xf] %v1136_v6 }
 0x191   : > { %1139 = vst [vmem:[#allocation4 + $0x634] sm:$0xf] %v1138_v7  ;;  %1141 = vst [vmem:[#allocation4 + $0x638] sm:$0xf] %v1140_v8  ;;  %v1142_v9 = vld [vmem:[%s11301_s5 + $0x69c] sm:$0xf] }
 0x192   : > { %v1144_v10 = vld [vmem:[%s11301_s5 + $0x620] sm:$0xf]  ;;  %1143 = vst [vmem:[#allocation4 + $0x63c] sm:$0xf] %v1142_v9  ;;  %v1148_v12 = vld [vmem:[%s11301_s5 + $0x624] sm:$0xf] }
 0x193   : > { %v1146_v11 = vld [vmem:[%s11301_s5 + $0x6a0] sm:$0xf]  ;;  %1145 = vst [vmem:[#allocation4 + $0x640] sm:$0xf] %v1144_v10  ;;  %v1150_v13 = vld [vmem:[%s11301_s5 + $0x6a4] sm:$0xf] }
 0x194   : > { %1147 = vst [vmem:[#allocation4 + $0x644] sm:$0xf] %v1146_v11  ;;  %v1152_v14 = vld [vmem:[%s11301_s5 + $0x628] sm:$0xf]  ;;  %1149 = vst [vmem:[#allocation4 + $0x648] sm:$0xf] %v1148_v12 }
 0x195   : > { %1151 = vst [vmem:[#allocation4 + $0x64c] sm:$0xf] %v1150_v13  ;;  %1153 = vst [vmem:[#allocation4 + $0x650] sm:$0xf] %v1152_v14  ;;  %v1154_v15 = vld [vmem:[%s11301_s5 + $0x6a8] sm:$0xf] }
 0x196   : > { %v1156_v16 = vld [vmem:[%s11301_s5 + $0x62c] sm:$0xf]  ;;  %1155 = vst [vmem:[#allocation4 + $0x654] sm:$0xf] %v1154_v15  ;;  %v1160_v18 = vld [vmem:[%s11301_s5 + $0x630] sm:$0xf] }
 0x197   : > { %v1158_v17 = vld [vmem:[%s11301_s5 + $0x6ac] sm:$0xf]  ;;  %1157 = vst [vmem:[#allocation4 + $0x658] sm:$0xf] %v1156_v16  ;;  %v1162_v19 = vld [vmem:[%s11301_s5 + $0x6b0] sm:$0xf] }
 0x198   : > { %1159 = vst [vmem:[#allocation4 + $0x65c] sm:$0xf] %v1158_v17  ;;  %v1164_v20 = vld [vmem:[%s11301_s5 + $0x634] sm:$0xf]  ;;  %1161 = vst [vmem:[#allocation4 + $0x660] sm:$0xf] %v1160_v18 }
 0x199   : > { %1163 = vst [vmem:[#allocation4 + $0x664] sm:$0xf] %v1162_v19  ;;  %1165 = vst [vmem:[#allocation4 + $0x668] sm:$0xf] %v1164_v20  ;;  %v1166_v21 = vld [vmem:[%s11301_s5 + $0x6b4] sm:$0xf] }
 0x19a   : > { %v1168_v22 = vld [vmem:[%s11301_s5 + $0x638] sm:$0xf]  ;;  %1167 = vst [vmem:[#allocation4 + $0x66c] sm:$0xf] %v1166_v21  ;;  %v1172_v24 = vld [vmem:[%s11301_s5 + $0x63c] sm:$0xf] }
 0x19b   : > { %v1170_v23 = vld [vmem:[%s11301_s5 + $0x6b8] sm:$0xf]  ;;  %1169 = vst [vmem:[#allocation4 + $0x670] sm:$0xf] %v1168_v22  ;;  %v1174_v25 = vld [vmem:[%s11301_s5 + $0x6bc] sm:$0xf] }
 0x19c   : > { %1171 = vst [vmem:[#allocation4 + $0x674] sm:$0xf] %v1170_v23  ;;  %v1176_v26 = vld [vmem:[%s11301_s5 + $0x640] sm:$0xf]  ;;  %1173 = vst [vmem:[#allocation4 + $0x678] sm:$0xf] %v1172_v24 }
 0x19d   : > { %1175 = vst [vmem:[#allocation4 + $0x67c] sm:$0xf] %v1174_v25  ;;  %1177 = vst [vmem:[#allocation4 + $0x680] sm:$0xf] %v1176_v26  ;;  %v1178_v27 = vld [vmem:[%s11301_s5 + $0x6c0] sm:$0xf] }
 0x19e   : > { %v1180_v28 = vld [vmem:[%s11301_s5 + $0x644] sm:$0xf]  ;;  %1179 = vst [vmem:[#allocation4 + $0x684] sm:$0xf] %v1178_v27  ;;  %v1184_v30 = vld [vmem:[%s11301_s5 + $0x648] sm:$0xf] }
 0x19f   : > { %v1182_v29 = vld [vmem:[%s11301_s5 + $0x6c4] sm:$0xf]  ;;  %1181 = vst [vmem:[#allocation4 + $0x688] sm:$0xf] %v1180_v28  ;;  %v1186_v31 = vld [vmem:[%s11301_s5 + $0x6c8] sm:$0xf] }
 0x1a0   : > { %1183 = vst [vmem:[#allocation4 + $0x68c] sm:$0xf] %v1182_v29  ;;  %v1188_v32 = vld [vmem:[%s11301_s5 + $0x64c] sm:$0xf]  ;;  %1185 = vst [vmem:[#allocation4 + $0x690] sm:$0xf] %v1184_v30 }
 0x1a1   : > { %1187 = vst [vmem:[#allocation4 + $0x694] sm:$0xf] %v1186_v31  ;;  %1189 = vst [vmem:[#allocation4 + $0x698] sm:$0xf] %v1188_v32  ;;  %v1190_v33 = vld [vmem:[%s11301_s5 + $0x6cc] sm:$0xf] }
 0x1a2   : > { %v1192_v34 = vld [vmem:[%s11301_s5 + $0x650] sm:$0xf]  ;;  %1191 = vst [vmem:[#allocation4 + $0x69c] sm:$0xf] %v1190_v33  ;;  %v1196_v36 = vld [vmem:[%s11301_s5 + $0x654] sm:$0xf] }
 0x1a3   : > { %v1194_v35 = vld [vmem:[%s11301_s5 + $0x6d0] sm:$0xf]  ;;  %1193 = vst [vmem:[#allocation4 + $0x6a0] sm:$0xf] %v1192_v34  ;;  %v1198_v37 = vld [vmem:[%s11301_s5 + $0x6d4] sm:$0xf] }
 0x1a4   : > { %1195 = vst [vmem:[#allocation4 + $0x6a4] sm:$0xf] %v1194_v35  ;;  %v1200_v38 = vld [vmem:[%s11301_s5 + $0x658] sm:$0xf]  ;;  %1197 = vst [vmem:[#allocation4 + $0x6a8] sm:$0xf] %v1196_v36 }
 0x1a5   : > { %1199 = vst [vmem:[#allocation4 + $0x6ac] sm:$0xf] %v1198_v37  ;;  %1201 = vst [vmem:[#allocation4 + $0x6b0] sm:$0xf] %v1200_v38  ;;  %v1202_v39 = vld [vmem:[%s11301_s5 + $0x6d8] sm:$0xf] }
 0x1a6   : > { %v1204_v40 = vld [vmem:[%s11301_s5 + $0x65c] sm:$0xf]  ;;  %1203 = vst [vmem:[#allocation4 + $0x6b4] sm:$0xf] %v1202_v39  ;;  %v1208_v42 = vld [vmem:[%s11301_s5 + $0x660] sm:$0xf] }
 0x1a7   : > { %v1206_v41 = vld [vmem:[%s11301_s5 + $0x6dc] sm:$0xf]  ;;  %1205 = vst [vmem:[#allocation4 + $0x6b8] sm:$0xf] %v1204_v40  ;;  %v1210_v43 = vld [vmem:[%s11301_s5 + $0x6e0] sm:$0xf] }
 0x1a8   : > { %1207 = vst [vmem:[#allocation4 + $0x6bc] sm:$0xf] %v1206_v41  ;;  %v1212_v44 = vld [vmem:[%s11301_s5 + $0x664] sm:$0xf]  ;;  %1209 = vst [vmem:[#allocation4 + $0x6c0] sm:$0xf] %v1208_v42 }
 0x1a9   : > { %1211 = vst [vmem:[#allocation4 + $0x6c4] sm:$0xf] %v1210_v43  ;;  %1213 = vst [vmem:[#allocation4 + $0x6c8] sm:$0xf] %v1212_v44  ;;  %v1214_v45 = vld [vmem:[%s11301_s5 + $0x6e4] sm:$0xf] }
 0x1aa   : > { %v1216_v46 = vld [vmem:[%s11301_s5 + $0x668] sm:$0xf]  ;;  %1215 = vst [vmem:[#allocation4 + $0x6cc] sm:$0xf] %v1214_v45  ;;  %v1220_v48 = vld [vmem:[%s11301_s5 + $0x66c] sm:$0xf] }
 0x1ab   : > { %v1218_v47 = vld [vmem:[%s11301_s5 + $0x6e8] sm:$0xf]  ;;  %1217 = vst [vmem:[#allocation4 + $0x6d0] sm:$0xf] %v1216_v46  ;;  %v1222_v49 = vld [vmem:[%s11301_s5 + $0x6ec] sm:$0xf] }
 0x1ac   : > { %1219 = vst [vmem:[#allocation4 + $0x6d4] sm:$0xf] %v1218_v47  ;;  %v1224_v50 = vld [vmem:[%s11301_s5 + $0x670] sm:$0xf]  ;;  %1221 = vst [vmem:[#allocation4 + $0x6d8] sm:$0xf] %v1220_v48 }
 0x1ad   : > { %1223 = vst [vmem:[#allocation4 + $0x6dc] sm:$0xf] %v1222_v49  ;;  %1225 = vst [vmem:[#allocation4 + $0x6e0] sm:$0xf] %v1224_v50  ;;  %v1226_v51 = vld [vmem:[%s11301_s5 + $0x6f0] sm:$0xf] }
 0x1ae   : > { %v1228_v52 = vld [vmem:[%s11301_s5 + $0x674] sm:$0xf]  ;;  %1227 = vst [vmem:[#allocation4 + $0x6e4] sm:$0xf] %v1226_v51  ;;  %v1232_v54 = vld [vmem:[%s11301_s5 + $0x678] sm:$0xf] }
 0x1af   : > { %v1230_v53 = vld [vmem:[%s11301_s5 + $0x6f4] sm:$0xf]  ;;  %1229 = vst [vmem:[#allocation4 + $0x6e8] sm:$0xf] %v1228_v52  ;;  %v1234_v55 = vld [vmem:[%s11301_s5 + $0x6f8] sm:$0xf] }
 0x1b0   : > { %1231 = vst [vmem:[#allocation4 + $0x6ec] sm:$0xf] %v1230_v53  ;;  %v1236_v56 = vld [vmem:[%s11301_s5 + $0x67c] sm:$0xf]  ;;  %1233 = vst [vmem:[#allocation4 + $0x6f0] sm:$0xf] %v1232_v54 }
 0x1b1   : > { %1235 = vst [vmem:[#allocation4 + $0x6f4] sm:$0xf] %v1234_v55  ;;  %1237 = vst [vmem:[#allocation4 + $0x6f8] sm:$0xf] %v1236_v56  ;;  %v1238_v57 = vld [vmem:[%s11301_s5 + $0x6fc] sm:$0xff]  }
 0x1b2   : > { %v1242_v58 = vld [vmem:[%s11301_s5 + $0x780] sm:$0xf]  ;;  %v1244_v59 = vld [vmem:[%s11301_s5 + $0x704] sm:$0xf]  ;;  %1239 = vst [vmem:[#allocation4 + $0x6fc] sm:$0xff] %v1238_v57  }
 0x1b3   : > { %1243 = vst [vmem:[#allocation4 + $0x704] sm:$0xf] %v1242_v58  ;;  %1245 = vst [vmem:[#allocation4 + $0x708] sm:$0xf] %v1244_v59  ;;  %v1246_v60 = vld [vmem:[%s11301_s5 + $0x784] sm:$0xf] }
 0x1b4   : > { %v1248_v61 = vld [vmem:[%s11301_s5 + $0x708] sm:$0xf]  ;;  %1247 = vst [vmem:[#allocation4 + $0x70c] sm:$0xf] %v1246_v60  ;;  %v1252_v63 = vld [vmem:[%s11301_s5 + $0x70c] sm:$0xf] }
 0x1b5   : > { %v1250_v62 = vld [vmem:[%s11301_s5 + $0x788] sm:$0xf]  ;;  %1249 = vst [vmem:[#allocation4 + $0x710] sm:$0xf] %v1248_v61  ;;  %v1254_v0 = vld [vmem:[%s11301_s5 + $0x78c] sm:$0xf] }
 0x1b6   : > { %1251 = vst [vmem:[#allocation4 + $0x714] sm:$0xf] %v1250_v62  ;;  %v1256_v1 = vld [vmem:[%s11301_s5 + $0x710] sm:$0xf]  ;;  %1253 = vst [vmem:[#allocation4 + $0x718] sm:$0xf] %v1252_v63 }
 0x1b7   : > { %1255 = vst [vmem:[#allocation4 + $0x71c] sm:$0xf] %v1254_v0  ;;  %1257 = vst [vmem:[#allocation4 + $0x720] sm:$0xf] %v1256_v1  ;;  %v1258_v2 = vld [vmem:[%s11301_s5 + $0x790] sm:$0xf] }
 0x1b8   : > { %v1260_v3 = vld [vmem:[%s11301_s5 + $0x714] sm:$0xf]  ;;  %1259 = vst [vmem:[#allocation4 + $0x724] sm:$0xf] %v1258_v2  ;;  %v1264_v5 = vld [vmem:[%s11301_s5 + $0x718] sm:$0xf] }
 0x1b9   : > { %v1262_v4 = vld [vmem:[%s11301_s5 + $0x794] sm:$0xf]  ;;  %1261 = vst [vmem:[#allocation4 + $0x728] sm:$0xf] %v1260_v3  ;;  %v1266_v6 = vld [vmem:[%s11301_s5 + $0x798] sm:$0xf] }
 0x1ba   : > { %1263 = vst [vmem:[#allocation4 + $0x72c] sm:$0xf] %v1262_v4  ;;  %v1268_v7 = vld [vmem:[%s11301_s5 + $0x71c] sm:$0xf]  ;;  %1265 = vst [vmem:[#allocation4 + $0x730] sm:$0xf] %v1264_v5 }
 0x1bb   : > { %1267 = vst [vmem:[#allocation4 + $0x734] sm:$0xf] %v1266_v6  ;;  %1269 = vst [vmem:[#allocation4 + $0x738] sm:$0xf] %v1268_v7  ;;  %v1270_v8 = vld [vmem:[%s11301_s5 + $0x79c] sm:$0xf] }
 0x1bc   : > { %v1272_v9 = vld [vmem:[%s11301_s5 + $0x720] sm:$0xf]  ;;  %1271 = vst [vmem:[#allocation4 + $0x73c] sm:$0xf] %v1270_v8  ;;  %v1276_v11 = vld [vmem:[%s11301_s5 + $0x724] sm:$0xf] }
 0x1bd   : > { %v1274_v10 = vld [vmem:[%s11301_s5 + $0x7a0] sm:$0xf]  ;;  %1273 = vst [vmem:[#allocation4 + $0x740] sm:$0xf] %v1272_v9  ;;  %v1278_v12 = vld [vmem:[%s11301_s5 + $0x7a4] sm:$0xf] }
 0x1be   : > { %1275 = vst [vmem:[#allocation4 + $0x744] sm:$0xf] %v1274_v10  ;;  %v1280_v13 = vld [vmem:[%s11301_s5 + $0x728] sm:$0xf]  ;;  %1277 = vst [vmem:[#allocation4 + $0x748] sm:$0xf] %v1276_v11 }
 0x1bf   : > { %1279 = vst [vmem:[#allocation4 + $0x74c] sm:$0xf] %v1278_v12  ;;  %1281 = vst [vmem:[#allocation4 + $0x750] sm:$0xf] %v1280_v13  ;;  %v1282_v14 = vld [vmem:[%s11301_s5 + $0x7a8] sm:$0xf] }
 0x1c0   : > { %v1284_v15 = vld [vmem:[%s11301_s5 + $0x72c] sm:$0xf]  ;;  %1283 = vst [vmem:[#allocation4 + $0x754] sm:$0xf] %v1282_v14  ;;  %v1288_v17 = vld [vmem:[%s11301_s5 + $0x730] sm:$0xf] }
 0x1c1   : > { %v1286_v16 = vld [vmem:[%s11301_s5 + $0x7ac] sm:$0xf]  ;;  %1285 = vst [vmem:[#allocation4 + $0x758] sm:$0xf] %v1284_v15  ;;  %v1290_v18 = vld [vmem:[%s11301_s5 + $0x7b0] sm:$0xf] }
 0x1c2   : > { %1287 = vst [vmem:[#allocation4 + $0x75c] sm:$0xf] %v1286_v16  ;;  %v1292_v19 = vld [vmem:[%s11301_s5 + $0x734] sm:$0xf]  ;;  %1289 = vst [vmem:[#allocation4 + $0x760] sm:$0xf] %v1288_v17 }
 0x1c3   : > { %1291 = vst [vmem:[#allocation4 + $0x764] sm:$0xf] %v1290_v18  ;;  %1293 = vst [vmem:[#allocation4 + $0x768] sm:$0xf] %v1292_v19  ;;  %v1294_v20 = vld [vmem:[%s11301_s5 + $0x7b4] sm:$0xf] }
 0x1c4   : > { %v1296_v21 = vld [vmem:[%s11301_s5 + $0x738] sm:$0xf]  ;;  %1295 = vst [vmem:[#allocation4 + $0x76c] sm:$0xf] %v1294_v20  ;;  %v1300_v23 = vld [vmem:[%s11301_s5 + $0x73c] sm:$0xf] }
 0x1c5   : > { %v1298_v22 = vld [vmem:[%s11301_s5 + $0x7b8] sm:$0xf]  ;;  %1297 = vst [vmem:[#allocation4 + $0x770] sm:$0xf] %v1296_v21  ;;  %v1302_v24 = vld [vmem:[%s11301_s5 + $0x7bc] sm:$0xf] }
 0x1c6   : > { %1299 = vst [vmem:[#allocation4 + $0x774] sm:$0xf] %v1298_v22  ;;  %v1304_v25 = vld [vmem:[%s11301_s5 + $0x740] sm:$0xf]  ;;  %1301 = vst [vmem:[#allocation4 + $0x778] sm:$0xf] %v1300_v23 }
 0x1c7   : > { %1303 = vst [vmem:[#allocation4 + $0x77c] sm:$0xf] %v1302_v24  ;;  %1305 = vst [vmem:[#allocation4 + $0x780] sm:$0xf] %v1304_v25  ;;  %v1306_v26 = vld [vmem:[%s11301_s5 + $0x7c0] sm:$0xf] }
 0x1c8   : > { %v1308_v27 = vld [vmem:[%s11301_s5 + $0x744] sm:$0xf]  ;;  %1307 = vst [vmem:[#allocation4 + $0x784] sm:$0xf] %v1306_v26  ;;  %v1312_v29 = vld [vmem:[%s11301_s5 + $0x748] sm:$0xf] }
 0x1c9   : > { %v1310_v28 = vld [vmem:[%s11301_s5 + $0x7c4] sm:$0xf]  ;;  %1309 = vst [vmem:[#allocation4 + $0x788] sm:$0xf] %v1308_v27  ;;  %v1314_v30 = vld [vmem:[%s11301_s5 + $0x7c8] sm:$0xf] }
 0x1ca   : > { %1311 = vst [vmem:[#allocation4 + $0x78c] sm:$0xf] %v1310_v28  ;;  %v1316_v31 = vld [vmem:[%s11301_s5 + $0x74c] sm:$0xf]  ;;  %1313 = vst [vmem:[#allocation4 + $0x790] sm:$0xf] %v1312_v29 }
 0x1cb   : > { %1315 = vst [vmem:[#allocation4 + $0x794] sm:$0xf] %v1314_v30  ;;  %1317 = vst [vmem:[#allocation4 + $0x798] sm:$0xf] %v1316_v31  ;;  %v1318_v32 = vld [vmem:[%s11301_s5 + $0x7cc] sm:$0xf] }
 0x1cc   : > { %v1320_v33 = vld [vmem:[%s11301_s5 + $0x750] sm:$0xf]  ;;  %1319 = vst [vmem:[#allocation4 + $0x79c] sm:$0xf] %v1318_v32  ;;  %v1324_v35 = vld [vmem:[%s11301_s5 + $0x754] sm:$0xf] }
 0x1cd   : > { %v1322_v34 = vld [vmem:[%s11301_s5 + $0x7d0] sm:$0xf]  ;;  %1321 = vst [vmem:[#allocation4 + $0x7a0] sm:$0xf] %v1320_v33  ;;  %v1326_v36 = vld [vmem:[%s11301_s5 + $0x7d4] sm:$0xf] }
 0x1ce   : > { %1323 = vst [vmem:[#allocation4 + $0x7a4] sm:$0xf] %v1322_v34  ;;  %v1328_v37 = vld [vmem:[%s11301_s5 + $0x758] sm:$0xf]  ;;  %1325 = vst [vmem:[#allocation4 + $0x7a8] sm:$0xf] %v1324_v35 }
 0x1cf   : > { %1327 = vst [vmem:[#allocation4 + $0x7ac] sm:$0xf] %v1326_v36  ;;  %1329 = vst [vmem:[#allocation4 + $0x7b0] sm:$0xf] %v1328_v37  ;;  %v1330_v38 = vld [vmem:[%s11301_s5 + $0x7d8] sm:$0xf] }
 0x1d0   : > { %v1332_v39 = vld [vmem:[%s11301_s5 + $0x75c] sm:$0xf]  ;;  %1331 = vst [vmem:[#allocation4 + $0x7b4] sm:$0xf] %v1330_v38  ;;  %v1336_v41 = vld [vmem:[%s11301_s5 + $0x760] sm:$0xf] }
 0x1d1   : > { %v1334_v40 = vld [vmem:[%s11301_s5 + $0x7dc] sm:$0xf]  ;;  %1333 = vst [vmem:[#allocation4 + $0x7b8] sm:$0xf] %v1332_v39  ;;  %v1338_v42 = vld [vmem:[%s11301_s5 + $0x7e0] sm:$0xf] }
 0x1d2   : > { %1335 = vst [vmem:[#allocation4 + $0x7bc] sm:$0xf] %v1334_v40  ;;  %v1340_v43 = vld [vmem:[%s11301_s5 + $0x764] sm:$0xf]  ;;  %1337 = vst [vmem:[#allocation4 + $0x7c0] sm:$0xf] %v1336_v41 }
 0x1d3   : > { %1339 = vst [vmem:[#allocation4 + $0x7c4] sm:$0xf] %v1338_v42  ;;  %1341 = vst [vmem:[#allocation4 + $0x7c8] sm:$0xf] %v1340_v43  ;;  %v1342_v44 = vld [vmem:[%s11301_s5 + $0x7e4] sm:$0xf] }
 0x1d4   : > { %v1344_v45 = vld [vmem:[%s11301_s5 + $0x768] sm:$0xf]  ;;  %1343 = vst [vmem:[#allocation4 + $0x7cc] sm:$0xf] %v1342_v44  ;;  %v1348_v47 = vld [vmem:[%s11301_s5 + $0x76c] sm:$0xf] }
 0x1d5   : > { %v1346_v46 = vld [vmem:[%s11301_s5 + $0x7e8] sm:$0xf]  ;;  %1345 = vst [vmem:[#allocation4 + $0x7d0] sm:$0xf] %v1344_v45  ;;  %v1350_v48 = vld [vmem:[%s11301_s5 + $0x7ec] sm:$0xf] }
 0x1d6   : > { %1347 = vst [vmem:[#allocation4 + $0x7d4] sm:$0xf] %v1346_v46  ;;  %v1352_v49 = vld [vmem:[%s11301_s5 + $0x770] sm:$0xf]  ;;  %1349 = vst [vmem:[#allocation4 + $0x7d8] sm:$0xf] %v1348_v47 }
 0x1d7   : > { %1351 = vst [vmem:[#allocation4 + $0x7dc] sm:$0xf] %v1350_v48  ;;  %1353 = vst [vmem:[#allocation4 + $0x7e0] sm:$0xf] %v1352_v49  ;;  %v1354_v50 = vld [vmem:[%s11301_s5 + $0x7f0] sm:$0xf] }
 0x1d8   : > { %v1356_v51 = vld [vmem:[%s11301_s5 + $0x774] sm:$0xf]  ;;  %1355 = vst [vmem:[#allocation4 + $0x7e4] sm:$0xf] %v1354_v50  ;;  %v1360_v53 = vld [vmem:[%s11301_s5 + $0x778] sm:$0xf] }
 0x1d9   : > { %v1358_v52 = vld [vmem:[%s11301_s5 + $0x7f4] sm:$0xf]  ;;  %1357 = vst [vmem:[#allocation4 + $0x7e8] sm:$0xf] %v1356_v51  ;;  %v1362_v54 = vld [vmem:[%s11301_s5 + $0x7f8] sm:$0xf] }
 0x1da   : > { %1359 = vst [vmem:[#allocation4 + $0x7ec] sm:$0xf] %v1358_v52  ;;  %v1364_v55 = vld [vmem:[%s11301_s5 + $0x77c] sm:$0xf]  ;;  %1361 = vst [vmem:[#allocation4 + $0x7f0] sm:$0xf] %v1360_v53 }
 0x1db   : > { %1363 = vst [vmem:[#allocation4 + $0x7f4] sm:$0xf] %v1362_v54  ;;  %1365 = vst [vmem:[#allocation4 + $0x7f8] sm:$0xf] %v1364_v55  ;;  %v1366_v56 = vld [vmem:[%s11301_s5 + $0x7fc] sm:$0xf] }
 0x1dc   : > { %1367 = vst [vmem:[#allocation4 + $0x7fc] sm:$0xf] %v1366_v56 }
 0x1dd   : > { %4503 = vsyncadd [#allocation5], 32768  ;;  %vm4506_vm0 = vcmask 523264   ;;  %v9103_v57 = vmov 0.0  }
 0x1de   : > { %4504 = vst [vmem:[#allocation2] sm:$0xff] %v9103_v57  ;;  %4505 = vst [vmem:[#allocation2 + $0x8] sm:$0xff] %v9103_v57 }
 0x1df   : > { %4507 = vst.msk [vmem:[#allocation3] sm:$0xff] %vm4506_vm0, %v9103_v57 }
 0x1e0 PF: > { %v8635_v58 = vld [vmem:[%s9340_s20 + $0x4] ss:$8 sps:$4 sm:$0xff]   ;;  %v8639_v60 = vld [vmem:[%s9340_s20] ss:$8 sps:$4 sm:$0xff]   ;;  %v8641_v62 = vld [vmem:[%s9340_s20 + $0x14] ss:$8 sps:$4 sm:$0xff]  }
 0x1e1   : > { %v8637_v59 = vld [vmem:[%s9340_s20 + $0x104] ss:$8 sps:$4 sm:$0xff]   ;;  %5310 = vmatprep.subr.bf16.mxu0 %v8635_v58  ;;  %v8640_v61 = vld [vmem:[%s9340_s20 + $0x100] ss:$8 sps:$4 sm:$0xff]   ;;  %v8643_v63 = vld [vmem:[%s9340_s20 + $0x114] ss:$8 sps:$4 sm:$0xff]  }
 0x1e2   : > { %5351 = vmatprep.subr.bf16.mxu1 %v8637_v59  ;;  %5311 = vmatpush1.bf16.msra.mxu0 %v8639_v60  ;;  %v8645_v0 = vld [vmem:[%s9340_s20 + $0x10] ss:$8 sps:$4 sm:$0xff]   ;;  %v8647_v2 = vld [vmem:[%s9340_s20 + $0x24] ss:$8 sps:$4 sm:$0xff]   ;;  %v8651_v4 = vld [vmem:[%s9340_s20 + $0x20] ss:$8 sps:$4 sm:$0xff]  }
 0x1e3   : > { %5352 = vmatpush1.bf16.msra.mxu1 %v8640_v61  ;;  %5312 = vmatprep.subr.bf16.mxu0 %v8641_v62  ;;  %v8646_v1 = vld [vmem:[%s9340_s20 + $0x110] ss:$8 sps:$4 sm:$0xff]   ;;  %v8649_v3 = vld [vmem:[%s9340_s20 + $0x124] ss:$8 sps:$4 sm:$0xff]   ;;  %v8652_v5 = vld [vmem:[%s9340_s20 + $0x120] ss:$8 sps:$4 sm:$0xff]  }
 0x1e4   : > { %5353 = vmatprep.subr.bf16.mxu1 %v8643_v63  ;;  %v8653_v6 = vld [vmem:[%s9340_s20 + $0x34] ss:$8 sps:$4 sm:$0xff]   ;;  %v8657_v8 = vld [vmem:[%s9340_s20 + $0x30] ss:$8 sps:$4 sm:$0xff]   ;;  %v8659_v10 = vld [vmem:[%s9340_s20 + $0x44] ss:$8 sps:$4 sm:$0xff]  }
 0x1e5   : > { %v8655_v7 = vld [vmem:[%s9340_s20 + $0x134] ss:$8 sps:$4 sm:$0xff]   ;;  %v8658_v9 = vld [vmem:[%s9340_s20 + $0x130] ss:$8 sps:$4 sm:$0xff]   ;;  %v8661_v11 = vld [vmem:[%s9340_s20 + $0x144] ss:$8 sps:$4 sm:$0xff]  }
 0x1e6   : > { %5313 = vmatpush1.bf16.msra.mxu0 %v8645_v0  ;;  %v8663_v12 = vld [vmem:[%s9340_s20 + $0x40] ss:$8 sps:$4 sm:$0xff]   ;;  %v8665_v14 = vld [vmem:[%s9340_s20 + $0x54] ss:$8 sps:$4 sm:$0xff]   ;;  %v8669_v16 = vld [vmem:[%s9340_s20 + $0x50] ss:$8 sps:$4 sm:$0xff]  }
 0x1e7   : > { %5354 = vmatpush1.bf16.msra.mxu1 %v8646_v1  ;;  %5314 = vmatprep.subr.bf16.mxu0 %v8647_v2  ;;  %v8664_v13 = vld [vmem:[%s9340_s20 + $0x140] ss:$8 sps:$4 sm:$0xff]   ;;  %v8667_v15 = vld [vmem:[%s9340_s20 + $0x154] ss:$8 sps:$4 sm:$0xff]   ;;  %v8670_v17 = vld [vmem:[%s9340_s20 + $0x150] ss:$8 sps:$4 sm:$0xff]  }
 0x1e8   : > { %5355 = vmatprep.subr.bf16.mxu1 %v8649_v3  ;;  %v8671_v18 = vld [vmem:[%s9340_s20 + $0x64] ss:$8 sps:$4 sm:$0xff]   ;;  %v8675_v20 = vld [vmem:[%s9340_s20 + $0x60] ss:$8 sps:$4 sm:$0xff]   ;;  %v8677_v22 = vld [vmem:[%s9340_s20 + $0x74] ss:$8 sps:$4 sm:$0xff]  }
 0x1e9   : > { %v8673_v19 = vld [vmem:[%s9340_s20 + $0x164] ss:$8 sps:$4 sm:$0xff]   ;;  %v8676_v21 = vld [vmem:[%s9340_s20 + $0x160] ss:$8 sps:$4 sm:$0xff]   ;;  %v8679_v23 = vld [vmem:[%s9340_s20 + $0x174] ss:$8 sps:$4 sm:$0xff]  }
 0x1ea   : > { %5315 = vmatpush1.bf16.msra.mxu0 %v8651_v4  ;;  %v8681_v24 = vld [vmem:[%s9340_s20 + $0x70] ss:$8 sps:$4 sm:$0xff]   ;;  %v8683_v26 = vld [vmem:[%s9340_s20 + $0x84] ss:$8 sps:$4 sm:$0xff]   ;;  %v8687_v28 = vld [vmem:[%s9340_s20 + $0x80] ss:$8 sps:$4 sm:$0xff]  }
 0x1eb   : > { %5356 = vmatpush1.bf16.msra.mxu1 %v8652_v5  ;;  %5316 = vmatprep.subr.bf16.mxu0 %v8653_v6  ;;  %v8682_v25 = vld [vmem:[%s9340_s20 + $0x170] ss:$8 sps:$4 sm:$0xff]   ;;  %v8685_v27 = vld [vmem:[%s9340_s20 + $0x184] ss:$8 sps:$4 sm:$0xff]   ;;  %v8688_v29 = vld [vmem:[%s9340_s20 + $0x180] ss:$8 sps:$4 sm:$0xff]  }
 0x1ec   : > { %5357 = vmatprep.subr.bf16.mxu1 %v8655_v7  ;;  %v8689_v30 = vld [vmem:[%s9340_s20 + $0x94] ss:$8 sps:$4 sm:$0xff]   ;;  %v8693_v32 = vld [vmem:[%s9340_s20 + $0x90] ss:$8 sps:$4 sm:$0xff]   ;;  %v8695_v34 = vld [vmem:[%s9340_s20 + $0xa4] ss:$8 sps:$4 sm:$0xff]  }
 0x1ed   : > { %v8691_v31 = vld [vmem:[%s9340_s20 + $0x194] ss:$8 sps:$4 sm:$0xff]   ;;  %v8694_v33 = vld [vmem:[%s9340_s20 + $0x190] ss:$8 sps:$4 sm:$0xff]   ;;  %v8697_v35 = vld [vmem:[%s9340_s20 + $0x1a4] ss:$8 sps:$4 sm:$0xff]  }
 0x1ee   : > { %5317 = vmatpush1.bf16.msra.mxu0 %v8657_v8  ;;  %v8699_v36 = vld [vmem:[%s9340_s20 + $0xa0] ss:$8 sps:$4 sm:$0xff]   ;;  %v8701_v38 = vld [vmem:[%s9340_s20 + $0xb4] ss:$8 sps:$4 sm:$0xff]   ;;  %v8705_v43 = vld [vmem:[%s9340_s20 + $0xb0] ss:$8 sps:$4 sm:$0xff]  }
 0x1ef   : > { %5358 = vmatpush1.bf16.msra.mxu1 %v8658_v9  ;;  %5318 = vmatprep.subr.bf16.mxu0 %v8659_v10  ;;  %v8700_v37 = vld [vmem:[%s9340_s20 + $0x1a0] ss:$8 sps:$4 sm:$0xff]   ;;  %v8703_v39 = vld [vmem:[%s9340_s20 + $0x1b4] ss:$8 sps:$4 sm:$0xff]   ;;  %v8706_v44 = vld [vmem:[%s9340_s20 + $0x1b0] ss:$8 sps:$4 sm:$0xff]  }
 0x1f0   : > { %5359 = vmatprep.subr.bf16.mxu1 %v8661_v11  ;;  %v4508_v40 = vld [vmem:[%s9333_s28] sm:$0xff]  ;;  %v4509_v42 = vld [vmem:[%s9333_s28 + $0x8] sm:$0xff]  ;;  %v8713_v50 = vld [vmem:[%s9340_s20 + $0xd4] ss:$8 sps:$4 sm:$0xff]   ;;  %vm6152_vm1 = vcmask 523264   ;;  %p8200_p0 = scmp.ne.s32.totalorder %s9163_s25, 3 }
 0x1f1   : > { %v10924_v41 = vcombine.high %v4508_v40, %v4508_v40  ;;  %v10929_v45 = vcombine.high %v4509_v42, %v4509_v42  ;;  %v8707_v46 = vld [vmem:[%s9340_s20 + $0xc4] ss:$8 sps:$4 sm:$0xff]   ;;  %v8711_v48 = vld [vmem:[%s9340_s20 + $0xc0] ss:$8 sps:$4 sm:$0xff]   ;;  %v8715_v51 = vld [vmem:[%s9340_s20 + $0x1d4] ss:$8 sps:$4 sm:$0xff]   ;;  %v10951_v0 = vcombine.low %v4508_v40, %v4508_v40  ;;  %v10953_v1 = vcombine.low %v4509_v42, %v4509_v42 }
 0x1f2   : > { %5319 = vmatpush1.bf16.msra.mxu0 %v8663_v12  ;;  %v8709_v47 = vld [vmem:[%s9340_s20 + $0x1c4] ss:$8 sps:$4 sm:$0xff]   ;;  %v8712_v49 = vld [vmem:[%s9340_s20 + $0x1c0] ss:$8 sps:$4 sm:$0xff]   ;;  %v8717_v52 = vld [vmem:[%s9340_s20 + $0xd0] ss:$8 sps:$4 sm:$0xff]  }
 0x1f3   : > { %5360 = vmatpush1.bf16.msra.mxu1 %v8664_v13  ;;  %5320 = vmatprep.subr.bf16.mxu0 %v8665_v14  ;;  %v8718_v53 = vld [vmem:[%s9340_s20 + $0x1d0] ss:$8 sps:$4 sm:$0xff]   ;;  %v8719_v54 = vld [vmem:[%s9340_s20 + $0xe4] ss:$8 sps:$4 sm:$0xff]   ;;  %v8723_v56 = vld [vmem:[%s9340_s20 + $0xe0] ss:$8 sps:$4 sm:$0xff]  }
 0x1f4   : > { %5361 = vmatprep.subr.bf16.mxu1 %v8667_v15  ;;  %5342 = vmatprep.mubr.bf16.mxu0 %v10924_v41  ;;  %v8721_v55 = vld [vmem:[%s9340_s20 + $0x1e4] ss:$8 sps:$4 sm:$0xff]   ;;  %v8724_v57 = vld [vmem:[%s9340_s20 + $0x1e0] ss:$8 sps:$4 sm:$0xff]   ;;  %v8725_v58 = vld [vmem:[%s9340_s20 + $0xf4] ss:$8 sps:$4 sm:$0xff]  }
 0x1f5   : > { %5383 = vmatprep.mubr.bf16.mxu1 %v10929_v45  ;;  %v8727_v59 = vld [vmem:[%s9340_s20 + $0x1f4] ss:$8 sps:$4 sm:$0xff]   ;;  %v8729_v60 = vld [vmem:[%s9340_s20 + $0xf0] ss:$8 sps:$4 sm:$0xff]   ;;  %v8737_v62 = vld [vmem:[%s9340_s20 + $0x204] ss:$8 sps:$4 sm:$0xff]  }
 0x1f6   : > { %5321 = vmatpush1.bf16.msra.mxu0 %v8669_v16  ;;  %v8730_v61 = vld [vmem:[%s9340_s20 + $0x1f0] ss:$8 sps:$4 sm:$0xff]   ;;  %v8740_v63 = vld [vmem:[%s9340_s20 + $0x304] ss:$8 sps:$4 sm:$0xff]   ;;  %v8735_v2 = vld [vmem:[%s9340_s20 + $0x200] ss:$8 sps:$4 sm:$0xff]  }
 0x1f7   : > { %5362 = vmatpush1.bf16.msra.mxu1 %v8670_v17  ;;  %5322 = vmatprep.subr.bf16.mxu0 %v8671_v18  ;;  %v8738_v3 = vld [vmem:[%s9340_s20 + $0x300] ss:$8 sps:$4 sm:$0xff]   ;;  %v8743_v4 = vld [vmem:[%s9340_s20 + $0x214] ss:$8 sps:$4 sm:$0xff]   ;;  %v8741_v6 = vld [vmem:[%s9340_s20 + $0x210] ss:$8 sps:$4 sm:$0xff]  }
 0x1f8   : > { %5363 = vmatprep.subr.bf16.mxu1 %v8673_v19  ;;  %v8746_v5 = vld [vmem:[%s9340_s20 + $0x314] ss:$8 sps:$4 sm:$0xff]   ;;  %v8744_v7 = vld [vmem:[%s9340_s20 + $0x310] ss:$8 sps:$4 sm:$0xff]   ;;  %v8749_v8 = vld [vmem:[%s9340_s20 + $0x224] ss:$8 sps:$4 sm:$0xff]  }
 0x1f9   : > { %v8752_v9 = vld [vmem:[%s9340_s20 + $0x324] ss:$8 sps:$4 sm:$0xff]   ;;  %v8747_v10 = vld [vmem:[%s9340_s20 + $0x220] ss:$8 sps:$4 sm:$0xff]   ;;  %v8755_v12 = vld [vmem:[%s9340_s20 + $0x234] ss:$8 sps:$4 sm:$0xff]  }
 0x1fa   : > { %5323 = vmatpush1.bf16.msra.mxu0 %v8675_v20  ;;  %v8750_v11 = vld [vmem:[%s9340_s20 + $0x320] ss:$8 sps:$4 sm:$0xff]   ;;  %v8758_v13 = vld [vmem:[%s9340_s20 + $0x334] ss:$8 sps:$4 sm:$0xff]   ;;  %v8753_v14 = vld [vmem:[%s9340_s20 + $0x230] ss:$8 sps:$4 sm:$0xff]  }
 0x1fb   : > { %5364 = vmatpush1.bf16.msra.mxu1 %v8676_v21  ;;  %5324 = vmatprep.subr.bf16.mxu0 %v8677_v22  ;;  %v8756_v15 = vld [vmem:[%s9340_s20 + $0x330] ss:$8 sps:$4 sm:$0xff]   ;;  %v8761_v16 = vld [vmem:[%s9340_s20 + $0x244] ss:$8 sps:$4 sm:$0xff]   ;;  %v8759_v18 = vld [vmem:[%s9340_s20 + $0x240] ss:$8 sps:$4 sm:$0xff]  }
 0x1fc   : > { %5365 = vmatprep.subr.bf16.mxu1 %v8679_v23  ;;  %v8764_v17 = vld [vmem:[%s9340_s20 + $0x344] ss:$8 sps:$4 sm:$0xff]   ;;  %v8762_v19 = vld [vmem:[%s9340_s20 + $0x340] ss:$8 sps:$4 sm:$0xff]   ;;  %v8767_v20 = vld [vmem:[%s9340_s20 + $0x254] ss:$8 sps:$4 sm:$0xff]  }
 0x1fd   : > { %v8770_v21 = vld [vmem:[%s9340_s20 + $0x354] ss:$8 sps:$4 sm:$0xff]   ;;  %v8765_v22 = vld [vmem:[%s9340_s20 + $0x250] ss:$8 sps:$4 sm:$0xff]   ;;  %vm9105_vm2 = vmmov (!%p8200_p0), 0   ;;  %vm6459_vm3 = vcmask (!%p8200_p0), 261120  }
 0x1fe   : > { %5325 = vmatpush1.bf16.msra.mxu0 %v8681_v24  ;;  %v8768_v23 = vld [vmem:[%s9340_s20 + $0x350] ss:$8 sps:$4 sm:$0xff]   ;;  %v8773_v24 = vld [vmem:[%s9340_s20 + $0x264] ss:$8 sps:$4 sm:$0xff]   ;;  %v8791_v40 = vld [vmem:[%s9340_s20 + $0x294] ss:$8 sps:$4 sm:$0xff]  }
 0x1ff   : > { %5366 = vmatpush1.bf16.msra.mxu1 %v8682_v25  ;;  %5326 = vmatprep.subr.bf16.mxu0 %v8683_v26  ;;  %v8776_v25 = vld [vmem:[%s9340_s20 + $0x364] ss:$8 sps:$4 sm:$0xff]   ;;  %v8771_v26 = vld [vmem:[%s9340_s20 + $0x260] ss:$8 sps:$4 sm:$0xff]   ;;  %v8794_v42 = vld [vmem:[%s9340_s20 + $0x394] ss:$8 sps:$4 sm:$0xff]  }
 0x200   : > { %5367 = vmatprep.subr.bf16.mxu1 %v8685_v27  ;;  %v10983_v27 = vld [vmem:[%s9333_s28 + $0x10] sm:$0xff]  ;;  %vm6546_vm4 = vcmask (!%p8200_p0), 1043456   ;;  %vm6542_vm5 = vcmask (!%p8200_p0), 31744  }
 0x202   : > { %5327 = vmatpush1.bf16.msra.mxu0 %v8687_v28  ;;  %v10986_v28 = vld [vmem:[%s9333_s28 + $0x18] sm:$0xff] }
 0x203   : > { %5368 = vmatpush1.bf16.msra.mxu1 %v8688_v29  ;;  %5328 = vmatprep.subr.bf16.mxu0 %v8689_v30  ;;  %v8774_v29 = vld [vmem:[%s9340_s20 + $0x360] ss:$8 sps:$4 sm:$0xff]   ;;  %v10991_v30 = vcombine.high %v10983_v27, %v10983_v27 }
 0x204   : > { %5369 = vmatprep.subr.bf16.mxu1 %v8691_v31  ;;  %v10995_v31 = vcombine.high %v10986_v28, %v10986_v28 }
 0x206   : > { %5329 = vmatpush1.bf16.msra.mxu0 %v8693_v32  ;;  %v8779_v32 = vld [vmem:[%s9340_s20 + $0x274] ss:$8 sps:$4 sm:$0xff]  }
 0x207   : > { %5370 = vmatpush1.bf16.msra.mxu1 %v8694_v33  ;;  %5330 = vmatprep.subr.bf16.mxu0 %v8695_v34  ;;  %v8782_v33 = vld [vmem:[%s9340_s20 + $0x374] ss:$8 sps:$4 sm:$0xff]   ;;  %v8777_v34 = vld [vmem:[%s9340_s20 + $0x270] ss:$8 sps:$4 sm:$0xff]  }
 0x208   : > { %5371 = vmatprep.subr.bf16.mxu1 %v8697_v35  ;;  %v8780_v35 = vld [vmem:[%s9340_s20 + $0x370] ss:$8 sps:$4 sm:$0xff]  }
 0x20a   : > { %5331 = vmatpush1.bf16.msra.mxu0 %v8699_v36  ;;  %v8785_v36 = vld [vmem:[%s9340_s20 + $0x284] ss:$8 sps:$4 sm:$0xff]  }
 0x20b   : > { %5372 = vmatpush1.bf16.msra.mxu1 %v8700_v37  ;;  %5332 = vmatprep.subr.bf16.mxu0 %v8701_v38  ;;  %v8788_v37 = vld [vmem:[%s9340_s20 + $0x384] ss:$8 sps:$4 sm:$0xff]   ;;  %v8783_v38 = vld [vmem:[%s9340_s20 + $0x280] ss:$8 sps:$4 sm:$0xff]  }
 0x20c   : > { %5373 = vmatprep.subr.bf16.mxu1 %v8703_v39  ;;  %v8786_v39 = vld [vmem:[%s9340_s20 + $0x380] ss:$8 sps:$4 sm:$0xff]  }
 0x20e   : > { %5333 = vmatpush1.bf16.msra.mxu0 %v8705_v43  ;;  %v8789_v43 = vld [vmem:[%s9340_s20 + $0x290] ss:$8 sps:$4 sm:$0xff]  }
 0x20f   : > { %5374 = vmatpush1.bf16.msra.mxu1 %v8706_v44  ;;  %5334 = vmatprep.subr.bf16.mxu0 %v8707_v46  ;;  %v8792_v44 = vld [vmem:[%s9340_s20 + $0x390] ss:$8 sps:$4 sm:$0xff]   ;;  %v8797_v46 = vld [vmem:[%s9340_s20 + $0x2a4] ss:$8 sps:$4 sm:$0xff]  }
 0x210   : > { %5375 = vmatprep.subr.bf16.mxu1 %v8709_v47  ;;  %v8800_v47 = vld [vmem:[%s9340_s20 + $0x3a4] ss:$8 sps:$4 sm:$0xff]  }
 0x212   : > { %5335 = vmatpush1.bf16.msra.mxu0 %v8711_v48  ;;  %v8795_v48 = vld [vmem:[%s9340_s20 + $0x2a0] ss:$8 sps:$4 sm:$0xff]  }
 0x213   : > { %5376 = vmatpush1.bf16.msra.mxu1 %v8712_v49  ;;  %5336 = vmatprep.subr.bf16.mxu0 %v8713_v50  ;;  %v8798_v49 = vld [vmem:[%s9340_s20 + $0x3a0] ss:$8 sps:$4 sm:$0xff]   ;;  %v8803_v50 = vld [vmem:[%s9340_s20 + $0x2b4] ss:$8 sps:$4 sm:$0xff]  }
 0x214   : > { %5377 = vmatprep.subr.bf16.mxu1 %v8715_v51  ;;  %v8806_v51 = vld [vmem:[%s9340_s20 + $0x3b4] ss:$8 sps:$4 sm:$0xff]  }
 0x216   : > { %5337 = vmatpush1.bf16.msra.mxu0 %v8717_v52  ;;  %v8801_v52 = vld [vmem:[%s9340_s20 + $0x2b0] ss:$8 sps:$4 sm:$0xff]  }
 0x217   : > { %5378 = vmatpush1.bf16.msra.mxu1 %v8718_v53  ;;  %5338 = vmatprep.subr.bf16.mxu0 %v8719_v54  ;;  %v8804_v53 = vld [vmem:[%s9340_s20 + $0x3b0] ss:$8 sps:$4 sm:$0xff]   ;;  %v8809_v54 = vld [vmem:[%s9340_s20 + $0x2c4] ss:$8 sps:$4 sm:$0xff]  }
 0x218   : > { %5379 = vmatprep.subr.bf16.mxu1 %v8721_v55  ;;  %v8812_v55 = vld [vmem:[%s9340_s20 + $0x3c4] ss:$8 sps:$4 sm:$0xff]  }
 0x21a   : > { %5339 = vmatpush1.bf16.msra.mxu0 %v8723_v56  ;;  %v8807_v56 = vld [vmem:[%s9340_s20 + $0x2c0] ss:$8 sps:$4 sm:$0xff]  }
 0x21b   : > { %5380 = vmatpush1.bf16.msra.mxu1 %v8724_v57  ;;  %5340 = vmatprep.subr.bf16.mxu0 %v8725_v58  ;;  %v8810_v57 = vld [vmem:[%s9340_s20 + $0x3c0] ss:$8 sps:$4 sm:$0xff]   ;;  %v8815_v58 = vld [vmem:[%s9340_s20 + $0x2d4] ss:$8 sps:$4 sm:$0xff]  }
 0x21c   : > { %5381 = vmatprep.subr.bf16.mxu1 %v8727_v59  ;;  %v8818_v59 = vld [vmem:[%s9340_s20 + $0x3d4] ss:$8 sps:$4 sm:$0xff]  }
 0x21e   : > { %5341 = vmatpush1.bf16.msra.mxu0 %v8729_v60  ;;  %v8813_v60 = vld [vmem:[%s9340_s20 + $0x2d0] ss:$8 sps:$4 sm:$0xff]  }
 0x21f   : > { %5382 = vmatpush1.bf16.msra.mxu1 %v8730_v61  ;;  %5392 = vmatprep.subr.bf16.mxu0 %v8737_v62  ;;  %v8816_v61 = vld [vmem:[%s9340_s20 + $0x3d0] ss:$8 sps:$4 sm:$0xff]   ;;  %v8821_v62 = vld [vmem:[%s9340_s20 + $0x2e4] ss:$8 sps:$4 sm:$0xff]  }
 0x220   : > { %5433 = vmatprep.subr.bf16.mxu1 %v8740_v63  ;;  %v8824_v63 = vld [vmem:[%s9340_s20 + $0x3e4] ss:$8 sps:$4 sm:$0xff]  }
 0x221   : > { %5343 = vmatmul.mubr.bf16.vlgmr.msra.gmra.mrb[0].mxu0 %v10951_v0 }
 0x222   : > { %5384 = vmatmul.mubr.bf16.vlgmr.msra.gmra.mrb[0].mxu1 %v10953_v1  ;;  %5393 = vmatpush1.bf16.msra.mxu0 %v8735_v2  ;;  %v8819_v2 = vld [vmem:[%s9340_s20 + $0x2e0] ss:$8 sps:$4 sm:$0xff]  }
 0x223   : > { %5434 = vmatpush1.bf16.msra.mxu1 %v8738_v3  ;;  %5394 = vmatprep.subr.bf16.mxu0 %v8743_v4  ;;  %v8822_v3 = vld [vmem:[%s9340_s20 + $0x3e0] ss:$8 sps:$4 sm:$0xff]   ;;  %v8827_v4 = vld [vmem:[%s9340_s20 + $0x2f4] ss:$8 sps:$4 sm:$0xff]  }
 0x224   : > { %5435 = vmatprep.subr.bf16.mxu1 %v8746_v5  ;;  %5424 = vmatprep.mubr.bf16.mxu0 %v10991_v30  ;;  %v8830_v5 = vld [vmem:[%s9340_s20 + $0x3f4] ss:$8 sps:$4 sm:$0xff]  }
 0x225   : > { %5465 = vmatprep.mubr.bf16.mxu1 %v10995_v31 }
 0x226   : > { %5395 = vmatpush1.bf16.msra.mxu0 %v8741_v6  ;;  %v8825_v6 = vld [vmem:[%s9340_s20 + $0x2f0] ss:$8 sps:$4 sm:$0xff]  }
 0x227   : > { %5436 = vmatpush1.bf16.msra.mxu1 %v8744_v7  ;;  %5396 = vmatprep.subr.bf16.mxu0 %v8749_v8  ;;  %v8828_v7 = vld [vmem:[%s9340_s20 + $0x3f0] ss:$8 sps:$4 sm:$0xff]   ;;  %v8835_v8 = vld [vmem:[%s9358_s11 + $0x40] sm:$0xff]  }
 0x228   : > { %5437 = vmatprep.subr.bf16.mxu1 %v8752_v9  ;;  %v8836_v9 = vld [vmem:[%s9358_s11 + $0xc0] sm:$0xff]  }
 0x22a   : > { %5397 = vmatpush1.bf16.msra.mxu0 %v8747_v10  ;;  %v8837_v10 = vld [vmem:[%s9358_s11] sm:$0xff]  }
 0x22b   : > { %5438 = vmatpush1.bf16.msra.mxu1 %v8750_v11  ;;  %5398 = vmatprep.subr.bf16.mxu0 %v8755_v12  ;;  %v11040_v11 = vcombine.low %v10983_v27, %v10983_v27  ;;  %v11044_v12 = vcombine.low %v10986_v28, %v10986_v28  ;;  %v8854_v27 = vld [vmem:[%s9358_s11 + $0xa0] sm:$0xff]   ;;  %v8855_v28 = vld [vmem:[%s9358_s11 + $0x68] sm:$0xff]  }
 0x22c   : > { %5439 = vmatprep.subr.bf16.mxu1 %v8758_v13  ;;  %v8838_v13 = vld [vmem:[%s9358_s11 + $0x80] sm:$0xff]  }
 0x22e   : > { %5399 = vmatpush1.bf16.msra.mxu0 %v8753_v14  ;;  %v8839_v14 = vld [vmem:[%s9358_s11 + $0x48] sm:$0xff]  }
 0x22f   : > { %5440 = vmatpush1.bf16.msra.mxu1 %v8756_v15  ;;  %5400 = vmatprep.subr.bf16.mxu0 %v8761_v16  ;;  %v8840_v15 = vld [vmem:[%s9358_s11 + $0xc8] sm:$0xff]  }
 0x230   : > { %5441 = vmatprep.subr.bf16.mxu1 %v8764_v17  ;;  %v8841_v16 = vld [vmem:[%s9358_s11 + $0x8] sm:$0xff]  }
 0x231   : > { %v8842_v17 = vld [vmem:[%s9358_s11 + $0x88] sm:$0xff]  }
 0x232   : > { %5401 = vmatpush1.bf16.msra.mxu0 %v8759_v18  ;;  %v8843_v18 = vld [vmem:[%s9358_s11 + $0x50] sm:$0xff]  }
 0x233   : > { %5442 = vmatpush1.bf16.msra.mxu1 %v8762_v19  ;;  %5402 = vmatprep.subr.bf16.mxu0 %v8767_v20  ;;  %v8844_v19 = vld [vmem:[%s9358_s11 + $0xd0] sm:$0xff]  }
 0x234   : > { %5443 = vmatprep.subr.bf16.mxu1 %v8770_v21  ;;  %v8845_v20 = vld [vmem:[%s9358_s11 + $0x10] sm:$0xff]  }
 0x235   : > { %v8846_v21 = vld [vmem:[%s9358_s11 + $0x90] sm:$0xff]  }
 0x236   : > { %5403 = vmatpush1.bf16.msra.mxu0 %v8765_v22  ;;  %v8847_v22 = vld [vmem:[%s9358_s11 + $0x58] sm:$0xff]  }
 0x237   : > { %5444 = vmatpush1.bf16.msra.mxu1 %v8768_v23  ;;  %5404 = vmatprep.subr.bf16.mxu0 %v8773_v24  ;;  %v8848_v23 = vld [vmem:[%s9358_s11 + $0xd8] sm:$0xff]  }
 0x238   : > { %5445 = vmatprep.subr.bf16.mxu1 %v8776_v25  ;;  %v8849_v24 = vld [vmem:[%s9358_s11 + $0x18] sm:$0xff]  }
 0x239   : > { %v8850_v25 = vld [vmem:[%s9358_s11 + $0x98] sm:$0xff]  }
 0x23a   : > { %5405 = vmatpush1.bf16.msra.mxu0 %v8771_v26  ;;  %v8853_v26 = vld [vmem:[%s9358_s11 + $0x20] sm:$0xff]  }
 0x23b   : > { %5446 = vmatpush1.bf16.msra.mxu1 %v8774_v29  ;;  %5406 = vmatprep.subr.bf16.mxu0 %v8779_v32  ;;  %v8856_v29 = vld [vmem:[%s9358_s11 + $0xe8] sm:$0xff]  }
 0x23c   : > { %5447 = vmatprep.subr.bf16.mxu1 %v8782_v33  ;;  %v8857_v32 = vld [vmem:[%s9358_s11 + $0x28] sm:$0xff]  }
 0x23d   : > { %v8858_v33 = vld [vmem:[%s9358_s11 + $0xa8] sm:$0xff]  }
 0x23e   : > { %5407 = vmatpush1.bf16.msra.mxu0 %v8777_v34  ;;  %v8859_v34 = vld [vmem:[%s9358_s11 + $0x70] sm:$0xff]  }
 0x23f   : > { %5448 = vmatpush1.bf16.msra.mxu1 %v8780_v35  ;;  %5408 = vmatprep.subr.bf16.mxu0 %v8785_v36  ;;  %v8860_v35 = vld [vmem:[%s9358_s11 + $0xf0] sm:$0xff]  }
 0x240   : > { %5449 = vmatprep.subr.bf16.mxu1 %v8788_v37  ;;  %v8861_v36 = vld [vmem:[%s9358_s11 + $0x30] sm:$0xff]  }
 0x241   : > { %v8862_v37 = vld [vmem:[%s9358_s11 + $0xb0] sm:$0xff]  }
 0x242   : > { %5409 = vmatpush1.bf16.msra.mxu0 %v8783_v38  ;;  %v8863_v38 = vld [vmem:[%s9358_s11 + $0x78] sm:$0xff]  }
 0x243   : > { %5450 = vmatpush1.bf16.msra.mxu1 %v8786_v39  ;;  %5410 = vmatprep.subr.bf16.mxu0 %v8791_v40  ;;  %v8864_v39 = vld [vmem:[%s9358_s11 + $0xf8] sm:$0xff]  }
 0x244   : > { %5451 = vmatprep.subr.bf16.mxu1 %v8794_v42  ;;  %v8865_v40 = vld [vmem:[%s9358_s11 + $0x38] sm:$0xff]  }
 0x245   : > { %v8866_v42 = vld [vmem:[%s9358_s11 + $0xb8] sm:$0xff]  }
 0x246   : > { %5411 = vmatpush1.bf16.msra.mxu0 %v8789_v43  ;;  %v8867_v43 = vld [vmem:[%s9358_s11 + $0x140] sm:$0xff]  }
 0x247   : > { %5452 = vmatpush1.bf16.msra.mxu1 %v8792_v44  ;;  %5412 = vmatprep.subr.bf16.mxu0 %v8797_v46  ;;  %v8868_v44 = vld [vmem:[%s9358_s11 + $0x1c0] sm:$0xff]  }
 0x248   : > { %5453 = vmatprep.subr.bf16.mxu1 %v8800_v47  ;;  %v8869_v46 = vld [vmem:[%s9358_s11 + $0x100] sm:$0xff]  }
 0x249   : > { %v8870_v47 = vld [vmem:[%s9358_s11 + $0x180] sm:$0xff]  }
 0x24a   : > { %5413 = vmatpush1.bf16.msra.mxu0 %v8795_v48  ;;  %v8871_v48 = vld [vmem:[%s9358_s11 + $0x148] sm:$0xff]  }
 0x24b   : > { %5454 = vmatpush1.bf16.msra.mxu1 %v8798_v49  ;;  %5414 = vmatprep.subr.bf16.mxu0 %v8803_v50  ;;  %v8872_v49 = vld [vmem:[%s9358_s11 + $0x1c8] sm:$0xff]  }
 0x24c   : > { %5455 = vmatprep.subr.bf16.mxu1 %v8806_v51  ;;  %v8873_v50 = vld [vmem:[%s9358_s11 + $0x108] sm:$0xff]  }
 0x24d   : > { %v8874_v51 = vld [vmem:[%s9358_s11 + $0x188] sm:$0xff]  }
 0x24e   : > { %5415 = vmatpush1.bf16.msra.mxu0 %v8801_v52  ;;  %v8875_v52 = vld [vmem:[%s9358_s11 + $0x150] sm:$0xff]  }
 0x24f   : > { %5456 = vmatpush1.bf16.msra.mxu1 %v8804_v53  ;;  %5416 = vmatprep.subr.bf16.mxu0 %v8809_v54  ;;  %v8876_v53 = vld [vmem:[%s9358_s11 + $0x1d0] sm:$0xff]   ;;  %v8879_v54 = vld [vmem:[%s9358_s11 + $0x158] sm:$0xff]  }
 0x250   : > { %5457 = vmatprep.subr.bf16.mxu1 %v8812_v55  ;;  %v8880_v55 = vld [vmem:[%s9358_s11 + $0x1d8] sm:$0xff]  }
 0x252   : > { %5417 = vmatpush1.bf16.msra.mxu0 %v8807_v56  ;;  %v8881_v56 = vld [vmem:[%s9358_s11 + $0x118] sm:$0xff]  }
 0x253   : > { %5458 = vmatpush1.bf16.msra.mxu1 %v8810_v57  ;;  %5418 = vmatprep.subr.bf16.mxu0 %v8815_v58  ;;  %v8884_v57 = vld [vmem:[%s9358_s11 + $0x1e0] sm:$0xff]  }
 0x254   : > { %5459 = vmatprep.subr.bf16.mxu1 %v8818_v59  ;;  %v8885_v58 = vld [vmem:[%s9358_s11 + $0x120] sm:$0xff]  }
 0x255   : > { %v8886_v59 = vld [vmem:[%s9358_s11 + $0x1a0] sm:$0xff]  }
 0x256   : > { %5419 = vmatpush1.bf16.msra.mxu0 %v8813_v60  ;;  %v8887_v60 = vld [vmem:[%s9358_s11 + $0x168] sm:$0xff]  }
 0x257   : > { %5460 = vmatpush1.bf16.msra.mxu1 %v8816_v61  ;;  %5420 = vmatprep.subr.bf16.mxu0 %v8821_v62  ;;  %v8888_v61 = vld [vmem:[%s9358_s11 + $0x1e8] sm:$0xff]  }
 0x258   : > { %5461 = vmatprep.subr.bf16.mxu1 %v8824_v63  ;;  %v8889_v62 = vld [vmem:[%s9358_s11 + $0x128] sm:$0xff]  }
 0x259   : > { %v8890_v63 = vld [vmem:[%s9358_s11 + $0x1a8] sm:$0xff]  }
 0x25a   : > { %5421 = vmatpush1.bf16.msra.mxu0 %v8819_v2  ;;  %v8891_v2 = vld [vmem:[%s9358_s11 + $0x170] sm:$0xff]  }
 0x25b   : > { %5462 = vmatpush1.bf16.msra.mxu1 %v8822_v3  ;;  %5422 = vmatprep.subr.bf16.mxu0 %v8827_v4  ;;  %v8892_v3 = vld [vmem:[%s9358_s11 + $0x1f0] sm:$0xff]  }
 0x25c   : > { %5463 = vmatprep.subr.bf16.mxu1 %v8830_v5  ;;  %v8893_v4 = vld [vmem:[%s9358_s11 + $0x130] sm:$0xff]  }
 0x25d   : > { %v8894_v5 = vld [vmem:[%s9358_s11 + $0x1b0] sm:$0xff]  }
 0x25e   : > { %5423 = vmatpush1.bf16.msra.mxu0 %v8825_v6  ;;  %v8895_v6 = vld [vmem:[%s9358_s11 + $0x178] sm:$0xff]  }
 0x25f   : > { %5464 = vmatpush1.bf16.msra.mxu1 %v8828_v7  ;;  %8214 = vmatprep.subr.bf16.mxu0 %v8835_v8  ;;  %v8896_v7 = vld [vmem:[%s9358_s11 + $0x1f8] sm:$0xff]  }
 0x260   : > { %8236 = vmatprep.subr.bf16.mxu1 %v8836_v9  ;;  %v8897_v8 = vld [vmem:[%s9358_s11 + $0x138] sm:$0xff]  }
 0x261   : > { %5425 = vmatmul.mubr.bf16.vlgmr.msra.gmra.mrb[4].mxu0 %v11040_v11  ;;  %v8898_v9 = vld [vmem:[%s9358_s11 + $0x1b8] sm:$0xff]  }
 0x262   : > { %5466 = vmatmul.mubr.bf16.vlgmr.msra.gmra.mrb[4].mxu1 %v11044_v12  ;;  %8215 = vmatpush3.bf16.msra.mxu0 %v8837_v10 }
 0x263   : > { %8237 = vmatpush3.bf16.msra.mxu1 %v8838_v13  ;;  %8216 = vmatprep.subr.bf16.mxu0 %v8839_v14 }
 0x264   : > { %8238 = vmatprep.subr.bf16.mxu1 %v8840_v15  ;;  %6023 = vmatprep.mubr.bf16.mxu0 %v10924_v41  ;;  %v8851_v41 = vld [vmem:[%s9358_s11 + $0x60] sm:$0xff]  }
 0x265   : > { %6063 = vmatprep.mubr.bf16.mxu1 %v10929_v45  ;;  %v8852_v45 = vld [vmem:[%s9358_s11 + $0xe0] sm:$0xff]  }
 0x266   : > { %8217 = vmatpush3.bf16.msra.mxu0 %v8841_v16 }
 0x267   : > { %8239 = vmatpush3.bf16.msra.mxu1 %v8842_v17  ;;  %8218 = vmatprep.subr.bf16.mxu0 %v8843_v18 }
 0x268   : > { %8240 = vmatprep.subr.bf16.mxu1 %v8844_v19 }
 0x26a   : > { %8219 = vmatpush3.bf16.msra.mxu0 %v8845_v20 }
 0x26b   : > { %8241 = vmatpush3.bf16.msra.mxu1 %v8846_v21  ;;  %8220 = vmatprep.subr.bf16.mxu0 %v8847_v22 }
 0x26c   : > { %8242 = vmatprep.subr.bf16.mxu1 %v8848_v23 }
 0x26e   : > { %8221 = vmatpush3.bf16.msra.mxu0 %v8849_v24 }
 0x26f   : > { %8243 = vmatpush3.bf16.msra.mxu1 %v8850_v25  ;;  %8222 = vmatprep.subr.bf16.mxu0 %v8851_v41 }
 0x270   : > { %8244 = vmatprep.subr.bf16.mxu1 %v8852_v45  ;;  %v4512_v45 = vld [vmem:[#allocation2] sm:$0xff] }
 0x272   : > { %8223 = vmatpush3.bf16.msra.mxu0 %v8853_v26 }
 0x273   : > { %8245 = vmatpush3.bf16.msra.mxu1 %v8854_v27  ;;  %8224 = vmatprep.subr.bf16.mxu0 %v8855_v28  ;;  %v4513_v28 = vld [vmem:[#allocation2 + $0x8] sm:$0xff] }
 0x274   : > { %8246 = vmatprep.subr.bf16.mxu1 %v8856_v29 }
 0x276   : > { %8225 = vmatpush3.bf16.msra.mxu0 %v8857_v32 }
 0x277   : > { %8247 = vmatpush3.bf16.msra.mxu1 %v8858_v33  ;;  %8226 = vmatprep.subr.bf16.mxu0 %v8859_v34 }
 0x278   : > { %8248 = vmatprep.subr.bf16.mxu1 %v8860_v35 }
 0x27a   : > { %8227 = vmatpush3.bf16.msra.mxu0 %v8861_v36 }
 0x27b   : > { %8249 = vmatpush3.bf16.msra.mxu1 %v8862_v37  ;;  %8228 = vmatprep.subr.bf16.mxu0 %v8863_v38 }
 0x27c   : > { %8250 = vmatprep.subr.bf16.mxu1 %v8864_v39 }
 0x27e   : > { %8229 = vmatpush3.bf16.msra.mxu0 %v8865_v40 }
 0x27f   : > { %8251 = vmatpush3.bf16.msra.mxu1 %v8866_v42  ;;  %8258 = vmatprep.subr.bf16.mxu0 %v8867_v43 }
 0x280   : > { %8280 = vmatprep.subr.bf16.mxu1 %v8868_v44 }
 0x281   : > { %6024 = vmatmul.mubr.bf16.vlgmr.msra.gmra.mrb[8].mxu0 %v10951_v0  ;;  %v8877_v0 = vld [vmem:[%s9358_s11 + $0x110] sm:$0xff]  }
 0x282   : > { %6064 = vmatmul.mubr.bf16.vlgmr.msra.gmra.mrb[8].mxu1 %v10953_v1  ;;  %8259 = vmatpush3.bf16.msra.mxu0 %v8869_v46  ;;  %v8878_v1 = vld [vmem:[%s9358_s11 + $0x190] sm:$0xff]  }
 0x283   : > { %8281 = vmatpush3.bf16.msra.mxu1 %v8870_v47  ;;  %8260 = vmatprep.subr.bf16.mxu0 %v8871_v48 }
 0x284   : > { %8282 = vmatprep.subr.bf16.mxu1 %v8872_v49  ;;  %6103 = vmatprep.mubr.bf16.mxu0 %v10991_v30  ;;  %v8882_v30 = vld [vmem:[%s9358_s11 + $0x198] sm:$0xff]  }
 0x285   : > { %6143 = vmatprep.mubr.bf16.mxu1 %v10995_v31  ;;  %v8883_v31 = vld [vmem:[%s9358_s11 + $0x160] sm:$0xff]  }
 0x286   : > { %8261 = vmatpush3.bf16.msra.mxu0 %v8873_v50 }
 0x287   : > { %8283 = vmatpush3.bf16.msra.mxu1 %v8874_v51  ;;  %8262 = vmatprep.subr.bf16.mxu0 %v8875_v52 }
 0x288   : > { %8284 = vmatprep.subr.bf16.mxu1 %v8876_v53 }
 0x28a   : > { %8263 = vmatpush3.bf16.msra.mxu0 %v8877_v0 }
 0x28b   : > { %8285 = vmatpush3.bf16.msra.mxu1 %v8878_v1  ;;  %8264 = vmatprep.subr.bf16.mxu0 %v8879_v54 }
 0x28c   : > { %8286 = vmatprep.subr.bf16.mxu1 %v8880_v55 }
 0x28e   : > { %8265 = vmatpush3.bf16.msra.mxu0 %v8881_v56 }
 0x28f   : > { %8287 = vmatpush3.bf16.msra.mxu1 %v8882_v30  ;;  %8266 = vmatprep.subr.bf16.mxu0 %v8883_v31  ;;  %v5478_v31 = vld [vmem:[#allocation3] sm:$0xff] }
 0x290   : > { %8288 = vmatprep.subr.bf16.mxu1 %v8884_v57 }
 0x292   : > { %8267 = vmatpush3.bf16.msra.mxu0 %v8885_v58 }
 0x293   : > { %8289 = vmatpush3.bf16.msra.mxu1 %v8886_v59  ;;  %8268 = vmatprep.subr.bf16.mxu0 %v8887_v60  ;;  %v6192_v59 = vld [vmem:[#allocation11 + $0x120] sm:$0xff] (!%p8200_p0)  ;;  %v6193_v60 = vld [vmem:[#allocation11 + $0x130] sm:$0xff] (!%p8200_p0) }
 0x294   : > { %8290 = vmatprep.subr.bf16.mxu1 %v8888_v61  ;;  %v6176_v61 = vld [vmem:[#allocation11 + $0x20] sm:$0xff] (!%p8200_p0) }
 0x296   : > { %8269 = vmatpush3.bf16.msra.mxu0 %v8889_v62  ;;  %v6162_v62 = vlaneseq (!%p8200_p0) }
 0x297   : > { %8291 = vmatpush3.bf16.msra.mxu1 %v8890_v63  ;;  %8270 = vmatprep.subr.bf16.mxu0 %v8891_v2  ;;  %v8468_v63 = vpack.c.bf16 (!%p8200_p0), %v6193_v60, %v6192_v59  ;;  %v6177_v2 = vld [vmem:[#allocation11 + $0x30] sm:$0xff] (!%p8200_p0)  ;;  %v6287_v60 = vld [vmem:[#allocation11 + $0x2a0] sm:$0xff] (!%p8200_p0) }
 0x298   : > { %8292 = vmatprep.subr.bf16.mxu1 %v8892_v3  ;;  %v6194_v3 = vld [vmem:[#allocation11 + $0x140] sm:$0xff] (!%p8200_p0)  ;;  %v6286_v59 = vld [vmem:[#allocation11 + $0x290] sm:$0xff] (!%p8200_p0) }
 0x29a   : > { %8271 = vmatpush3.bf16.msra.mxu0 %v8893_v4  ;;  %v6195_v4 = vld [vmem:[#allocation11 + $0x150] sm:$0xff] (!%p8200_p0) }
 0x29b   : > { %8293 = vmatpush3.bf16.msra.mxu1 %v8894_v5  ;;  %8272 = vmatprep.subr.bf16.mxu0 %v8895_v6  ;;  %v9104_v5 = vmov (!%p8200_p0), 0.0|0.0   ;;  %v9106_v6 = vmov (!%p8200_p0), 0.0  }
 0x29c   : > { %8294 = vmatprep.subr.bf16.mxu1 %v8896_v7  ;;  %v8470_v7 = vpack.c.bf16 (!%p8200_p0), %v6177_v2, %v6176_v61  ;;  %v6190_v2 = vld [vmem:[#allocation11 + $0x100] sm:$0xff] (!%p8200_p0) }
 0x29e   : > { %8273 = vmatpush3.bf16.msra.mxu0 %v8897_v8  ;;  %v8472_v8 = vpack.c.bf16 (!%p8200_p0), %v6195_v4, %v6194_v3  ;;  %v6191_v3 = vld [vmem:[#allocation11 + $0x110] sm:$0xff] (!%p8200_p0)  ;;  %v8510_v4 = vpack.c.bf16 (!%p8200_p0), %v6287_v60, %v6286_v59  ;;  %v6533_v59 = vld [vmem:[#allocation11 + $0x420] sm:$0xff] (!%p8200_p0) }
 0x29f   : > { %8295 = vmatpush3.bf16.msra.mxu1 %v8898_v9  ;;  %v6178_v9 = vld [vmem:[#allocation11 + $0x40] sm:$0xff] (!%p8200_p0)  ;;  %8469 = vmatprep.subr.bf16.mxu0 (!%p8200_p0), %v8468_v63  ;;  %v6534_v60 = vld [vmem:[#allocation11 + $0x430] sm:$0xff] (!%p8200_p0) }
 0x2a0   : > { %8500 = vmatprep.subr.bf16.mxu1 (!%p8200_p0), %v9104_v5 }
 0x2a1   : > { %6104 = vmatmul.mubr.bf16.vlgmr.msra.gmra.mrb[12].mxu0 %v11040_v11 }
 0x2a2   : > { %6144 = vmatmul.mubr.bf16.vlgmr.msra.gmra.mrb[12].mxu1 %v11044_v12  ;;  %8471 = vmatpush3.bf16.msra.mxu0 (!%p8200_p0), %v8470_v7 }
 0x2a3   : > { %8411 = vmatprep.mubr.msk.f32.mxu1 (!%p8200_p0), %vm9105_vm2, %v9106_v6  ;;  %8473 = vmatprep.subr.bf16.mxu0 (!%p8200_p0), %v8472_v8  ;;  %v6288_v8 = vld [vmem:[#allocation11 + $0x2b0] sm:$0xff] (!%p8200_p0) }
 0x2f4   : > { %v5344_v10 = vpop.f32.mrb[0].mxu0 }
 0x2f5   : > { %v5385_v13 = vpop.f32.mrb[0].mxu1  ;;  %v5346_v15 = vpop.f32.mrb[1].mxu0 }
 0x2f6   : > { %v5386_v14 = vadd.f32 %v5385_v13, %v5344_v10  ;;  %v5387_v16 = vpop.f32.mrb[1].mxu1  ;;  %v5348_v18 = vpop.f32.mrb[2].mxu0  ;;  %v6179_v10 = vld [vmem:[#allocation11 + $0x50] sm:$0xff] (!%p8200_p0)  ;;  %v6196_v13 = vld [vmem:[#allocation11 + $0x160] sm:$0xff] (!%p8200_p0) }
 0x2f7   : > { %v5388_v17 = vadd.f32 %v5387_v16, %v5346_v15  ;;  %v5389_v19 = vpop.f32.mrb[2].mxu1  ;;  %v5349_v20 = vpop.f32.mrb[3].mxu0  ;;  %v8474_v15 = vpack.c.bf16 (!%p8200_p0), %v6179_v10, %v6178_v9  ;;  %v11122_v16 = vshrl.u32 (!%p8200_p0), %v6162_v62, 7  ;;  %v6180_v18 = vld [vmem:[#allocation11 + $0x60] sm:$0xff] (!%p8200_p0)  ;;  %v8498_v10 = vpack.c.bf16 (!%p8200_p0), %v6191_v3, %v6190_v2 }
 0x2f8   : > { %v5390_v21 = vpop.f32.mrb[3].mxu1  ;;  %v6181_v19 = vld [vmem:[#allocation11 + $0x70] sm:$0xff] (!%p8200_p0)  ;;  %v6198_v20 = vld [vmem:[#allocation11 + $0x180] sm:$0xff] (!%p8200_p0) }
 0x2f9   : > { %v6199_v21 = vld [vmem:[#allocation11 + $0x190] sm:$0xff] (!%p8200_p0)  ;;  %8475 = vmatpush3.bf16.msra.mxu0 (!%p8200_p0), %v8474_v15  ;;  %v6289_v9 = vld [vmem:[#allocation11 + $0x2c0] sm:$0xff] (!%p8200_p0) }
 0x2fa   : > { %v8513_v15 = vpack.c.bf16 (!%p8200_p0), %v6289_v9, %v6288_v8  ;;  %v6537_v9 = vld [vmem:[#allocation11 + $0x460] sm:$0xff] (!%p8200_p0) }
 0x334   : > { %v5426_v22 = vpop.f32.mrb[4].mxu0 }
 0x335   : > { %v5467_v23 = vpop.f32.mrb[4].mxu1  ;;  %v5427_v24 = vadd.f32 %v5426_v22, %v5386_v14  ;;  %v5428_v25 = vpop.f32.mrb[5].mxu0  ;;  %v6197_v14 = vld [vmem:[#allocation11 + $0x170] sm:$0xff] (!%p8200_p0)  ;;  %v8478_v22 = vpack.c.bf16 (!%p8200_p0), %v6181_v19, %v6180_v18  ;;  %v6291_v19 = vld [vmem:[#allocation11 + $0x2e0] sm:$0xff] (!%p8200_p0) }
 0x336   : > { %v5469_v41 = vpop.f32.mrb[5].mxu1  ;;  %v5429_v26 = vadd.f32 %v5428_v25, %v5388_v17  ;;  %v5430_v11 = vpop.f32.mrb[6].mxu0  ;;  %v8476_v17 = vpack.c.bf16 (!%p8200_p0), %v6197_v14, %v6196_v13  ;;  %v6182_v25 = vld [vmem:[#allocation11 + $0x80] sm:$0xff] (!%p8200_p0)  ;;  %v6372_v14 = vld [vmem:[#allocation11 + $0x350] sm:$0xff] (!%p8200_p0) }
 0x337   : > { %v5471_v27 = vpop.f32.mrb[6].mxu1  ;;  %v5468_v12 = vadd.f32 %v5467_v23, %v5427_v24  ;;  %v5431_v29 = vpop.f32.mrb[7].mxu0  ;;  %v11125_v23 = vsub.s32 (!%p8200_p0), 1, %v11122_v16  ;;  %v8480_v24 = vpack.c.bf16 (!%p8200_p0), %v6199_v21, %v6198_v20  ;;  %v6371_v13 = vld [vmem:[#allocation11 + $0x340] sm:$0xff] (!%p8200_p0)  ;;  %v6290_v18 = vld [vmem:[#allocation11 + $0x2d0] sm:$0xff] (!%p8200_p0) }
 0x338   : > { %v5472_v32 = vpop.f32.mrb[7].mxu1  ;;  %v5470_v33 = vadd.f32 %v5469_v41, %v5429_v26  ;;  %8477 = vmatprep.subr.bf16.mxu0 (!%p8200_p0), %v8476_v17  ;;  %v6183_v41 = vld [vmem:[#allocation11 + $0x90] sm:$0xff] (!%p8200_p0)  ;;  %v6160_v27 = vld [vmem:[#allocation11] ss:$8 sm:$0x3] (!%p8200_p0)  ;;  %v8525_v20 = vpack.c.bf16 (!%p8200_p0), %v6372_v14, %v6371_v13 }
 0x339   : > { %v5474_v34 = vadd.f32 %v5468_v12, %v4512_v45  ;;  %v6200_v45 = vld [vmem:[#allocation11 + $0x1a0] sm:$0xff] (!%p8200_p0)  ;;  %v6201_v26 = vld [vmem:[#allocation11 + $0x1b0] sm:$0xff] (!%p8200_p0)  ;;  %8479 = vmatpush3.bf16.msra.mxu0 (!%p8200_p0), %v8478_v22  ;;  %v8482_v12 = vpack.c.bf16 (!%p8200_p0), %v6183_v41, %v6182_v25 }
 0x33a   : > { %v5475_v35 = vadd.f32 %v5470_v33, %v4513_v28  ;;  %v6169_v28 = vrot.slane (!%p8200_p0), %v6160_v27, %v11125_v23  ;;  %8481 = vmatprep.subr.bf16.mxu0 (!%p8200_p0), %v8480_v24  ;;  %v8484_v29 = vpack.c.bf16 (!%p8200_p0), %v6201_v26, %v6200_v45  ;;  %v6184_v32 = vld [vmem:[#allocation11 + $0xa0] sm:$0xff] (!%p8200_p0)  ;;  %v6185_v33 = vld [vmem:[#allocation11 + $0xb0] sm:$0xff] (!%p8200_p0)  ;;  %v8516_v24 = vpack.c.bf16 (!%p8200_p0), %v6291_v19, %v6290_v18 }
 0x33b   : > { %5476 = vst [vmem:[#allocation2] sm:$0xff] %v5474_v34  ;;  %v6202_v34 = vld [vmem:[#allocation11 + $0x1c0] sm:$0xff] (!%p8200_p0)  ;;  %v6374_v22 = vld [vmem:[#allocation11 + $0x370] sm:$0xff] (!%p8200_p0) }
 0x33c   : > { %5477 = vst [vmem:[#allocation2 + $0x8] sm:$0xff] %v5475_v35  ;;  %v6203_v35 = vld [vmem:[#allocation11 + $0x1d0] sm:$0xff] (!%p8200_p0)  ;;  %v6373_v21 = vld [vmem:[#allocation11 + $0x360] sm:$0xff] (!%p8200_p0) }
 0x33d   : > { %8483 = vmatpush3.bf16.msra.mxu0 (!%p8200_p0), %v8482_v12  ;;  %v8528_v25 = vpack.c.bf16 (!%p8200_p0), %v6374_v22, %v6373_v21  ;;  %v6375_v41 = vld [vmem:[#allocation11 + $0x380] sm:$0xff] (!%p8200_p0)  ;;  %v6376_v45 = vld [vmem:[#allocation11 + $0x390] sm:$0xff] (!%p8200_p0) }
 0x33e   : > { %8485 = vmatprep.subr.bf16.mxu0 (!%p8200_p0), %v8484_v29  ;;  %v8531_v26 = vpack.c.bf16 (!%p8200_p0), %v6376_v45, %v6375_v41  ;;  %v6377_v12 = vld [vmem:[#allocation11 + $0x3a0] sm:$0xff] (!%p8200_p0)  ;;  %v6296_v18 = vld [vmem:[#allocation11 + $0x330] ss:$0 sm:$0xff] (!%p8200_p0) }
 0x33f   : > { %v6539_v14 = vld [vmem:[#allocation11 + $0x480] sm:$0xff] (!%p8200_p0)  ;;  %v6693_v22 = vld [vmem:[#allocation11 + $0x4b0] ss:$0 sm:$0xff] (!%p8200_p0) }
 0x342   : > { %v6158_v62 = vld [vmem:[#allocation2] sm:$0xff] (!%p8200_p0) }
 0x343   : > { %v6159_v11 = vld [vmem:[#allocation2 + $0x8] sm:$0xff] (!%p8200_p0) }
 0x354   : > { %v8230_v36 = vpop.f32.mrb[8].mxu0 }
 0x355   : > { %v8252_v37 = vpop.f32.mrb[8].mxu1  ;;  %v8231_v38 = vpop.f32.mrb[9].mxu0 }
 0x356   : > { %v8253_v39 = vpop.f32.mrb[9].mxu1  ;;  %v8232_v40 = vadd.f32 %v8231_v38, %v8230_v36  ;;  %v8233_v43 = vpop.f32.mrb[10].mxu0  ;;  %v6173_v36 = vadd.f32 (!%p8200_p0), %v6169_v28, %v6159_v11  ;;  %v6281_v38 = vld [vmem:[#allocation11 + $0x240] sm:$0xff] (!%p8200_p0)  ;;  %v6378_v28 = vld [vmem:[#allocation11 + $0x3b0] sm:$0xff] (!%p8200_p0) }
 0x357   : > { %v8254_v42 = vadd.f32 %v8253_v39, %v8252_v37  ;;  %v8255_v44 = vpop.f32.mrb[10].mxu1  ;;  %v8234_v46 = vpop.f32.mrb[11].mxu0  ;;  %v6280_v37 = vld [vmem:[#allocation11 + $0x230] sm:$0xff] (!%p8200_p0) }
 0x358   : > { %v8256_v47 = vpop.f32.mrb[11].mxu1  ;;  %v6282_v39 = vld [vmem:[#allocation11 + $0x250] sm:$0xff] (!%p8200_p0)  ;;  %v8501_v43 = vpack.c.bf16 (!%p8200_p0), %v6281_v38, %v6280_v37  ;;  %v6283_v44 = vld [vmem:[#allocation11 + $0x260] sm:$0xff] (!%p8200_p0)  ;;  %v8488_v46 = vpack.c.bf16 (!%p8200_p0), %v6203_v35, %v6202_v34 }
 0x359   : > { %v6066_v48 = vadd.f32 %v8254_v42, %v8232_v40  ;;  %v8486_v40 = vpack.c.bf16 (!%p8200_p0), %v6185_v33, %v6184_v32  ;;  %v6175_v42 = vmax.f32 (!%p8200_p0), %v6173_v36, 0.0  ;;  %v6186_v47 = vld [vmem:[#allocation11 + $0xc0] sm:$0xff] (!%p8200_p0)  ;;  %v8534_v32 = vpack.c.bf16 (!%p8200_p0), %v6378_v28, %v6377_v12  ;;  %v6292_v34 = vld [vmem:[#allocation11 + $0x2f0] sm:$0xff] (!%p8200_p0) }
 0x35a   : > { %8502 = vmatpush3.bf16.msra.mxu1 (!%p8200_p0), %v8501_v43  ;;  %v6293_v35 = vld [vmem:[#allocation11 + $0x300] sm:$0xff] (!%p8200_p0)  ;;  %v6294_v37 = vld [vmem:[#allocation11 + $0x310] sm:$0xff] (!%p8200_p0) }
 0x35b   : > { %6273 = vmatprep.mubr.f32.mxu0 (!%p8200_p0), %v6175_v42  ;;  %8503 = vmatprep.subr.bf16.mxu1 (!%p8200_p0), %v9104_v5  ;;  %v8519_v36 = vpack.c.bf16 (!%p8200_p0), %v6293_v35, %v6292_v34  ;;  %v6295_v38 = vld [vmem:[#allocation11 + $0x320] sm:$0xff] (!%p8200_p0) }
 0x35c   : > { %8487 = vmatpush3.bf16.msra.mxu0 (!%p8200_p0), %v8486_v40  ;;  %v6454_v40 = vld [vmem:[#allocation11 + $0x3d0] sm:$0xff] (!%p8200_p0)  ;;  %v6455_v42 = vld [vmem:[#allocation11 + $0x3e0] sm:$0xff] (!%p8200_p0) }
 0x35d   : > { %8489 = vmatprep.subr.bf16.mxu0 (!%p8200_p0), %v8488_v46  ;;  %v8537_v43 = vpack.c.bf16 (!%p8200_p0), %v6455_v42, %v6454_v40  ;;  %v6457_v46 = vld [vmem:[#allocation11 + $0x400] sm:$0xff] (!%p8200_p0) }
 0x374   : > { %v8274_v49 = vpop.f32.mrb[12].mxu0 }
 0x375   : > { %v8296_v50 = vpop.f32.mrb[12].mxu1  ;;  %v8275_v51 = vpop.f32.mrb[13].mxu0 }
 0x376   : > { %v8297_v52 = vpop.f32.mrb[13].mxu1  ;;  %v8276_v53 = vadd.f32 %v8275_v51, %v8274_v49  ;;  %v8277_v1 = vpop.f32.mrb[14].mxu0  ;;  %v6204_v49 = vld [vmem:[#allocation11 + $0x1e0] sm:$0xff] (!%p8200_p0)  ;;  %v8504_v51 = vpack.c.bf16 (!%p8200_p0), %v6283_v44, %v6282_v39  ;;  %v8522_v39 = vpack.c.bf16 (!%p8200_p0), %v6295_v38, %v6294_v37  ;;  %v6456_v44 = vld [vmem:[#allocation11 + $0x3f0] sm:$0xff] (!%p8200_p0) }
 0x377   : > { %v8298_v0 = vadd.f32 %v8297_v52, %v8296_v50  ;;  %v8299_v54 = vpop.f32.mrb[14].mxu1  ;;  %v8278_v55 = vpop.f32.mrb[15].mxu0  ;;  %v6205_v50 = vld [vmem:[#allocation11 + $0x1f0] sm:$0xff] (!%p8200_p0)  ;;  %v11129_v52 = vsub.s32 (!%p8200_p0), 0, %v11122_v16 }
 0x378   : > { %v8300_v56 = vpop.f32.mrb[15].mxu1  ;;  %v6106_v30 = vadd.f32 %v8276_v53, %v6066_v48  ;;  %6157 = sbr.rel (%p8200_p0) target bundleno = 2056 (0x808), region = 112  ;;  %v6187_v48 = vld [vmem:[#allocation11 + $0xd0] sm:$0xff] (!%p8200_p0)  ;;  %v8492_v54 = vpack.c.bf16 (!%p8200_p0), %v6205_v50, %v6204_v49  ;;  %v6188_v55 = vld [vmem:[#allocation11 + $0xe0] sm:$0xff] (!%p8200_p0)  ;;  %8505 = vmatpush3.bf16.msra.mxu1 (!%p8200_p0), %v8504_v51 }
 0x379   : > { %v6284_v53 = vld [vmem:[#allocation11 + $0x270] sm:$0xff] (!%p8200_p0)  ;;  %v8490_v1 = vpack.c.bf16 (!%p8200_p0), %v6187_v48, %v6186_v47  ;;  %8506 = vmatprep.subr.bf16.mxu1 (!%p8200_p0), %v9104_v5  ;;  %v8540_v47 = vpack.c.bf16 (!%p8200_p0), %v6457_v46, %v6456_v44  ;;  %v6208_v49 = vld [vmem:[#allocation11 + $0x220] ss:$0 sm:$0xff] (!%p8200_p0) }
 0x37a   : > { %v6146_v57 = vadd.f32 %v8298_v0, %v6106_v30  ;;  %v6285_v0 = vld [vmem:[#allocation11 + $0x280] sm:$0xff] (!%p8200_p0)  ;;  %v6189_v56 = vld [vmem:[#allocation11 + $0xf0] sm:$0xff] (!%p8200_p0) }
 0x37b   : > { %v6206_v30 = vld [vmem:[#allocation11 + $0x200] sm:$0xff] (!%p8200_p0)  ;;  %8491 = vmatpush3.bf16.msra.mxu0 (!%p8200_p0), %v8490_v1  ;;  %v8494_v61 = vpack.c.bf16 (!%p8200_p0), %v6189_v56, %v6188_v55 }
 0x37c   : > { %v6151_v58 = vadd.f32 %v6146_v57, %v5478_v31  ;;  %v6207_v31 = vld [vmem:[#allocation11 + $0x210] sm:$0xff] (!%p8200_p0)  ;;  %v8507_v57 = vpack.c.bf16 (!%p8200_p0), %v6285_v0, %v6284_v53  ;;  %8493 = vmatprep.subr.bf16.mxu0 (!%p8200_p0), %v8492_v54  ;;  %v6379_v1 = vld [vmem:[#allocation11 + $0x3c0] ss:$0 sm:$0xff] (!%p8200_p0) }
 0x37d   : > { %v8496_v63 = vpack.c.bf16 (!%p8200_p0), %v6207_v31, %v6206_v30  ;;  %v6541_v31 = vld [vmem:[#allocation11 + $0x4a0] sm:$0xf] (!%p8200_p0) }
 0x37e   : > { %6153 = vst.msk [vmem:[#allocation3] sm:$0xff] %vm6152_vm1, %v6151_v58  ;;  %v6165_v58 = vrot.slane (!%p8200_p0), %v6160_v27, %v11129_v52  ;;  %8508 = vmatpush3.bf16.msra.mxu1 (!%p8200_p0), %v8507_v57  ;;  %v6368_v27 = vld [vmem:[#allocation11 + $0x10] ss:$0 sm:$0xff] (!%p8200_p0) }
 0x37f   : > { %8509 = vmatprep.subr.bf16.mxu1 %v9104_v5  ;;  %8495 = vmatpush3.bf16.msra.mxu0 %v8494_v61  ;;  %v6458_v61 = vld [vmem:[#allocation11 + $0x410] ss:$0 sm:$0xff] }
 0x380   : > { %v6172_v7 = vadd.f32 %v6165_v58, %v6158_v62  ;;  %8497 = vmatprep.subr.bf16.mxu0 %v8496_v63  ;;  %v8543_v63 = vpack.c.bf16 %v6534_v60, %v6533_v59 }
 0x382   : > { %8511 = vmatpush3.bf16.msra.mxu1 %v8510_v4  ;;  %v6174_v17 = vmax.f32 %v6172_v7, 0.0  ;;  %v6535_v4 = vld [vmem:[#allocation11 + $0x440] sm:$0xff]  ;;  %v6536_v7 = vld [vmem:[#allocation11 + $0x450] sm:$0xff] }
 0x383   : > { %8512 = vmatprep.subr.bf16.mxu1 %v9104_v5  ;;  %8499 = vmatpush3.bf16.msra.mxu0 %v8498_v10  ;;  %v8546_v8 = vpack.c.bf16 %v6536_v7, %v6535_v4  ;;  %v6538_v10 = vld [vmem:[#allocation11 + $0x470] sm:$0xff] }
 0x384   : > { %8524 = vmatprep.subr.bf16.mxu0 %v9104_v5  ;;  %v8549_v13 = vpack.c.bf16 %v6538_v10, %v6537_v9 }
 0x385   : > { %v6367_v11 = vld [vmem:[#allocation3] sm:$0xff] }
 0x386   : > { %8514 = vmatpush3.bf16.msra.mxu1 %v8513_v15  ;;  %6274 = vmatmul.mubr.f32.vlgmr.msra.gmra.mrb[0].mxu0 %v6174_v17  ;;  %v6369_v29 = vadd.f32 %v6368_v27, %v6367_v11  ;;  %v6540_v15 = vld [vmem:[#allocation11 + $0x490] sm:$0xff] }
 0x387   : > { %8515 = vmatprep.subr.bf16.mxu1 %v9104_v5  ;;  %8526 = vmatpush3.bf16.msra.mxu0 %v8525_v20  ;;  %v8552_v17 = vpack.c.bf16 %v6540_v15, %v6539_v14 }
 0x388   : > { %8430 = vmatprep.mubr.msk.f32.mxu0 %vm9105_vm2, %v9106_v6  ;;  %8527 = vmatprep.subr.bf16.mxu0 %v9104_v5  ;;  %v6370_v33 = vmax.f32 %v6369_v29, 0.0 }
 0x38a   : > { %8517 = vmatpush3.bf16.msra.mxu1 %v8516_v24 }
 0x38b   : > { %8518 = vmatprep.subr.bf16.mxu1 %v9104_v5  ;;  %8529 = vmatpush3.bf16.msra.mxu0 %v8528_v25 }
 0x38c   : > { %8530 = vmatprep.subr.bf16.mxu0 %v9104_v5 }
 0x38e   : > { %8520 = vmatpush3.bf16.msra.mxu1 %v8519_v36 }
 0x38f   : > { %8532 = vmatpush3.bf16.msra.mxu0 %v8531_v26  ;;  %8521 = vmatprep.subr.bf16.mxu1 %v9104_v5 }
 0x390   : > { %8533 = vmatprep.subr.bf16.mxu0 %v9104_v5 }
 0x392   : > { %8523 = vmatpush3.bf16.msra.mxu1 %v8522_v39 }
 0x393   : > { %8535 = vmatpush3.bf16.msra.mxu0 %v8534_v32  ;;  %8444 = vmatprep.subr.mxu1 %v9106_v6 }
 0x394   : > { %8536 = vmatprep.subr.bf16.mxu0 %v9104_v5 }
 0x396   : > { %8431 = vmatmul.mubr.msk.f32.vlgmr.msra.gmra.mrb[2].mxu0 %vm6152_vm1, %v6370_v33 }
 0x397   : > { %8441 = vmatprep.mubr.msk.f32.mxu0 %vm9105_vm2, %v9106_v6  ;;  %8538 = vmatpush3.bf16.msra.mxu0 %v8537_v43 }
 0x398   : > { %8539 = vmatprep.subr.bf16.mxu0 %v9104_v5 }
 0x39b   : > { %8541 = vmatpush3.bf16.msra.mxu0 %v8540_v47 }
 0x459   : > { %v8334_v48 = vpop.f32.mrb[0].mxu0 }
 0x45a   : > { %v8335_v50 = vpop.f32.mrb[1].mxu0 }
 0x45b   : > { %v8336_v51 = vadd.f32 %v8335_v50, %v8334_v48 }
 0x45d   : > { %v6276_v53 = vadd.f32 %v8336_v51, %v6208_v49 }
 0x45f   : > { %v6279_v0 = vmax.f32 %v6276_v53, 0.0 }
 0x461   : > { %8412 = vmatmul.mubr.f32.vlgmr.msra.gmra.mrb[0].mxu1 %v6279_v0 }
 0x462   : > { %8446 = vmatprep.mubr.msk.f32.mxu1 %vm9105_vm2, %v9106_v6  ;;  %8445 = vmatpush3.msk.msra.mxu1 %vm6546_vm4, %v6541_v31 }
 0x463   : > { %8542 = vmatprep.subr.bf16.mxu1 %v9104_v5 }
 0x469   : > { %v6449_v54 = vpop.f32.mrb[2].mxu0 }
 0x46a   : > { %v6450_v55 = vadd.f32 %v6449_v54, %v6379_v1  ;;  %v8432_v56 = vpop.f32.mrb[3].mxu0 }
 0x46c   : > { %v6453_v30 = vmax.f32 %v6450_v55, 0.0 }
 0x46e   : > { %8442 = vmatmul.mubr.msk.f32.vlgmr.msra.gmra.mrb[4].mxu0 %vm6459_vm3, %v6453_v30 }
 0x534   : > { %v6363_v57 = vpop.f32.mrb[0].mxu1 }
 0x535   : > { %v8413_v58 = vpop.f32.mrb[1].mxu1  ;;  %v6364_v19 = vadd.f32 %v6363_v57, %v6296_v18 }
 0x541   : > { %v6529_v62 = vpop.f32.mrb[4].mxu0 }
 0x542   : > { %v6530_v2 = vadd.f32 %v6529_v62, %v6458_v61  ;;  %v8443_v3 = vpop.f32.mrb[5].mxu0 }
 0x544   : > { %8447 = vmatmul.mubr.msk.f32.vlgmr.msra.gmra.mrb[2].mxu1 %vm6542_vm5, %v6530_v2 }
 0x545   : > { %8544 = vmatpush3.bf16.msra.mxu1 %v8543_v63  ;;  %8465 = vmatprep.mubr.msk.f32.mxu1 %vm9105_vm2, %v9106_v6 }
 0x546   : > { %8545 = vmatprep.subr.bf16.mxu1 %v9104_v5 }
 0x549   : > { %8547 = vmatpush3.bf16.msra.mxu1 %v8546_v8 }
 0x54a   : > { %8548 = vmatprep.subr.bf16.mxu1 %v9104_v5 }
 0x54d   : > { %8550 = vmatpush3.bf16.msra.mxu1 %v8549_v13 }
 0x54e   : > { %8551 = vmatprep.subr.bf16.mxu1 %v9104_v5 }
 0x551   : > { %8553 = vmatpush3.bf16.msra.mxu1 %v8552_v17 }
 0x554   : > { %8466 = vmatmul.mubr.msk.f32.vlgmr.msra.gmra.mrb[4].mxu1 %vm6152_vm1, %v6364_v19 }
 0x617   : > { %v6616_v6 = vpop.f32.mrb[2].mxu1 }
 0x618   : > { %v8448_v20 = vpop.f32.mrb[3].mxu1 }
 0x627   : > { %v6689_v21 = vpop.f32.mrb[4].mxu1 }
 0x628   : > { %v6690_v24 = vadd.f32 %v6689_v21, %v6616_v6  ;;  %v8467_v25 = vpop.f32.mrb[5].mxu1 }
 0x62a   : > { %v11160_v41 = vadd.f32 %v6693_v22, %v6690_v24 }
 0x62c   : > { %v6695_v45 = vmax.f32 %v11160_v41, 0.0 }
 0x62d   : > { %9073 = dma.done.wait [#allocation5], 32768 }
 0x62e   : > { %9074 = vsyncadd [#allocation5], 4294934528  ;;  %v9107_v26 = vmov 0   ;;  %v6702_v5 = vld [vmem:[#allocation4 + $0x8] sm:$0xff]  ;;  %v6704_v11 = vld [vmem:[#allocation4 + $0x18] sm:$0xff]  ;;  %v11168_v59 = vpack.c.bf16 %v6695_v45, %v6695_v45 }
 0x62f   : > { %7157 = vmatprep.mubr.bf16.mxu0 %v9107_v26  ;;  %7198 = vmatprep.mubr.bf16.mxu1 %v9107_v26  ;;  %v6701_v27 = vld [vmem:[#allocation4] sm:$0xff]  ;;  %v6703_v12 = vld [vmem:[#allocation4 + $0x10] sm:$0xff]  ;;  %v6734_v28 = vld [vmem:[#allocation4 + $0x108] sm:$0xff] }
 0x630   : > { %7125 = vmatprep.subr.bf16.mxu0 %v6702_v5  ;;  %7166 = vmatprep.subr.bf16.mxu1 %v6704_v11  ;;  %v6736_v29 = vld [vmem:[#allocation4 + $0x118] sm:$0xff]  ;;  %v6733_v32 = vld [vmem:[#allocation4 + $0x100] sm:$0xff]  ;;  %v6735_v33 = vld [vmem:[#allocation4 + $0x110] sm:$0xff] }
 0x631   : > { %7126 = vmatpush1.bf16.msra.mxu0 %v6701_v27  ;;  %7167 = vmatpush1.bf16.msra.mxu1 %v6703_v12  ;;  %v6766_v34 = vld [vmem:[#allocation4 + $0x208] sm:$0xff]  ;;  %v6768_v35 = vld [vmem:[#allocation4 + $0x218] sm:$0xff]  ;;  %v6765_v36 = vld [vmem:[#allocation4 + $0x200] sm:$0xff] }
 0x632   : > { %7127 = vmatprep.subr.bf16.mxu0 %v6734_v28  ;;  %7168 = vmatprep.subr.bf16.mxu1 %v6736_v29  ;;  %v6767_v37 = vld [vmem:[#allocation4 + $0x210] sm:$0xff]  ;;  %v6798_v38 = vld [vmem:[#allocation4 + $0x308] sm:$0xff]  ;;  %v6800_v39 = vld [vmem:[#allocation4 + $0x318] sm:$0xff] }
 0x633   : > { %v6797_v40 = vld [vmem:[#allocation4 + $0x300] sm:$0xff]  ;;  %v6799_v42 = vld [vmem:[#allocation4 + $0x310] sm:$0xff]  ;;  %v6830_v43 = vld [vmem:[#allocation4 + $0x408] sm:$0xff] }
 0x634   : > { %v6832_v44 = vld [vmem:[#allocation4 + $0x418] sm:$0xff]  ;;  %v6829_v46 = vld [vmem:[#allocation4 + $0x400] sm:$0xff]  ;;  %v6831_v47 = vld [vmem:[#allocation4 + $0x410] sm:$0xff] }
 0x635   : > { %7128 = vmatpush1.bf16.msra.mxu0 %v6733_v32  ;;  %7169 = vmatpush1.bf16.msra.mxu1 %v6735_v33  ;;  %v6862_v48 = vld [vmem:[#allocation4 + $0x508] sm:$0xff]  ;;  %v6864_v49 = vld [vmem:[#allocation4 + $0x518] sm:$0xff]  ;;  %v6861_v50 = vld [vmem:[#allocation4 + $0x500] sm:$0xff] }
 0x636   : > { %7129 = vmatprep.subr.bf16.mxu0 %v6766_v34  ;;  %7170 = vmatprep.subr.bf16.mxu1 %v6768_v35  ;;  %v6863_v51 = vld [vmem:[#allocation4 + $0x510] sm:$0xff]  ;;  %v6894_v53 = vld [vmem:[#allocation4 + $0x608] sm:$0xff]  ;;  %v6896_v0 = vld [vmem:[#allocation4 + $0x618] sm:$0xff] }
 0x637   : > { %v6893_v1 = vld [vmem:[#allocation4 + $0x600] sm:$0xff]  ;;  %v6895_v54 = vld [vmem:[#allocation4 + $0x610] sm:$0xff]  ;;  %v6926_v55 = vld [vmem:[#allocation4 + $0x708] sm:$0xff] }
 0x638   : > { %v6928_v56 = vld [vmem:[#allocation4 + $0x718] sm:$0xff]  ;;  %v6925_v30 = vld [vmem:[#allocation4 + $0x700] sm:$0xff]  ;;  %v6927_v31 = vld [vmem:[#allocation4 + $0x710] sm:$0xff] }
 0x639   : > { %7130 = vmatpush1.bf16.msra.mxu0 %v6765_v36  ;;  %7171 = vmatpush1.bf16.msra.mxu1 %v6767_v37  ;;  %v6706_v57 = vld [vmem:[#allocation4 + $0x28] sm:$0xff]  ;;  %v6708_v58 = vld [vmem:[#allocation4 + $0x38] sm:$0xff]  ;;  %v6705_v60 = vld [vmem:[#allocation4 + $0x20] sm:$0xff] }
 0x63a   : > { %7131 = vmatprep.subr.bf16.mxu0 %v6798_v38  ;;  %7172 = vmatprep.subr.bf16.mxu1 %v6800_v39  ;;  %v6707_v61 = vld [vmem:[#allocation4 + $0x30] sm:$0xff]  ;;  %v6738_v62 = vld [vmem:[#allocation4 + $0x128] sm:$0xff]  ;;  %v6740_v63 = vld [vmem:[#allocation4 + $0x138] sm:$0xff] }
 0x63b   : > { %v6737_v2 = vld [vmem:[#allocation4 + $0x120] sm:$0xff]  ;;  %v6739_v3 = vld [vmem:[#allocation4 + $0x130] sm:$0xff]  ;;  %v6770_v4 = vld [vmem:[#allocation4 + $0x228] sm:$0xff] }
 0x63c   : > { %v6772_v7 = vld [vmem:[#allocation4 + $0x238] sm:$0xff]  ;;  %v6769_v8 = vld [vmem:[#allocation4 + $0x220] sm:$0xff]  ;;  %v6771_v9 = vld [vmem:[#allocation4 + $0x230] sm:$0xff] }
 0x63d   : > { %7132 = vmatpush1.bf16.msra.mxu0 %v6797_v40  ;;  %7173 = vmatpush1.bf16.msra.mxu1 %v6799_v42  ;;  %v6802_v10 = vld [vmem:[#allocation4 + $0x328] sm:$0xff]  ;;  %v6804_v13 = vld [vmem:[#allocation4 + $0x338] sm:$0xff]  ;;  %v6801_v14 = vld [vmem:[#allocation4 + $0x320] sm:$0xff] }
 0x63e   : > { %7133 = vmatprep.subr.bf16.mxu0 %v6830_v43  ;;  %7174 = vmatprep.subr.bf16.mxu1 %v6832_v44  ;;  %v6803_v15 = vld [vmem:[#allocation4 + $0x330] sm:$0xff]  ;;  %v6834_v17 = vld [vmem:[#allocation4 + $0x428] sm:$0xff]  ;;  %v6836_v18 = vld [vmem:[#allocation4 + $0x438] sm:$0xff] }
 0x63f   : > { %v6833_v19 = vld [vmem:[#allocation4 + $0x420] sm:$0xff]  ;;  %v6835_v6 = vld [vmem:[#allocation4 + $0x430] sm:$0xff]  ;;  %v6866_v20 = vld [vmem:[#allocation4 + $0x528] sm:$0xff] }
 0x640   : > { %v6868_v21 = vld [vmem:[#allocation4 + $0x538] sm:$0xff]  ;;  %v6865_v22 = vld [vmem:[#allocation4 + $0x520] sm:$0xff]  ;;  %v6867_v24 = vld [vmem:[#allocation4 + $0x530] sm:$0xff] }
 0x641   : > { %7134 = vmatpush1.bf16.msra.mxu0 %v6829_v46  ;;  %7175 = vmatpush1.bf16.msra.mxu1 %v6831_v47  ;;  %v6898_v25 = vld [vmem:[#allocation4 + $0x628] sm:$0xff]  ;;  %v6900_v41 = vld [vmem:[#allocation4 + $0x638] sm:$0xff]  ;;  %v6897_v45 = vld [vmem:[#allocation4 + $0x620] sm:$0xff] }
 0x642   : > { %7135 = vmatprep.subr.bf16.mxu0 %v6862_v48  ;;  %7176 = vmatprep.subr.bf16.mxu1 %v6864_v49  ;;  %v6899_v5 = vld [vmem:[#allocation4 + $0x630] sm:$0xff]  ;;  %v6930_v11 = vld [vmem:[#allocation4 + $0x728] sm:$0xff]  ;;  %v6932_v27 = vld [vmem:[#allocation4 + $0x738] sm:$0xff] }
 0x643   : > { %v6929_v12 = vld [vmem:[#allocation4 + $0x720] sm:$0xff]  ;;  %v6931_v28 = vld [vmem:[#allocation4 + $0x730] sm:$0xff]  ;;  %v6710_v29 = vld [vmem:[#allocation4 + $0x48] sm:$0xff] }
 0x644   : > { %v6712_v32 = vld [vmem:[#allocation4 + $0x58] sm:$0xff]  ;;  %v6709_v33 = vld [vmem:[#allocation4 + $0x40] sm:$0xff]  ;;  %v6711_v34 = vld [vmem:[#allocation4 + $0x50] sm:$0xff] }
 0x645   : > { %7136 = vmatpush1.bf16.msra.mxu0 %v6861_v50  ;;  %7177 = vmatpush1.bf16.msra.mxu1 %v6863_v51  ;;  %v6742_v35 = vld [vmem:[#allocation4 + $0x148] sm:$0xff]  ;;  %v6744_v36 = vld [vmem:[#allocation4 + $0x158] sm:$0xff]  ;;  %v6741_v37 = vld [vmem:[#allocation4 + $0x140] sm:$0xff] }
 0x646   : > { %7137 = vmatprep.subr.bf16.mxu0 %v6894_v53  ;;  %7178 = vmatprep.subr.bf16.mxu1 %v6896_v0  ;;  %v6743_v38 = vld [vmem:[#allocation4 + $0x150] sm:$0xff]  ;;  %v6774_v39 = vld [vmem:[#allocation4 + $0x248] sm:$0xff]  ;;  %v6776_v40 = vld [vmem:[#allocation4 + $0x258] sm:$0xff] }
 0x647   : > { %v6773_v42 = vld [vmem:[#allocation4 + $0x240] sm:$0xff]  ;;  %v6775_v43 = vld [vmem:[#allocation4 + $0x250] sm:$0xff]  ;;  %v6806_v44 = vld [vmem:[#allocation4 + $0x348] sm:$0xff] }
 0x648   : > { %v6808_v46 = vld [vmem:[#allocation4 + $0x358] sm:$0xff]  ;;  %v6805_v47 = vld [vmem:[#allocation4 + $0x340] sm:$0xff]  ;;  %v6807_v48 = vld [vmem:[#allocation4 + $0x350] sm:$0xff] }
 0x649   : > { %7138 = vmatpush1.bf16.msra.mxu0 %v6893_v1  ;;  %7179 = vmatpush1.bf16.msra.mxu1 %v6895_v54  ;;  %v6838_v49 = vld [vmem:[#allocation4 + $0x448] sm:$0xff]  ;;  %v6840_v50 = vld [vmem:[#allocation4 + $0x458] sm:$0xff]  ;;  %v6837_v51 = vld [vmem:[#allocation4 + $0x440] sm:$0xff] }
 0x64a   : > { %7139 = vmatprep.subr.bf16.mxu0 %v6926_v55  ;;  %7180 = vmatprep.subr.bf16.mxu1 %v6928_v56  ;;  %v6839_v53 = vld [vmem:[#allocation4 + $0x450] sm:$0xff]  ;;  %v6870_v0 = vld [vmem:[#allocation4 + $0x548] sm:$0xff]  ;;  %v6872_v1 = vld [vmem:[#allocation4 + $0x558] sm:$0xff] }
 0x64b   : > { %v6869_v54 = vld [vmem:[#allocation4 + $0x540] sm:$0xff]  ;;  %v6871_v55 = vld [vmem:[#allocation4 + $0x550] sm:$0xff]  ;;  %v6902_v56 = vld [vmem:[#allocation4 + $0x648] sm:$0xff] }
 0x64d   : > { %7140 = vmatpush1.bf16.msra.mxu0 %v6925_v30  ;;  %7181 = vmatpush1.bf16.msra.mxu1 %v6927_v31  ;;  %v6904_v30 = vld [vmem:[#allocation4 + $0x658] sm:$0xff]  ;;  %v6901_v31 = vld [vmem:[#allocation4 + $0x640] sm:$0xff] }
 0x64e   : > { %7207 = vmatprep.subr.bf16.mxu0 %v6706_v57  ;;  %7248 = vmatprep.subr.bf16.mxu1 %v6708_v58  ;;  %v6903_v57 = vld [vmem:[#allocation4 + $0x650] sm:$0xff]  ;;  %v6934_v58 = vld [vmem:[#allocation4 + $0x748] sm:$0xff] }
 0x650   : > { %7158 = vmatmul.mubr.bf16.vlgmr.msra.gmra.mrb[8].mxu0 %v11168_v59  ;;  %7199 = vmatmul.mubr.bf16.vlgmr.msra.gmra.mrb[8].mxu1 %v11168_v59 }
 0x651   : > { %7208 = vmatpush1.bf16.msra.mxu0 %v6705_v60  ;;  %7249 = vmatpush1.bf16.msra.mxu1 %v6707_v61  ;;  %v6936_v60 = vld [vmem:[#allocation4 + $0x758] sm:$0xff]  ;;  %v6933_v61 = vld [vmem:[#allocation4 + $0x740] sm:$0xff] }
 0x652   : > { %7209 = vmatprep.subr.bf16.mxu0 %v6738_v62  ;;  %7250 = vmatprep.subr.bf16.mxu1 %v6740_v63  ;;  %v6935_v62 = vld [vmem:[#allocation4 + $0x750] sm:$0xff]  ;;  %v6714_v63 = vld [vmem:[#allocation4 + $0x68] sm:$0xff] }
 0x653   : > { %7239 = vmatprep.mubr.bf16.mxu0 %v9107_v26  ;;  %7280 = vmatprep.mubr.bf16.mxu1 %v9107_v26 }
 0x655   : > { %7210 = vmatpush1.bf16.msra.mxu0 %v6737_v2  ;;  %7251 = vmatpush1.bf16.msra.mxu1 %v6739_v3  ;;  %v6716_v2 = vld [vmem:[#allocation4 + $0x78] sm:$0xff]  ;;  %v6713_v3 = vld [vmem:[#allocation4 + $0x60] sm:$0xff] }
 0x656   : > { %7211 = vmatprep.subr.bf16.mxu0 %v6770_v4  ;;  %7252 = vmatprep.subr.bf16.mxu1 %v6772_v7  ;;  %v6715_v4 = vld [vmem:[#allocation4 + $0x70] sm:$0xff]  ;;  %v6746_v7 = vld [vmem:[#allocation4 + $0x168] sm:$0xff] }
 0x659   : > { %7212 = vmatpush1.bf16.msra.mxu0 %v6769_v8  ;;  %7253 = vmatpush1.bf16.msra.mxu1 %v6771_v9  ;;  %v6748_v8 = vld [vmem:[#allocation4 + $0x178] sm:$0xff]  ;;  %v6745_v9 = vld [vmem:[#allocation4 + $0x160] sm:$0xff] }
 0x65a   : > { %7213 = vmatprep.subr.bf16.mxu0 %v6802_v10  ;;  %7254 = vmatprep.subr.bf16.mxu1 %v6804_v13  ;;  %v6747_v10 = vld [vmem:[#allocation4 + $0x170] sm:$0xff]  ;;  %v6778_v13 = vld [vmem:[#allocation4 + $0x268] sm:$0xff] }
 0x65d   : > { %7214 = vmatpush1.bf16.msra.mxu0 %v6801_v14  ;;  %7255 = vmatpush1.bf16.msra.mxu1 %v6803_v15  ;;  %v6780_v14 = vld [vmem:[#allocation4 + $0x278] sm:$0xff]  ;;  %v6777_v15 = vld [vmem:[#allocation4 + $0x260] sm:$0xff] }
 0x65e   : > { %7215 = vmatprep.subr.bf16.mxu0 %v6834_v17  ;;  %7256 = vmatprep.subr.bf16.mxu1 %v6836_v18  ;;  %v6779_v17 = vld [vmem:[#allocation4 + $0x270] sm:$0xff]  ;;  %v6810_v18 = vld [vmem:[#allocation4 + $0x368] sm:$0xff] }
 0x661   : > { %7216 = vmatpush1.bf16.msra.mxu0 %v6833_v19  ;;  %7257 = vmatpush1.bf16.msra.mxu1 %v6835_v6  ;;  %v6812_v19 = vld [vmem:[#allocation4 + $0x378] sm:$0xff]  ;;  %v6809_v6 = vld [vmem:[#allocation4 + $0x360] sm:$0xff] }
 0x662   : > { %7217 = vmatprep.subr.bf16.mxu0 %v6866_v20  ;;  %7258 = vmatprep.subr.bf16.mxu1 %v6868_v21  ;;  %v6811_v20 = vld [vmem:[#allocation4 + $0x370] sm:$0xff]  ;;  %v6842_v21 = vld [vmem:[#allocation4 + $0x468] sm:$0xff] }
 0x665   : > { %7218 = vmatpush1.bf16.msra.mxu0 %v6865_v22  ;;  %7259 = vmatpush1.bf16.msra.mxu1 %v6867_v24  ;;  %v6844_v22 = vld [vmem:[#allocation4 + $0x478] sm:$0xff]  ;;  %v6841_v24 = vld [vmem:[#allocation4 + $0x460] sm:$0xff] }
 0x666   : > { %7219 = vmatprep.subr.bf16.mxu0 %v6898_v25  ;;  %7260 = vmatprep.subr.bf16.mxu1 %v6900_v41  ;;  %v6843_v25 = vld [vmem:[#allocation4 + $0x470] sm:$0xff]  ;;  %v6874_v41 = vld [vmem:[#allocation4 + $0x568] sm:$0xff] }
 0x669   : > { %7220 = vmatpush1.bf16.msra.mxu0 %v6897_v45  ;;  %7261 = vmatpush1.bf16.msra.mxu1 %v6899_v5  ;;  %v6876_v45 = vld [vmem:[#allocation4 + $0x578] sm:$0xff]  ;;  %v6873_v5 = vld [vmem:[#allocation4 + $0x560] sm:$0xff] }
 0x66a   : > { %7221 = vmatprep.subr.bf16.mxu0 %v6930_v11  ;;  %7262 = vmatprep.subr.bf16.mxu1 %v6932_v27  ;;  %v6875_v11 = vld [vmem:[#allocation4 + $0x570] sm:$0xff]  ;;  %v6906_v27 = vld [vmem:[#allocation4 + $0x668] sm:$0xff] }
 0x66d   : > { %7222 = vmatpush1.bf16.msra.mxu0 %v6929_v12  ;;  %7263 = vmatpush1.bf16.msra.mxu1 %v6931_v28  ;;  %v6908_v12 = vld [vmem:[#allocation4 + $0x678] sm:$0xff]  ;;  %v6905_v28 = vld [vmem:[#allocation4 + $0x660] sm:$0xff] }
 0x66e   : > { %7289 = vmatprep.subr.bf16.mxu0 %v6710_v29  ;;  %7330 = vmatprep.subr.bf16.mxu1 %v6712_v32  ;;  %v6907_v29 = vld [vmem:[#allocation4 + $0x670] sm:$0xff]  ;;  %v6938_v32 = vld [vmem:[#allocation4 + $0x768] sm:$0xff] }
 0x670   : > { %7240 = vmatmul.mubr.bf16.vlgmr.msra.gmra.mrb[12].mxu0 %v11168_v59  ;;  %7281 = vmatmul.mubr.bf16.vlgmr.msra.gmra.mrb[12].mxu1 %v11168_v59 }
 0x671   : > { %7290 = vmatpush1.bf16.msra.mxu0 %v6709_v33  ;;  %7331 = vmatpush1.bf16.msra.mxu1 %v6711_v34  ;;  %v6940_v33 = vld [vmem:[#allocation4 + $0x778] sm:$0xff]  ;;  %v6937_v34 = vld [vmem:[#allocation4 + $0x760] sm:$0xff] }
 0x672   : > { %7291 = vmatprep.subr.bf16.mxu0 %v6742_v35  ;;  %7332 = vmatprep.subr.bf16.mxu1 %v6744_v36  ;;  %v6939_v35 = vld [vmem:[#allocation4 + $0x770] sm:$0xff]  ;;  %v6718_v36 = vld [vmem:[#allocation4 + $0x88] sm:$0xff] }
 0x673   : > { %7321 = vmatprep.mubr.bf16.mxu0 %v9107_v26  ;;  %7362 = vmatprep.mubr.bf16.mxu1 %v9107_v26 }
 0x675   : > { %7292 = vmatpush1.bf16.msra.mxu0 %v6741_v37  ;;  %7333 = vmatpush1.bf16.msra.mxu1 %v6743_v38  ;;  %v6720_v37 = vld [vmem:[#allocation4 + $0x98] sm:$0xff]  ;;  %v6717_v38 = vld [vmem:[#allocation4 + $0x80] sm:$0xff] }
 0x676   : > { %7293 = vmatprep.subr.bf16.mxu0 %v6774_v39  ;;  %7334 = vmatprep.subr.bf16.mxu1 %v6776_v40  ;;  %v6719_v39 = vld [vmem:[#allocation4 + $0x90] sm:$0xff]  ;;  %v6750_v40 = vld [vmem:[#allocation4 + $0x188] sm:$0xff] }
 0x679   : > { %7294 = vmatpush1.bf16.msra.mxu0 %v6773_v42  ;;  %7335 = vmatpush1.bf16.msra.mxu1 %v6775_v43  ;;  %v6752_v42 = vld [vmem:[#allocation4 + $0x198] sm:$0xff]  ;;  %v6749_v43 = vld [vmem:[#allocation4 + $0x180] sm:$0xff] }
 0x67a   : > { %7295 = vmatprep.subr.bf16.mxu0 %v6806_v44  ;;  %7336 = vmatprep.subr.bf16.mxu1 %v6808_v46  ;;  %v6751_v44 = vld [vmem:[#allocation4 + $0x190] sm:$0xff]  ;;  %v6782_v46 = vld [vmem:[#allocation4 + $0x288] sm:$0xff] }
 0x67d   : > { %7296 = vmatpush1.bf16.msra.mxu0 %v6805_v47  ;;  %7337 = vmatpush1.bf16.msra.mxu1 %v6807_v48  ;;  %v6784_v47 = vld [vmem:[#allocation4 + $0x298] sm:$0xff]  ;;  %v6781_v48 = vld [vmem:[#allocation4 + $0x280] sm:$0xff] }
 0x67e   : > { %7297 = vmatprep.subr.bf16.mxu0 %v6838_v49  ;;  %7338 = vmatprep.subr.bf16.mxu1 %v6840_v50  ;;  %v6783_v49 = vld [vmem:[#allocation4 + $0x290] sm:$0xff]  ;;  %v6814_v50 = vld [vmem:[#allocation4 + $0x388] sm:$0xff] }
 0x681   : > { %7298 = vmatpush1.bf16.msra.mxu0 %v6837_v51  ;;  %7339 = vmatpush1.bf16.msra.mxu1 %v6839_v53  ;;  %v6816_v51 = vld [vmem:[#allocation4 + $0x398] sm:$0xff]  ;;  %v6813_v53 = vld [vmem:[#allocation4 + $0x380] sm:$0xff] }
 0x682   : > { %7299 = vmatprep.subr.bf16.mxu0 %v6870_v0  ;;  %7340 = vmatprep.subr.bf16.mxu1 %v6872_v1  ;;  %v6815_v0 = vld [vmem:[#allocation4 + $0x390] sm:$0xff]  ;;  %v6846_v1 = vld [vmem:[#allocation4 + $0x488] sm:$0xff] }
 0x685   : > { %7300 = vmatpush1.bf16.msra.mxu0 %v6869_v54  ;;  %7341 = vmatpush1.bf16.msra.mxu1 %v6871_v55  ;;  %v6848_v54 = vld [vmem:[#allocation4 + $0x498] sm:$0xff]  ;;  %v6845_v55 = vld [vmem:[#allocation4 + $0x480] sm:$0xff] }
 0x686   : > { %7301 = vmatprep.subr.bf16.mxu0 %v6902_v56  ;;  %7342 = vmatprep.subr.bf16.mxu1 %v6904_v30  ;;  %v6847_v56 = vld [vmem:[#allocation4 + $0x490] sm:$0xff]  ;;  %v6878_v30 = vld [vmem:[#allocation4 + $0x588] sm:$0xff] }
 0x689   : > { %7302 = vmatpush1.bf16.msra.mxu0 %v6901_v31  ;;  %7343 = vmatpush1.bf16.msra.mxu1 %v6903_v57  ;;  %v6880_v31 = vld [vmem:[#allocation4 + $0x598] sm:$0xff]  ;;  %v6877_v57 = vld [vmem:[#allocation4 + $0x580] sm:$0xff] }
 0x68a   : > { %7303 = vmatprep.subr.bf16.mxu0 %v6934_v58  ;;  %7344 = vmatprep.subr.bf16.mxu1 %v6936_v60  ;;  %v6879_v58 = vld [vmem:[#allocation4 + $0x590] sm:$0xff]  ;;  %v6910_v60 = vld [vmem:[#allocation4 + $0x688] sm:$0xff] }
 0x68d   : > { %7304 = vmatpush1.bf16.msra.mxu0 %v6933_v61  ;;  %7345 = vmatpush1.bf16.msra.mxu1 %v6935_v62  ;;  %v6912_v61 = vld [vmem:[#allocation4 + $0x698] sm:$0xff]  ;;  %v6909_v62 = vld [vmem:[#allocation4 + $0x680] sm:$0xff] }
 0x68e   : > { %7371 = vmatprep.subr.bf16.mxu0 %v6714_v63  ;;  %7412 = vmatprep.subr.bf16.mxu1 %v6716_v2  ;;  %v6911_v63 = vld [vmem:[#allocation4 + $0x690] sm:$0xff]  ;;  %v6942_v2 = vld [vmem:[#allocation4 + $0x788] sm:$0xff] }
 0x690   : > { %7322 = vmatmul.mubr.bf16.vlgmr.msra.gmra.mrb[16].mxu0 %v11168_v59  ;;  %7363 = vmatmul.mubr.bf16.vlgmr.msra.gmra.mrb[16].mxu1 %v11168_v59 }
 0x691   : > { %7372 = vmatpush1.bf16.msra.mxu0 %v6713_v3  ;;  %7413 = vmatpush1.bf16.msra.mxu1 %v6715_v4  ;;  %v6944_v3 = vld [vmem:[#allocation4 + $0x798] sm:$0xff]  ;;  %v6941_v4 = vld [vmem:[#allocation4 + $0x780] sm:$0xff] }
 0x692   : > { %7373 = vmatprep.subr.bf16.mxu0 %v6746_v7  ;;  %7414 = vmatprep.subr.bf16.mxu1 %v6748_v8  ;;  %v6943_v7 = vld [vmem:[#allocation4 + $0x790] sm:$0xff]  ;;  %v6722_v8 = vld [vmem:[#allocation4 + $0xa8] sm:$0xff] }
 0x693   : > { %7403 = vmatprep.mubr.bf16.mxu0 %v9107_v26  ;;  %7444 = vmatprep.mubr.bf16.mxu1 %v9107_v26 }
 0x695   : > { %7374 = vmatpush1.bf16.msra.mxu0 %v6745_v9  ;;  %7415 = vmatpush1.bf16.msra.mxu1 %v6747_v10  ;;  %v6724_v9 = vld [vmem:[#allocation4 + $0xb8] sm:$0xff]  ;;  %v6721_v10 = vld [vmem:[#allocation4 + $0xa0] sm:$0xff] }
 0x696   : > { %7375 = vmatprep.subr.bf16.mxu0 %v6778_v13  ;;  %7416 = vmatprep.subr.bf16.mxu1 %v6780_v14  ;;  %v6723_v13 = vld [vmem:[#allocation4 + $0xb0] sm:$0xff]  ;;  %v6754_v14 = vld [vmem:[#allocation4 + $0x1a8] sm:$0xff] }
 0x699   : > { %7376 = vmatpush1.bf16.msra.mxu0 %v6777_v15  ;;  %7417 = vmatpush1.bf16.msra.mxu1 %v6779_v17  ;;  %v6756_v15 = vld [vmem:[#allocation4 + $0x1b8] sm:$0xff]  ;;  %v6753_v17 = vld [vmem:[#allocation4 + $0x1a0] sm:$0xff] }
 0x69a   : > { %7377 = vmatprep.subr.bf16.mxu0 %v6810_v18  ;;  %7418 = vmatprep.subr.bf16.mxu1 %v6812_v19  ;;  %v6755_v18 = vld [vmem:[#allocation4 + $0x1b0] sm:$0xff]  ;;  %v6786_v19 = vld [vmem:[#allocation4 + $0x2a8] sm:$0xff] }
 0x69d   : > { %7378 = vmatpush1.bf16.msra.mxu0 %v6809_v6  ;;  %7419 = vmatpush1.bf16.msra.mxu1 %v6811_v20  ;;  %v6788_v6 = vld [vmem:[#allocation4 + $0x2b8] sm:$0xff]  ;;  %v6785_v20 = vld [vmem:[#allocation4 + $0x2a0] sm:$0xff] }
 0x69e   : > { %7379 = vmatprep.subr.bf16.mxu0 %v6842_v21  ;;  %7420 = vmatprep.subr.bf16.mxu1 %v6844_v22  ;;  %v6787_v21 = vld [vmem:[#allocation4 + $0x2b0] sm:$0xff]  ;;  %v6818_v22 = vld [vmem:[#allocation4 + $0x3a8] sm:$0xff] }
 0x6a1   : > { %7380 = vmatpush1.bf16.msra.mxu0 %v6841_v24  ;;  %7421 = vmatpush1.bf16.msra.mxu1 %v6843_v25  ;;  %v6820_v24 = vld [vmem:[#allocation4 + $0x3b8] sm:$0xff]  ;;  %v6817_v25 = vld [vmem:[#allocation4 + $0x3a0] sm:$0xff] }
 0x6a2   : > { %7381 = vmatprep.subr.bf16.mxu0 %v6874_v41  ;;  %7422 = vmatprep.subr.bf16.mxu1 %v6876_v45  ;;  %v6819_v41 = vld [vmem:[#allocation4 + $0x3b0] sm:$0xff]  ;;  %v6850_v45 = vld [vmem:[#allocation4 + $0x4a8] sm:$0xff] }
 0x6a5   : > { %7382 = vmatpush1.bf16.msra.mxu0 %v6873_v5  ;;  %7423 = vmatpush1.bf16.msra.mxu1 %v6875_v11  ;;  %v6852_v5 = vld [vmem:[#allocation4 + $0x4b8] sm:$0xff]  ;;  %v6849_v11 = vld [vmem:[#allocation4 + $0x4a0] sm:$0xff] }
 0x6a6   : > { %7383 = vmatprep.subr.bf16.mxu0 %v6906_v27  ;;  %7424 = vmatprep.subr.bf16.mxu1 %v6908_v12  ;;  %v6851_v27 = vld [vmem:[#allocation4 + $0x4b0] sm:$0xff]  ;;  %v6882_v12 = vld [vmem:[#allocation4 + $0x5a8] sm:$0xff] }
 0x6a9   : > { %7384 = vmatpush1.bf16.msra.mxu0 %v6905_v28  ;;  %7425 = vmatpush1.bf16.msra.mxu1 %v6907_v29  ;;  %v6884_v28 = vld [vmem:[#allocation4 + $0x5b8] sm:$0xff]  ;;  %v6881_v29 = vld [vmem:[#allocation4 + $0x5a0] sm:$0xff] }
 0x6aa   : > { %7385 = vmatprep.subr.bf16.mxu0 %v6938_v32  ;;  %7426 = vmatprep.subr.bf16.mxu1 %v6940_v33  ;;  %v6883_v32 = vld [vmem:[#allocation4 + $0x5b0] sm:$0xff]  ;;  %v6914_v33 = vld [vmem:[#allocation4 + $0x6a8] sm:$0xff] }
 0x6ad   : > { %7386 = vmatpush1.bf16.msra.mxu0 %v6937_v34  ;;  %7427 = vmatpush1.bf16.msra.mxu1 %v6939_v35  ;;  %v6916_v34 = vld [vmem:[#allocation4 + $0x6b8] sm:$0xff]  ;;  %v6913_v35 = vld [vmem:[#allocation4 + $0x6a0] sm:$0xff] }
 0x6ae   : > { %7453 = vmatprep.subr.bf16.mxu0 %v6718_v36  ;;  %7494 = vmatprep.subr.bf16.mxu1 %v6720_v37  ;;  %v6915_v36 = vld [vmem:[#allocation4 + $0x6b0] sm:$0xff]  ;;  %v6946_v37 = vld [vmem:[#allocation4 + $0x7a8] sm:$0xff] }
 0x6b0   : > { %7404 = vmatmul.mubr.bf16.vlgmr.msra.gmra.mrb[20].mxu0 %v11168_v59  ;;  %7445 = vmatmul.mubr.bf16.vlgmr.msra.gmra.mrb[20].mxu1 %v11168_v59 }
 0x6b1   : > { %7454 = vmatpush1.bf16.msra.mxu0 %v6717_v38  ;;  %7495 = vmatpush1.bf16.msra.mxu1 %v6719_v39  ;;  %v6948_v38 = vld [vmem:[#allocation4 + $0x7b8] sm:$0xff]  ;;  %v6945_v39 = vld [vmem:[#allocation4 + $0x7a0] sm:$0xff] }
 0x6b2   : > { %7455 = vmatprep.subr.bf16.mxu0 %v6750_v40  ;;  %7496 = vmatprep.subr.bf16.mxu1 %v6752_v42  ;;  %v6947_v40 = vld [vmem:[#allocation4 + $0x7b0] sm:$0xff]  ;;  %v6726_v42 = vld [vmem:[#allocation4 + $0xc8] sm:$0xff] }
 0x6b3   : > { %7485 = vmatprep.mubr.bf16.mxu0 %v9107_v26  ;;  %7526 = vmatprep.mubr.bf16.mxu1 %v9107_v26 }
 0x6b5   : > { %7456 = vmatpush1.bf16.msra.mxu0 %v6749_v43  ;;  %7497 = vmatpush1.bf16.msra.mxu1 %v6751_v44  ;;  %v6728_v43 = vld [vmem:[#allocation4 + $0xd8] sm:$0xff]  ;;  %v6725_v44 = vld [vmem:[#allocation4 + $0xc0] sm:$0xff] }
 0x6b6   : > { %7457 = vmatprep.subr.bf16.mxu0 %v6782_v46  ;;  %7498 = vmatprep.subr.bf16.mxu1 %v6784_v47  ;;  %v6727_v46 = vld [vmem:[#allocation4 + $0xd0] sm:$0xff]  ;;  %v6758_v47 = vld [vmem:[#allocation4 + $0x1c8] sm:$0xff] }
 0x6b9   : > { %7458 = vmatpush1.bf16.msra.mxu0 %v6781_v48  ;;  %7499 = vmatpush1.bf16.msra.mxu1 %v6783_v49  ;;  %v6760_v48 = vld [vmem:[#allocation4 + $0x1d8] sm:$0xff]  ;;  %v6757_v49 = vld [vmem:[#allocation4 + $0x1c0] sm:$0xff] }
 0x6ba   : > { %7459 = vmatprep.subr.bf16.mxu0 %v6814_v50  ;;  %7500 = vmatprep.subr.bf16.mxu1 %v6816_v51  ;;  %v6759_v50 = vld [vmem:[#allocation4 + $0x1d0] sm:$0xff]  ;;  %v6790_v51 = vld [vmem:[#allocation4 + $0x2c8] sm:$0xff] }
 0x6bd   : > { %7460 = vmatpush1.bf16.msra.mxu0 %v6813_v53  ;;  %7501 = vmatpush1.bf16.msra.mxu1 %v6815_v0  ;;  %v6792_v53 = vld [vmem:[#allocation4 + $0x2d8] sm:$0xff]  ;;  %v6789_v0 = vld [vmem:[#allocation4 + $0x2c0] sm:$0xff] }
 0x6be   : > { %7461 = vmatprep.subr.bf16.mxu0 %v6846_v1  ;;  %7502 = vmatprep.subr.bf16.mxu1 %v6848_v54  ;;  %v6791_v1 = vld [vmem:[#allocation4 + $0x2d0] sm:$0xff]  ;;  %v6822_v54 = vld [vmem:[#allocation4 + $0x3c8] sm:$0xff] }
 0x6c1   : > { %7462 = vmatpush1.bf16.msra.mxu0 %v6845_v55  ;;  %7503 = vmatpush1.bf16.msra.mxu1 %v6847_v56  ;;  %v6824_v55 = vld [vmem:[#allocation4 + $0x3d8] sm:$0xff]  ;;  %v6821_v56 = vld [vmem:[#allocation4 + $0x3c0] sm:$0xff] }
 0x6c2   : > { %7463 = vmatprep.subr.bf16.mxu0 %v6878_v30  ;;  %7504 = vmatprep.subr.bf16.mxu1 %v6880_v31  ;;  %v6823_v30 = vld [vmem:[#allocation4 + $0x3d0] sm:$0xff]  ;;  %v6854_v31 = vld [vmem:[#allocation4 + $0x4c8] sm:$0xff] }
 0x6c5   : > { %7464 = vmatpush1.bf16.msra.mxu0 %v6877_v57  ;;  %7505 = vmatpush1.bf16.msra.mxu1 %v6879_v58  ;;  %v6856_v57 = vld [vmem:[#allocation4 + $0x4d8] sm:$0xff]  ;;  %v6853_v58 = vld [vmem:[#allocation4 + $0x4c0] sm:$0xff] }
 0x6c6   : > { %7465 = vmatprep.subr.bf16.mxu0 %v6910_v60  ;;  %7506 = vmatprep.subr.bf16.mxu1 %v6912_v61  ;;  %v6855_v60 = vld [vmem:[#allocation4 + $0x4d0] sm:$0xff]  ;;  %v6886_v61 = vld [vmem:[#allocation4 + $0x5c8] sm:$0xff] }
 0x6c9   : > { %7466 = vmatpush1.bf16.msra.mxu0 %v6909_v62  ;;  %7507 = vmatpush1.bf16.msra.mxu1 %v6911_v63  ;;  %v6888_v62 = vld [vmem:[#allocation4 + $0x5d8] sm:$0xff]  ;;  %v6885_v63 = vld [vmem:[#allocation4 + $0x5c0] sm:$0xff] }
 0x6ca   : > { %7467 = vmatprep.subr.bf16.mxu0 %v6942_v2  ;;  %7508 = vmatprep.subr.bf16.mxu1 %v6944_v3  ;;  %v6887_v2 = vld [vmem:[#allocation4 + $0x5d0] sm:$0xff]  ;;  %v6918_v3 = vld [vmem:[#allocation4 + $0x6c8] sm:$0xff] }
 0x6cd   : > { %7468 = vmatpush1.bf16.msra.mxu0 %v6941_v4  ;;  %7509 = vmatpush1.bf16.msra.mxu1 %v6943_v7  ;;  %v6920_v4 = vld [vmem:[#allocation4 + $0x6d8] sm:$0xff]  ;;  %v6917_v7 = vld [vmem:[#allocation4 + $0x6c0] sm:$0xff] }
 0x6ce   : > { %7535 = vmatprep.subr.bf16.mxu0 %v6722_v8  ;;  %7576 = vmatprep.subr.bf16.mxu1 %v6724_v9  ;;  %v6919_v8 = vld [vmem:[#allocation4 + $0x6d0] sm:$0xff]  ;;  %v6950_v9 = vld [vmem:[#allocation4 + $0x7c8] sm:$0xff] }
 0x6d0   : > { %7486 = vmatmul.mubr.bf16.vlgmr.msra.gmra.mrb[24].mxu0 %v11168_v59  ;;  %7527 = vmatmul.mubr.bf16.vlgmr.msra.gmra.mrb[24].mxu1 %v11168_v59 }
 0x6d1   : > { %7536 = vmatpush1.bf16.msra.mxu0 %v6721_v10  ;;  %7577 = vmatpush1.bf16.msra.mxu1 %v6723_v13  ;;  %v6952_v10 = vld [vmem:[#allocation4 + $0x7d8] sm:$0xff]  ;;  %v6949_v13 = vld [vmem:[#allocation4 + $0x7c0] sm:$0xff] }
 0x6d2   : > { %7537 = vmatprep.subr.bf16.mxu0 %v6754_v14  ;;  %7578 = vmatprep.subr.bf16.mxu1 %v6756_v15  ;;  %v6951_v14 = vld [vmem:[#allocation4 + $0x7d0] sm:$0xff]  ;;  %v6730_v15 = vld [vmem:[#allocation4 + $0xe8] sm:$0xff] }
 0x6d3   : > { %7567 = vmatprep.mubr.bf16.mxu0 %v9107_v26  ;;  %7608 = vmatprep.mubr.bf16.mxu1 %v9107_v26 }
 0x6d5   : > { %7538 = vmatpush1.bf16.msra.mxu0 %v6753_v17  ;;  %7579 = vmatpush1.bf16.msra.mxu1 %v6755_v18  ;;  %v6732_v17 = vld [vmem:[#allocation4 + $0xf8] sm:$0xff]  ;;  %v6729_v18 = vld [vmem:[#allocation4 + $0xe0] sm:$0xff] }
 0x6d6   : > { %7539 = vmatprep.subr.bf16.mxu0 %v6786_v19  ;;  %7580 = vmatprep.subr.bf16.mxu1 %v6788_v6  ;;  %v6731_v19 = vld [vmem:[#allocation4 + $0xf0] sm:$0xff]  ;;  %v6762_v6 = vld [vmem:[#allocation4 + $0x1e8] sm:$0xff] }
 0x6d9   : > { %7540 = vmatpush1.bf16.msra.mxu0 %v6785_v20  ;;  %7581 = vmatpush1.bf16.msra.mxu1 %v6787_v21  ;;  %v6764_v20 = vld [vmem:[#allocation4 + $0x1f8] sm:$0xff]  ;;  %v6761_v21 = vld [vmem:[#allocation4 + $0x1e0] sm:$0xff] }
 0x6da   : > { %7541 = vmatprep.subr.bf16.mxu0 %v6818_v22  ;;  %7582 = vmatprep.subr.bf16.mxu1 %v6820_v24  ;;  %v6763_v22 = vld [vmem:[#allocation4 + $0x1f0] sm:$0xff]  ;;  %v6794_v24 = vld [vmem:[#allocation4 + $0x2e8] sm:$0xff] }
 0x6dd   : > { %7542 = vmatpush1.bf16.msra.mxu0 %v6817_v25  ;;  %7583 = vmatpush1.bf16.msra.mxu1 %v6819_v41  ;;  %v6796_v25 = vld [vmem:[#allocation4 + $0x2f8] sm:$0xff]  ;;  %v6793_v41 = vld [vmem:[#allocation4 + $0x2e0] sm:$0xff] }
 0x6de   : > { %7543 = vmatprep.subr.bf16.mxu0 %v6850_v45  ;;  %7584 = vmatprep.subr.bf16.mxu1 %v6852_v5  ;;  %v6795_v45 = vld [vmem:[#allocation4 + $0x2f0] sm:$0xff]  ;;  %v6826_v5 = vld [vmem:[#allocation4 + $0x3e8] sm:$0xff] }
 0x6e1   : > { %7544 = vmatpush1.bf16.msra.mxu0 %v6849_v11  ;;  %7585 = vmatpush1.bf16.msra.mxu1 %v6851_v27  ;;  %v6828_v11 = vld [vmem:[#allocation4 + $0x3f8] sm:$0xff]  ;;  %v6825_v27 = vld [vmem:[#allocation4 + $0x3e0] sm:$0xff] }
 0x6e2   : > { %7545 = vmatprep.subr.bf16.mxu0 %v6882_v12  ;;  %7586 = vmatprep.subr.bf16.mxu1 %v6884_v28  ;;  %v6827_v12 = vld [vmem:[#allocation4 + $0x3f0] sm:$0xff]  ;;  %v6858_v28 = vld [vmem:[#allocation4 + $0x4e8] sm:$0xff] }
 0x6e5   : > { %7546 = vmatpush1.bf16.msra.mxu0 %v6881_v29  ;;  %7587 = vmatpush1.bf16.msra.mxu1 %v6883_v32  ;;  %v6860_v29 = vld [vmem:[#allocation4 + $0x4f8] sm:$0xff]  ;;  %v11199_v32 = vsub.s32 2, %v11122_v16 }
 0x6e6   : > { %7547 = vmatprep.subr.bf16.mxu0 %v6914_v33  ;;  %7588 = vmatprep.subr.bf16.mxu1 %v6916_v34  ;;  %v11204_v33 = vsub.s32 3, %v11122_v16  ;;  %v6857_v34 = vld [vmem:[#allocation4 + $0x4e0] sm:$0xff] }
 0x6e9   : > { %7548 = vmatpush1.bf16.msra.mxu0 %v6913_v35  ;;  %7589 = vmatpush1.bf16.msra.mxu1 %v6915_v36  ;;  %v6859_v35 = vld [vmem:[#allocation4 + $0x4f0] sm:$0xff]  ;;  %v6890_v36 = vld [vmem:[#allocation4 + $0x5e8] sm:$0xff] }
 0x6ea   : > { %7549 = vmatprep.subr.bf16.mxu0 %v6946_v37  ;;  %7590 = vmatprep.subr.bf16.mxu1 %v6948_v38  ;;  %v6892_v37 = vld [vmem:[#allocation4 + $0x5f8] sm:$0xff] }
 0x6ed   : > { %7550 = vmatpush1.bf16.msra.mxu0 %v6945_v39  ;;  %7591 = vmatpush1.bf16.msra.mxu1 %v6947_v40 }
 0x6ee   : > { %7617 = vmatprep.subr.bf16.mxu0 %v6726_v42  ;;  %7658 = vmatprep.subr.bf16.mxu1 %v6728_v43  ;;  %v6889_v43 = vld [vmem:[#allocation4 + $0x5e0] sm:$0xff] }
 0x6f0   : > { %7568 = vmatmul.mubr.bf16.vlgmr.msra.gmra.mrb[28].mxu0 %v11168_v59  ;;  %7609 = vmatmul.mubr.bf16.vlgmr.msra.gmra.mrb[28].mxu1 %v11168_v59 }
 0x6f1   : > { %7618 = vmatpush1.bf16.msra.mxu0 %v6725_v44  ;;  %7659 = vmatpush1.bf16.msra.mxu1 %v6727_v46  ;;  %v6891_v44 = vld [vmem:[#allocation4 + $0x5f0] sm:$0xff] }
 0x6f2   : > { %7619 = vmatprep.subr.bf16.mxu0 %v6758_v47  ;;  %7660 = vmatprep.subr.bf16.mxu1 %v6760_v48  ;;  %v6922_v48 = vld [vmem:[#allocation4 + $0x6e8] sm:$0xff] }
 0x6f3   : > { %7649 = vmatprep.mubr.bf16.mxu0 %v9107_v26  ;;  %7690 = vmatprep.mubr.bf16.mxu1 %v9107_v26 }
 0x6f5   : > { %7620 = vmatpush1.bf16.msra.mxu0 %v6757_v49  ;;  %7661 = vmatpush1.bf16.msra.mxu1 %v6759_v50  ;;  %v6924_v49 = vld [vmem:[#allocation4 + $0x6f8] sm:$0xff] }
 0x6f6   : > { %7621 = vmatprep.subr.bf16.mxu0 %v6790_v51  ;;  %7662 = vmatprep.subr.bf16.mxu1 %v6792_v53 }
 0x6f9   : > { %7622 = vmatpush1.bf16.msra.mxu0 %v6789_v0  ;;  %7663 = vmatpush1.bf16.msra.mxu1 %v6791_v1 }
 0x6fa   : > { %7623 = vmatprep.subr.bf16.mxu0 %v6822_v54  ;;  %7664 = vmatprep.subr.bf16.mxu1 %v6824_v55 }
 0x6fd   : > { %7624 = vmatpush1.bf16.msra.mxu0 %v6821_v56  ;;  %7665 = vmatpush1.bf16.msra.mxu1 %v6823_v30 }
 0x6fe   : > { %7625 = vmatprep.subr.bf16.mxu0 %v6854_v31  ;;  %7666 = vmatprep.subr.bf16.mxu1 %v6856_v57  ;;  %v6921_v57 = vld [vmem:[#allocation4 + $0x6e0] sm:$0xff] }
 0x701   : > { %7626 = vmatpush1.bf16.msra.mxu0 %v6853_v58  ;;  %7667 = vmatpush1.bf16.msra.mxu1 %v6855_v60  ;;  %v6923_v58 = vld [vmem:[#allocation4 + $0x6f0] sm:$0xff]  ;;  %v6954_v60 = vld [vmem:[#allocation4 + $0x7e8] sm:$0xff] }
 0x702   : > { %7627 = vmatprep.subr.bf16.mxu0 %v6886_v61  ;;  %7668 = vmatprep.subr.bf16.mxu1 %v6888_v62  ;;  %v6956_v61 = vld [vmem:[#allocation4 + $0x7f8] sm:$0xff]  ;;  %v6953_v62 = vld [vmem:[#allocation4 + $0x7e0] sm:$0xff] }
 0x705   : > { %7628 = vmatpush1.bf16.msra.mxu0 %v6885_v63  ;;  %7669 = vmatpush1.bf16.msra.mxu1 %v6887_v2  ;;  %v6955_v63 = vld [vmem:[#allocation4 + $0x7f0] sm:$0xff]  ;;  %v11217_v2 = vsub.s32 4, %v11122_v16 }
 0x706   : > { %7629 = vmatprep.subr.bf16.mxu0 %v6918_v3  ;;  %7670 = vmatprep.subr.bf16.mxu1 %v6920_v4  ;;  %v11220_v3 = vsub.s32 6, %v11122_v16  ;;  %v11223_v4 = vsub.s32 5, %v11122_v16 }
 0x709   : > { %7630 = vmatpush1.bf16.msra.mxu0 %v6917_v7  ;;  %7671 = vmatpush1.bf16.msra.mxu1 %v6919_v8  ;;  %v11226_v7 = vsub.s32 7, %v11122_v16 }
 0x70a   : > { %7631 = vmatprep.subr.bf16.mxu0 %v6950_v9  ;;  %7672 = vmatprep.subr.bf16.mxu1 %v6952_v10 }
 0x70d   : > { %7632 = vmatpush1.bf16.msra.mxu0 %v6949_v13  ;;  %7673 = vmatpush1.bf16.msra.mxu1 %v6951_v14 }
 0x70e   : > { %7699 = vmatprep.subr.bf16.mxu0 %v6730_v15  ;;  %7740 = vmatprep.subr.bf16.mxu1 %v6732_v17 }
 0x710   : > { %7650 = vmatmul.mubr.bf16.vlgmr.msra.gmra.mrb[32].mxu0 %v11168_v59  ;;  %7691 = vmatmul.mubr.bf16.vlgmr.msra.gmra.mrb[32].mxu1 %v11168_v59 }
 0x711   : > { %7700 = vmatpush1.bf16.msra.mxu0 %v6729_v18  ;;  %7741 = vmatpush1.bf16.msra.mxu1 %v6731_v19 }
 0x712   : > { %7701 = vmatprep.subr.bf16.mxu0 %v6762_v6  ;;  %7742 = vmatprep.subr.bf16.mxu1 %v6764_v20 }
 0x713   : > { %7731 = vmatprep.mubr.bf16.mxu0 %v9107_v26  ;;  %7772 = vmatprep.mubr.bf16.mxu1 %v9107_v26  ;;  %v11201_v26 = vld [vmem:[#allocation12] sm:$0xff] }
 0x714   : > { %v6968_v38 = vrot.slane %v11201_v26, %v11129_v52  ;;  %v6976_v39 = vrot.slane %v11201_v26, %v11199_v32  ;;  %v6972_v40 = vrot.slane %v11201_v26, %v11125_v23  ;;  %v6980_v42 = vrot.slane %v11201_v26, %v11204_v33 }
 0x715   : > { %7702 = vmatpush1.bf16.msra.mxu0 %v6761_v21  ;;  %7743 = vmatpush1.bf16.msra.mxu1 %v6763_v22  ;;  %v6984_v8 = vrot.slane %v11201_v26, %v11217_v2  ;;  %v6992_v9 = vrot.slane %v11201_v26, %v11220_v3  ;;  %v6996_v10 = vrot.slane %v11201_v26, %v11226_v7 }
 0x716   : > { %7703 = vmatprep.subr.bf16.mxu0 %v6794_v24  ;;  %7744 = vmatprep.subr.bf16.mxu1 %v6796_v25  ;;  %v6958_v25 = vld [vmem:[#allocation12 + $0x8] sm:$0xff] }
 0x719   : > { %7704 = vmatpush1.bf16.msra.mxu0 %v6793_v41  ;;  %7745 = vmatpush1.bf16.msra.mxu1 %v6795_v45  ;;  %v7000_v41 = vrot.slane %v6958_v25, %v11129_v52  ;;  %v7008_v45 = vrot.slane %v6958_v25, %v11199_v32 }
 0x71a   : > { %7705 = vmatprep.subr.bf16.mxu0 %v6826_v5  ;;  %7746 = vmatprep.subr.bf16.mxu1 %v6828_v11  ;;  %v7004_v5 = vrot.slane %v6958_v25, %v11125_v23  ;;  %v7012_v11 = vrot.slane %v6958_v25, %v11204_v33 }
 0x71d   : > { %7706 = vmatpush1.bf16.msra.mxu0 %v6825_v27  ;;  %7747 = vmatpush1.bf16.msra.mxu1 %v6827_v12 }
 0x71e   : > { %7707 = vmatprep.subr.bf16.mxu0 %v6858_v28  ;;  %7748 = vmatprep.subr.bf16.mxu1 %v6860_v29 }
 0x721   : > { %7708 = vmatpush1.bf16.msra.mxu0 %v6857_v34  ;;  %7749 = vmatpush1.bf16.msra.mxu1 %v6859_v35 }
 0x722   : > { %7709 = vmatprep.subr.bf16.mxu0 %v6890_v36  ;;  %7750 = vmatprep.subr.bf16.mxu1 %v6892_v37 }
 0x723   : > { %v7159_v46 = vpop.f32.mrb[8].mxu0  ;;  %v7200_v47 = vpop.f32.mrb[8].mxu1 }
 0x724   : > { %v7160_v50 = vadd.f32 %v7159_v46, %v6968_v38  ;;  %v7201_v51 = vadd.f32 %v7200_v47, %v6976_v39  ;;  %v7161_v53 = vpop.f32.mrb[9].mxu0  ;;  %v7202_v0 = vpop.f32.mrb[9].mxu1  ;;  %v7028_v46 = vrot.slane %v6958_v25, %v11226_v7 }
 0x725   : > { %v7162_v1 = vadd.f32 %v7161_v53, %v6972_v40  ;;  %v7203_v54 = vadd.f32 %v7202_v0, %v6980_v42  ;;  %v7163_v55 = vpop.f32.mrb[10].mxu0  ;;  %v7204_v56 = vpop.f32.mrb[10].mxu1  ;;  %7710 = vmatpush1.bf16.msra.mxu0 %v6889_v43  ;;  %7751 = vmatpush1.bf16.msra.mxu1 %v6891_v44  ;;  %v7016_v42 = vrot.slane %v6958_v25, %v11217_v2 }
 0x726   : > { %7781 = vst [vmem:[#allocation14] sm:$0xff] %v7160_v50  ;;  %7783 = vst [vmem:[#allocation14 + $0x10] sm:$0xff] %v7201_v51  ;;  %v7164_v30 = vpop.f32.mrb[11].mxu0  ;;  %v7205_v31 = vpop.f32.mrb[11].mxu1  ;;  %7711 = vmatprep.subr.bf16.mxu0 %v6922_v48  ;;  %7752 = vmatprep.subr.bf16.mxu1 %v6924_v49  ;;  %v7024_v43 = vrot.slane %v6958_v25, %v11220_v3  ;;  %v7020_v44 = vrot.slane %v6958_v25, %v11223_v4 }
 0x727   : > { %7782 = vst [vmem:[#allocation14 + $0x8] sm:$0xff] %v7162_v1  ;;  %7784 = vst [vmem:[#allocation14 + $0x18] sm:$0xff] %v7203_v54  ;;  %v6959_v31 = vld [vmem:[#allocation12 + $0x10] sm:$0xff] }
 0x729   : > { %7712 = vmatpush1.bf16.msra.mxu0 %v6921_v57  ;;  %7753 = vmatpush1.bf16.msra.mxu1 %v6923_v58  ;;  %v7032_v57 = vrot.slane %v6959_v31, %v11129_v52  ;;  %v7040_v58 = vrot.slane %v6959_v31, %v11199_v32 }
 0x72a   : > { %7713 = vmatprep.subr.bf16.mxu0 %v6954_v60  ;;  %7754 = vmatprep.subr.bf16.mxu1 %v6956_v61  ;;  %v7036_v60 = vrot.slane %v6959_v31, %v11125_v23  ;;  %v7044_v61 = vrot.slane %v6959_v31, %v11204_v33 }
 0x72d   : > { %7714 = vmatpush1.bf16.msra.mxu0 %v6953_v62  ;;  %7755 = vmatpush1.bf16.msra.mxu1 %v6955_v63 }
 0x730   : > { %7732 = vmatmul.mubr.bf16.vlgmr.msra.gmra.mrb[36].mxu0 %v11168_v59  ;;  %7773 = vmatmul.mubr.bf16.vlgmr.msra.gmra.mrb[36].mxu1 %v11168_v59  ;;  %v6988_v59 = vrot.slane %v11201_v26, %v11223_v4 }
 0x743   : > { %v7241_v13 = vpop.f32.mrb[12].mxu0  ;;  %v7282_v14 = vpop.f32.mrb[12].mxu1 }
 0x744   : > { %v7242_v15 = vadd.f32 %v7241_v13, %v6984_v8  ;;  %v7283_v17 = vadd.f32 %v7282_v14, %v6992_v9  ;;  %v7243_v18 = vpop.f32.mrb[13].mxu0  ;;  %v7284_v19 = vpop.f32.mrb[13].mxu1 }
 0x745   : > { %v7244_v16 = vadd.f32 %v7243_v18, %v6988_v59  ;;  %v7285_v6 = vadd.f32 %v7284_v19, %v6996_v10  ;;  %v7245_v20 = vpop.f32.mrb[14].mxu0  ;;  %v7286_v21 = vpop.f32.mrb[14].mxu1 }
 0x746   : > { %7785 = vst [vmem:[#allocation14 + $0x20] sm:$0xff] %v7242_v15  ;;  %7787 = vst [vmem:[#allocation14 + $0x30] sm:$0xff] %v7283_v17  ;;  %v7246_v22 = vpop.f32.mrb[15].mxu0  ;;  %v7287_v24 = vpop.f32.mrb[15].mxu1  ;;  %v7052_v20 = vrot.slane %v6959_v31, %v11223_v4  ;;  %v7060_v21 = vrot.slane %v6959_v31, %v11226_v7 }
 0x747   : > { %7786 = vst [vmem:[#allocation14 + $0x28] sm:$0xff] %v7244_v16  ;;  %7788 = vst [vmem:[#allocation14 + $0x38] sm:$0xff] %v7285_v6  ;;  %v7048_v16 = vrot.slane %v6959_v31, %v11217_v2  ;;  %v7056_v6 = vrot.slane %v6959_v31, %v11220_v3 }
 0x763   : > { %v7323_v27 = vpop.f32.mrb[16].mxu0  ;;  %v7364_v12 = vpop.f32.mrb[16].mxu1 }
 0x764   : > { %v7324_v28 = vadd.f32 %v7323_v27, %v7000_v41  ;;  %v7365_v29 = vadd.f32 %v7364_v12, %v7008_v45  ;;  %v7325_v26 = vpop.f32.mrb[17].mxu0  ;;  %v7366_v34 = vpop.f32.mrb[17].mxu1 }
 0x765   : > { %v7326_v35 = vadd.f32 %v7325_v26, %v7004_v5  ;;  %v7367_v36 = vadd.f32 %v7366_v34, %v7012_v11  ;;  %v7327_v37 = vpop.f32.mrb[18].mxu0  ;;  %v7368_v38 = vpop.f32.mrb[18].mxu1  ;;  %v6960_v34 = vld [vmem:[#allocation12 + $0x18] sm:$0xff] }
 0x766   : > { %7789 = vst [vmem:[#allocation14 + $0x40] sm:$0xff] %v7324_v28  ;;  %7791 = vst [vmem:[#allocation14 + $0x50] sm:$0xff] %v7365_v29  ;;  %v7328_v39 = vpop.f32.mrb[19].mxu0  ;;  %v7369_v40 = vpop.f32.mrb[19].mxu1  ;;  %v7068_v37 = vrot.slane %v6960_v34, %v11125_v23  ;;  %v7076_v38 = vrot.slane %v6960_v34, %v11204_v33  ;;  %v7080_v23 = vrot.slane %v6960_v34, %v11217_v2 }
 0x767   : > { %7790 = vst [vmem:[#allocation14 + $0x48] sm:$0xff] %v7326_v35  ;;  %7792 = vst [vmem:[#allocation14 + $0x58] sm:$0xff] %v7367_v36  ;;  %v7064_v35 = vrot.slane %v6960_v34, %v11129_v52  ;;  %v7072_v36 = vrot.slane %v6960_v34, %v11199_v32  ;;  %v7088_v32 = vrot.slane %v6960_v34, %v11220_v3 }
 0x768   : > { %v7084_v33 = vrot.slane %v6960_v34, %v11223_v4 }
 0x783   : > { %v7405_v47 = vpop.f32.mrb[20].mxu0  ;;  %v7446_v48 = vpop.f32.mrb[20].mxu1 }
 0x784   : > { %v7406_v49 = vadd.f32 %v7405_v47, %v7016_v42  ;;  %v7447_v50 = vadd.f32 %v7446_v48, %v7024_v43  ;;  %v7407_v51 = vpop.f32.mrb[21].mxu0  ;;  %v7448_v53 = vpop.f32.mrb[21].mxu1 }
 0x785   : > { %v7408_v0 = vadd.f32 %v7407_v51, %v7020_v44  ;;  %v7449_v1 = vadd.f32 %v7448_v53, %v7028_v46  ;;  %v7409_v54 = vpop.f32.mrb[22].mxu0  ;;  %v7450_v55 = vpop.f32.mrb[22].mxu1  ;;  %v7092_v53 = vrot.slane %v6960_v34, %v11226_v7 }
 0x786   : > { %7793 = vst [vmem:[#allocation14 + $0x60] sm:$0xff] %v7406_v49  ;;  %7795 = vst [vmem:[#allocation14 + $0x70] sm:$0xff] %v7447_v50  ;;  %v7410_v56 = vpop.f32.mrb[23].mxu0  ;;  %v7451_v30 = vpop.f32.mrb[23].mxu1 }
 0x787   : > { %7794 = vst [vmem:[#allocation14 + $0x68] sm:$0xff] %v7408_v0  ;;  %7796 = vst [vmem:[#allocation14 + $0x78] sm:$0xff] %v7449_v1 }
 0x7a3   : > { %v7487_v62 = vpop.f32.mrb[24].mxu0  ;;  %v7528_v63 = vpop.f32.mrb[24].mxu1 }
 0x7a4   : > { %v7488_v8 = vadd.f32 %v7487_v62, %v7032_v57  ;;  %v7529_v9 = vadd.f32 %v7528_v63, %v7040_v58  ;;  %v7489_v59 = vpop.f32.mrb[25].mxu0  ;;  %v7530_v10 = vpop.f32.mrb[25].mxu1 }
 0x7a5   : > { %v7490_v13 = vadd.f32 %v7489_v59, %v7036_v60  ;;  %v7531_v14 = vadd.f32 %v7530_v10, %v7044_v61  ;;  %v7491_v15 = vpop.f32.mrb[26].mxu0  ;;  %v7532_v17 = vpop.f32.mrb[26].mxu1 }
 0x7a6   : > { %7797 = vst [vmem:[#allocation14 + $0x80] sm:$0xff] %v7488_v8  ;;  %7799 = vst [vmem:[#allocation14 + $0x90] sm:$0xff] %v7529_v9  ;;  %v7492_v18 = vpop.f32.mrb[27].mxu0  ;;  %v7533_v19 = vpop.f32.mrb[27].mxu1 }
 0x7a7   : > { %7798 = vst [vmem:[#allocation14 + $0x88] sm:$0xff] %v7490_v13  ;;  %7800 = vst [vmem:[#allocation14 + $0x98] sm:$0xff] %v7531_v14 }
 0x7c3   : > { %v7569_v22 = vpop.f32.mrb[28].mxu0  ;;  %v7610_v24 = vpop.f32.mrb[28].mxu1 }
 0x7c4   : > { %v7570_v25 = vadd.f32 %v7569_v22, %v7048_v16  ;;  %v7611_v41 = vadd.f32 %v7610_v24, %v7056_v6  ;;  %v7571_v45 = vpop.f32.mrb[29].mxu0  ;;  %v7612_v5 = vpop.f32.mrb[29].mxu1 }
 0x7c5   : > { %v7572_v11 = vadd.f32 %v7571_v45, %v7052_v20  ;;  %v7613_v27 = vadd.f32 %v7612_v5, %v7060_v21  ;;  %v7573_v12 = vpop.f32.mrb[30].mxu0  ;;  %v7614_v28 = vpop.f32.mrb[30].mxu1 }
 0x7c6   : > { %7801 = vst [vmem:[#allocation14 + $0xa0] sm:$0xff] %v7570_v25  ;;  %7803 = vst [vmem:[#allocation14 + $0xb0] sm:$0xff] %v7611_v41  ;;  %v7574_v29 = vpop.f32.mrb[31].mxu0  ;;  %v7615_v26 = vpop.f32.mrb[31].mxu1 }
 0x7c7   : > { %7802 = vst [vmem:[#allocation14 + $0xa8] sm:$0xff] %v7572_v11  ;;  %7804 = vst [vmem:[#allocation14 + $0xb8] sm:$0xff] %v7613_v27 }
 0x7e3   : > { %v7651_v39 = vpop.f32.mrb[32].mxu0  ;;  %v7692_v40 = vpop.f32.mrb[32].mxu1 }
 0x7e4   : > { %v7652_v42 = vadd.f32 %v7651_v39, %v7064_v35  ;;  %v7693_v43 = vadd.f32 %v7692_v40, %v7072_v36  ;;  %v7653_v44 = vpop.f32.mrb[33].mxu0  ;;  %v7694_v46 = vpop.f32.mrb[33].mxu1 }
 0x7e5   : > { %v7654_v47 = vadd.f32 %v7653_v44, %v7068_v37  ;;  %v7695_v48 = vadd.f32 %v7694_v46, %v7076_v38  ;;  %v7655_v49 = vpop.f32.mrb[34].mxu0  ;;  %v7696_v50 = vpop.f32.mrb[34].mxu1 }
 0x7e6   : > { %7805 = vst [vmem:[#allocation14 + $0xc0] sm:$0xff] %v7652_v42  ;;  %7807 = vst [vmem:[#allocation14 + $0xd0] sm:$0xff] %v7693_v43  ;;  %v7656_v51 = vpop.f32.mrb[35].mxu0  ;;  %v7697_v52 = vpop.f32.mrb[35].mxu1 }
 0x7e7   : > { %7806 = vst [vmem:[#allocation14 + $0xc8] sm:$0xff] %v7654_v47  ;;  %7808 = vst [vmem:[#allocation14 + $0xd8] sm:$0xff] %v7695_v48 }
 0x803   : > { %v7733_v0 = vpop.f32.mrb[36].mxu0  ;;  %v7774_v1 = vpop.f32.mrb[36].mxu1 }
 0x804   : > { %v7734_v54 = vadd.f32 %v7733_v0, %v7080_v23  ;;  %v7775_v55 = vadd.f32 %v7774_v1, %v7088_v32  ;;  %v7735_v56 = vpop.f32.mrb[37].mxu0  ;;  %v7776_v30 = vpop.f32.mrb[37].mxu1 }
 0x805   : > { %v7736_v31 = vadd.f32 %v7735_v56, %v7084_v33  ;;  %v7777_v57 = vadd.f32 %v7776_v30, %v7092_v53  ;;  %v7737_v58 = vpop.f32.mrb[38].mxu0  ;;  %v7778_v60 = vpop.f32.mrb[38].mxu1 }
 0x806   : > { %7809 = vst [vmem:[#allocation14 + $0xe0] sm:$0xff] %v7734_v54  ;;  %7811 = vst [vmem:[#allocation14 + $0xf0] sm:$0xff] %v7775_v55  ;;  %v7738_v61 = vpop.f32.mrb[39].mxu0  ;;  %v7779_v2 = vpop.f32.mrb[39].mxu1 }
 0x807   : > { %7810 = vst [vmem:[#allocation14 + $0xe8] sm:$0xff] %v7736_v31  ;;  %7812 = vst [vmem:[#allocation14 + $0xf8] sm:$0xff] %v7777_v57 }
 0x808 PF: > { %p8589_p2 = scmp.eq.s32.totalorder %s9163_s25, 3  ;;  %s9108_s28 = smov [#allocation14]  }
 0x809   : > { %s7820_s20 = sshll.u32 %s9108_s28, 4  ;;  %s7821_s20 = int_to_ptr.vmem [resolvable:$true] %s7820_s20 }
 0x80a   : > { %s9015_s11 = scalar_lea.vmem %s7821_s20, 4096  ;;  %p9022_p9 = scmp.lt.s32.totalorder %s7821_s20, %s7821_s20 }
 0x80b   : > { %p9016_p13 = scmp.ne.s32.totalorder %s7821_s20, %s9015_s11  ;;  %p9023_p11 = scmp.lt.s32.totalorder %s9015_s11, %s9015_s11 }
 0x80d   : > { %p9017_p3 = pnand %p9016_p13, %p8589_p2  ;;  %p9024_p7 = por %p9023_p11, %p9022_p9 }
 0x80f   : > { %p9018_p10 = pneg %p9017_p3 }
 0x811   : > { %p9025_p8 = pnand %p9024_p7, %p9018_p10 }
 0x813   : > { %9028 = shalt.err (!%p9025_p8)
}
 0x814   : > { %s9029_s16 = scalar_lea.hbm %s11302_s6, 4096 }
 0x815   : > { %p9030_p1 = scmp.ne.s32.totalorder %s11302_s6, %s9029_s16  ;;  %p9035_p6 = scmp.lt.u32.totalorder %s9029_s16, %s11302_s6 }
 0x817   : > { %p9031_p4 = pnand %p9030_p1, %p8589_p2 }
 0x819   : > { %p9032_p5 = pneg %p9031_p4 }
 0x81b   : > { %p9037_p12 = pnand %p9035_p6, %p9032_p5 }
 0x81d   : > { %9040 = shalt.err (!%p9037_p12)
}
 0x81e   : > { %8567 = dma.vmem_to_hbm [thread:$0]  (%p8589_p2), %s7821_s20, 4096, %s11302_s6, [#allocation8]  }
 0x81f   : > { %9076 = dma.done.wait (%p8589_p2), [#allocation8], 4096  }
 0x820   : > { %9078 = vsyncadd (%p8589_p2), [#allocation8], 4294963200 }
 0x821 PF: > { %p21_p0 = scmp.ge.s32.totalorder %s9238_s15, 6   ;;  %s11317_s21 = smov %s9085_s22 }
 0x822   : > { %s11318_s22 = smov %s9089_s23  ;;  %s11319_s23 = smov %s9251_s18 }
 0x823   : > { %s11320_s24 = smov %s9238_s15  ;;  %23 = sbr.rel (!%p21_p0) target bundleno = 7 (0x7), region = 193 }
 0x82a   :  { %7833 = vsyncpa [#allocation7], 1 }
 0x82b   :  { %7835 = vsyncpa [#allocation7 + $0x1], 1 }
 0x82c   :  { %7836 = vsyncpa [#allocation10], 1 }
 0x82d   :  { %7838 = vsyncpa [#allocation10 + $0x1], 1 }
 0x82e   :  { %7839 = vsyncpa [#allocation13], 1 }
 0x82f   :  { %7840 = vsyncpa [#allocation8], 1 }
 0x830   :  { %7842 = vsyncpa [#allocation8 + $0x1], 1 }
 0x831   :  { %7843 = vsyncmov [#allocation5] }
 0x834   :  { %s7844_s25 = vpop.sfrf %7843 }
 0x835   :  { %p8210_p2 = scmp.ne.s32.totalorder %s7844_s25, 0 }
 0x837   :  { %7848 = shalt.err (%p8210_p2)  }

</bundles_post_ra>
